<compile_context>
chip_gen: v7x
topology: tpu7x:2x2x1
jax: 0.10.0
libtpu: 0.0.40
codegen_flags: <defaults>
</compile_context>

<pallas_src>
import functools

import jax
import jax.numpy as jnp
from jax.experimental import pallas as pl
from jax.experimental.pallas import tpu as pltpu

LANE = 128          # all feature dims zero-padded to multiples of this
NEG_BIG = -1e30     # softmax mask value; keep f32 (never bf16)


# ---------------------------------------------------------------------------
# Kernel 1: per-layer feature transform + attention logits (one row tile).
#   x' = x @ W   (bf16 MXU, f32 acc)
#   s  = x' @ [att_src | att_dst | 0...]   -> s[:,0]=s_src, s[:,1]=s_dst
# ---------------------------------------------------------------------------
def _gat_transform_kernel(x_ref, w_ref, att_ref, xp_ref, s_src_ref, s_dst_ref):
    x = x_ref[...].astype(jnp.bfloat16)
    xp = jnp.dot(x, w_ref[...], preferred_element_type=jnp.float32)
    xp_bf = xp.astype(xp_ref.dtype)
    xp_ref[...] = xp_bf
    # Both logits in a single lane-aligned MXU matmul (columns 0/1 of att_ref).
    s = jnp.dot(xp_bf, att_ref[...], preferred_element_type=jnp.float32)
    s_src_ref[...] = s[:, 0:1]
    s_dst_ref[...] = s[:, 1:2]


# ---------------------------------------------------------------------------
# Kernel 2: masked-softmax attention + aggregation, online softmax over
# source-node tiles.  grid = (N//tn  "parallel", N//tk  "arbitrary").
# The f32 output block is the accumulator (block index constant across k).
# ---------------------------------------------------------------------------
def _gat_attention_kernel(apply_relu, a_ref, xp_ref, s_src_ref, s_dst_ref,
                          b_ref, out_ref, m_sc, l_sc):
    k = pl.program_id(1)

    @pl.when(k == 0)
    def _init():
        m_sc[...] = jnp.full(m_sc.shape, NEG_BIG, jnp.float32)
        l_sc[...] = jnp.zeros(l_sc.shape, jnp.float32)
        out_ref[...] = jnp.zeros(out_ref.shape, jnp.float32)

    a = a_ref[...].astype(jnp.float32)            # int8 edge counts -> f32
    # e[i, j] = LeakyReLU(s_dst[i] + s_src[j], 0.2), masked where no edge.
    e = s_dst_ref[...] + s_src_ref[...]           # (tn,1)+(1,tk) -> (tn,tk)
    e = jnp.maximum(e, 0.2 * e)                   # LeakyReLU via max (1 fewer op)
    e = jnp.where(a > 0.0, e, NEG_BIG)            # single mask select

    # Online softmax (every node has a self loop => denominator stays > 0).
    m_new = jnp.maximum(m_sc[...], jnp.max(e, axis=-1, keepdims=True))
    corr = jnp.exp(m_sc[...] - m_new)
    p = a * jnp.exp(e - m_new)                    # multiplicity-weighted numerators
    l_sc[...] = corr * l_sc[...] + jnp.sum(p, axis=-1, keepdims=True)
    out_ref[...] = corr * out_ref[...] + jnp.dot(
        p.astype(xp_ref.dtype), xp_ref[...], preferred_element_type=jnp.float32)
    m_sc[...] = m_new

    @pl.when(k == pl.num_programs(1) - 1)
    def _finalize():
        out = out_ref[...] * pl.reciprocal(l_sc[...], approx=True) + b_ref[...]
        if apply_relu:                            # static (fused F.relu)
            out = jnp.maximum(out, 0.0)
        out_ref[...] = out


# ---------------------------------------------------------------------------
# Tile / VMEM-limit selection
# ---------------------------------------------------------------------------
def _pick_tile(n, preferred):
    for t in preferred:
        if t <= n and n % t == 0:
            return t
    return n


def _choose_tiles(n):
    # Keep >= 2 row blocks where possible so v7x's two TensorCores both get work.
    if n % 256 == 0 and n // 256 >= 2:
        tn = 256
    elif n % 128 == 0:
        tn = 128
    else:
        tn = n
    tk = _pick_tile(n, (512, 256, 128))
    return tn, tk


def _vmem_limit_bytes(tn, tk, f, c):
    # Footprint-based advisory limit (double-buffered inputs + resident blocks)
    # with generous headroom; capped well under v7x's 64 MiB per-TC VMEM.
    per_step = (2 * tn * tk * 1            # int8 adjacency tile
                + 2 * tk * c * 2           # bf16 x' source tile
                + 2 * tn * f * 4           # f32 x row tile (K1)
                + f * c * 2 + c * LANE * 2 # bf16 W and logit matrix
                + 2 * c * 4                # bias
                + tn * c * 4 + tn * c * 2  # resident f32 out acc + bf16 xp out
                + 8 * tn * 4 + 2 * tk * 4) # logit blocks / scratch
    return int(min(max(4 * per_step, 8 << 20), 48 << 20))


# ---------------------------------------------------------------------------
# One GATConv layer = transform kernel + attention kernel.
# ---------------------------------------------------------------------------
def _gat_layer(a, x, w_bf, att_bf, bias, *, relu):
    n, f = x.shape
    c = w_bf.shape[1]
    assert n % LANE == 0 and f % LANE == 0 and c % LANE == 0, \
        "pad node count and feature dims to 128"
    tn, tk = _choose_tiles(n)
    tm = tn
    vmem_limit = _vmem_limit_bytes(tn, tk, f, c)

    xp, s_src, s_dst = pl.pallas_call(
        _gat_transform_kernel,
        out_shape=(
            jax.ShapeDtypeStruct((n, c), jnp.bfloat16),   # x' (bf16: halves K2 stream)
            jax.ShapeDtypeStruct((n, 1), jnp.float32),    # s_src
            jax.ShapeDtypeStruct((n, 1), jnp.float32),    # s_dst
        ),
        grid_spec=pltpu.PrefetchScalarGridSpec(
            num_scalar_prefetch=0,
            grid=(n // tm,),
            in_specs=[
                pl.BlockSpec((tm, f), lambda i: (i, 0)),      # x row tile
                pl.BlockSpec((f, c), lambda i: (0, 0)),       # W       (const, bf16)
                pl.BlockSpec((c, LANE), lambda i: (0, 0)),    # [att_src|att_dst|0]
            ],
            out_specs=[
                pl.BlockSpec((tm, c), lambda i: (i, 0)),
                pl.BlockSpec((tm, 1), lambda i: (i, 0)),
                pl.BlockSpec((tm, 1), lambda i: (i, 0)),
            ],
        ),
        compiler_params=pltpu.CompilerParams(
            dimension_semantics=("parallel",),
            vmem_limit_bytes=vmem_limit),
    )(x, w_bf, att_bf)

    # (n, 1) -> (1, n): tiny host relayout so the source logits arrive lane-major
    # in kernel 2 (no in-kernel transpose; n*4 bytes per layer is negligible).
    s_src_row = s_src.reshape(1, n)

    kernel = functools.partial(_gat_attention_kernel, relu)
    out = pl.pallas_call(
        kernel,
        out_shape=jax.ShapeDtypeStruct((n, c), jnp.float32),
        grid_spec=pltpu.PrefetchScalarGridSpec(
            num_scalar_prefetch=0,
            grid=(n // tn, n // tk),
            in_specs=[
                pl.BlockSpec((tn, tk), lambda i, k: (i, k)),  # int8 adjacency tile
                pl.BlockSpec((tk, c), lambda i, k: (k, 0)),   # bf16 x' source tile
                pl.BlockSpec((1, tk), lambda i, k: (0, k)),   # s_src (lane-major)
                pl.BlockSpec((tn, 1), lambda i, k: (i, 0)),   # s_dst row block
                pl.BlockSpec((1, c), lambda i, k: (0, 0)),    # bias (const)
            ],
            out_specs=pl.BlockSpec((tn, c), lambda i, k: (i, 0)),  # = f32 accumulator
            scratch_shapes=[
                pltpu.VMEM((tn, 1), jnp.float32),   # running max
                pltpu.VMEM((tn, 1), jnp.float32),   # running denominator
            ],
        ),
        compiler_params=pltpu.CompilerParams(
            dimension_semantics=("parallel", "arbitrary"),
            vmem_limit_bytes=vmem_limit),
    )(a, xp, s_src_row, s_dst, bias)
    return out


def encoder_forward(a, x, layer_params):
    """GraphTransformingEncoder forward (norm=None, heads=1):
    ReLU after every GATConv except the last."""
    h = x
    last = len(layer_params) - 1
    for idx, (w, att_src, att_dst, bias) in enumerate(layer_params):
        c = w.shape[1]
        w_bf = w.astype(jnp.bfloat16)
        att = jnp.zeros((c, LANE), jnp.float32)
        att = att.at[:, 0].set(att_src[0]).at[:, 1].set(att_dst[0])
        att_bf = att.astype(jnp.bfloat16)
        h = _gat_layer(a, h, w_bf, att_bf, bias, relu=(idx < last))
    return h


# ---------------------------------------------------------------------------
# Host-side preprocessing
# ---------------------------------------------------------------------------
def build_dense_adjacency(edge_index, num_nodes, num_nodes_padded=None):
    """GATConv preprocessing: remove existing self loops, add one self loop per
    node.  A[i, j] = multiplicity of edge j -> i (src = edge_index[0],
    dst = edge_index[1]).  Stored int8: edge multiplicity must stay <= 127."""
    if num_nodes_padded is None:
        num_nodes_padded = num_nodes
    src, dst = edge_index[0], edge_index[1]
    keep = (src != dst).astype(jnp.int32)
    a = jnp.zeros((num_nodes_padded, num_nodes_padded), jnp.int32)
    a = a.at[dst, src].add(keep)
    # Self loops for every node (incl. padding nodes, keeping their softmax
    # denominator > 0; padding rows are sliced off and never feed real rows).
    a = a + jnp.eye(num_nodes_padded, dtype=jnp.int32)
    return a.astype(jnp.int8)


def _round_up(v, m):
    return ((v + m - 1) // m) * m


def _pad2(arr, rows, cols):
    r, c = arr.shape
    return jnp.pad(arr, ((0, rows - r), (0, cols - c)))


if __name__ == "__main__":
    # Small deterministic problem consistent with the module:
    # GraphTransformingEncoder(num_in=32, num_out=48, conv_dim=64, heads=1,
    #                          hidden_layers=1, norm=None)
    # on a graph with 256 nodes and 1024 random directed edges.
    N, E = 256, 1024
    num_in, conv_dim, num_out = 32, 64, 48
    heads, hidden_layers = 1, 1
    n_layers = hidden_layers + 2

    key = jax.random.PRNGKey(0)
    keys = jax.random.split(key, 2 + n_layers)
    x = jax.random.normal(keys[0], (N, num_in), jnp.float32)
    edge_index = jax.random.randint(keys[1], (2, E), 0, N, dtype=jnp.int32)

    def make_gat_params(k, fan_in, fan_out):
        k1, k2, k3, k4 = jax.random.split(k, 4)
        w = jax.random.normal(k1, (fan_in, fan_out), jnp.float32) / jnp.sqrt(
            jnp.float32(fan_in))
        att_src = jax.random.normal(k2, (1, fan_out), jnp.float32) / jnp.sqrt(
            jnp.float32(fan_out))
        att_dst = jax.random.normal(k3, (1, fan_out), jnp.float32) / jnp.sqrt(
            jnp.float32(fan_out))
        bias = 0.01 * jax.random.normal(k4, (1, fan_out), jnp.float32)
        return w, att_src, att_dst, bias

    dims = [num_in] + [conv_dim] * (hidden_layers + 1) + [int(num_out / heads)]
    layers = [make_gat_params(keys[2 + l], dims[l], dims[l + 1])
              for l in range(n_layers)]

    # ---- host-side padding to tile-aligned / lane-dense shapes ----
    Np = _round_up(N, LANE)
    pdims = [_round_up(d, LANE) for d in dims]

    a_pad = build_dense_adjacency(edge_index, N, Np)          # int8 (Np, Np)
    x_pad = _pad2(x, Np, pdims[0])
    layers_pad = tuple(
        (_pad2(w, pdims[l], pdims[l + 1]),
         _pad2(att_src, 1, pdims[l + 1]),
         _pad2(att_dst, 1, pdims[l + 1]),
         _pad2(bias, 1, pdims[l + 1]))
        for l, (w, att_src, att_dst, bias) in enumerate(layers))

    encoder = jax.jit(encoder_forward)
    out_pad = encoder(a_pad, x_pad, layers_pad)
    jax.block_until_ready(out_pad)
    out = out_pad[:N, :dims[-1]]

    # ---- pure-JAX reference (exact GATConv math, f32, unpadded) ----
    HI = jax.lax.Precision.HIGHEST

    def gat_ref(adj, h, w, att_src, att_dst, bias, relu):
        xp = jnp.dot(h, w, precision=HI)
        s_src = jnp.sum(xp * att_src, axis=-1)
        s_dst = jnp.sum(xp * att_dst, axis=-1)
        e = s_dst[:, None] + s_src[None, :]
        e = jnp.where(e > 0, e, 0.2 * e)
        e = jnp.where(adj > 0, e, -jnp.inf)
        m = jnp.max(e, axis=-1, keepdims=True)
        p = adj * jnp.exp(e - m)
        o = jnp.dot(p, xp, precision=HI) / jnp.sum(p, axis=-1, keepdims=True) + bias
        return jnp.maximum(o, 0.0) if relu else o

    adj_ref = a_pad[:N, :N].astype(jnp.float32)
    h_ref = x
    for idx, params in enumerate(layers):
        h_ref = gat_ref(adj_ref, h_ref, *params, relu=(idx < n_layers - 1))

    assert out.shape == (N, num_out)
    assert bool(jnp.all(jnp.isfinite(out)))
    # Kernel runs bf16-operand matmuls (f32 accumulate); allow bf16-level error
    # relative to the exact-f32 reference: <=5% of dynamic range and <=2% rel-L2.
    max_err = float(jnp.max(jnp.abs(out - h_ref)))
    scale = float(jnp.max(jnp.abs(h_ref)))
    rel_l2 = float(jnp.linalg.norm(out - h_ref) / (jnp.linalg.norm(h_ref) + 1e-12))
    assert max_err <= 0.05 * scale + 1e-3, (max_err, scale)
    assert rel_l2 <= 2e-2, rel_l2

    print("KERNEL_OK")
</pallas_src>

<mosaic_0001>
module attributes {stable_mosaic.version = 11 : i64} {
  func.func @_gat_transform_kernel(%arg0: i32, %arg1: memref<128x128xf32, #tpu.memory_space<vmem>>, %arg2: memref<128x128xbf16, #tpu.memory_space<vmem>>, %arg3: memref<128x128xbf16, #tpu.memory_space<vmem>>, %arg4: memref<128x128xbf16, #tpu.memory_space<vmem>>, %arg5: memref<128x1xf32, #tpu.memory_space<vmem>>, %arg6: memref<128x1xf32, #tpu.memory_space<vmem>>) attributes {dimension_semantics = [#tpu.dimension_semantics<parallel>], iteration_bounds = array<i64: 2>, scalar_prefetch = 0 : i64, scratch_operands = 0 : i64, tpu.core_type = #tpu.core_type<tc>, window_params = [{transform_indices = @transform_0, window_bounds = array<i64: 128, 128>}, {pipeline_mode = #tpu.pipeline_mode<synchronous>, transform_indices = @transform_1, window_bounds = array<i64: 128, 128>}, {pipeline_mode = #tpu.pipeline_mode<synchronous>, transform_indices = @transform_2, window_bounds = array<i64: 128, 128>}, {transform_indices = @transform_3, window_bounds = array<i64: 128, 128>}, {transform_indices = @transform_4, window_bounds = array<i64: 128, 1>}, {transform_indices = @transform_5, window_bounds = array<i64: 128, 1>}]} {
    %c0 = arith.constant 0 : index
    %c0_0 = arith.constant 0 : index
    %0 = vector.load %arg1[%c0, %c0_0] : memref<128x128xf32, #tpu.memory_space<vmem>>, vector<128x128xf32>
    %1 = arith.truncf %0 : vector<128x128xf32> to vector<128x128xbf16>
    %c0_1 = arith.constant 0 : index
    %c0_2 = arith.constant 0 : index
    %2 = vector.load %arg2[%c0_1, %c0_2] : memref<128x128xbf16, #tpu.memory_space<vmem>>, vector<128x128xbf16>
    %cst = arith.constant dense<0.000000e+00> : vector<128x128xf32>
    %3 = tpu.matmul %1, %2, %cst {dimension_numbers = #tpu.dot_dimension_numbers<[1], [0], [0], [1], [0, 0, 1, 1], [], []>} : vector<128x128xbf16>, vector<128x128xbf16>, vector<128x128xf32> -> vector<128x128xf32>
    %4 = arith.truncf %3 : vector<128x128xf32> to vector<128x128xbf16>
    %c0_3 = arith.constant 0 : index
    %c0_4 = arith.constant 0 : index
    %5 = vector.load %arg4[%c0_3, %c0_4] : memref<128x128xbf16, #tpu.memory_space<vmem>>, vector<128x128xbf16>
    tpu.vector_store %arg4[%c0_3, %c0_4], %4 {strides = array<i32>} : memref<128x128xbf16, #tpu.memory_space<vmem>>, vector<128x128xbf16>,
    %c0_5 = arith.constant 0 : index
    %c0_6 = arith.constant 0 : index
    %6 = vector.load %arg3[%c0_5, %c0_6] : memref<128x128xbf16, #tpu.memory_space<vmem>>, vector<128x128xbf16>
    %cst_7 = arith.constant dense<0.000000e+00> : vector<128x128xf32>
    %7 = tpu.matmul %4, %6, %cst_7 {dimension_numbers = #tpu.dot_dimension_numbers<[1], [0], [0], [1], [0, 0, 1, 1], [], []>} : vector<128x128xbf16>, vector<128x128xbf16>, vector<128x128xf32> -> vector<128x128xf32>
    %8 = vector.extract_strided_slice %7 {offsets = [0, 0], sizes = [128, 1], strides = [1, 1]} : vector<128x128xf32> to vector<128x1xf32>
    %c0_8 = arith.constant 0 : index
    %c0_9 = arith.constant 0 : index
    %9 = vector.load %arg5[%c0_8, %c0_9] : memref<128x1xf32, #tpu.memory_space<vmem>>, vector<128x1xf32>
    tpu.vector_store %arg5[%c0_8, %c0_9], %8 {strides = array<i32>} : memref<128x1xf32, #tpu.memory_space<vmem>>, vector<128x1xf32>,
    %10 = vector.extract_strided_slice %7 {offsets = [0, 1], sizes = [128, 1], strides = [1, 1]} : vector<128x128xf32> to vector<128x1xf32>
    %c0_10 = arith.constant 0 : index
    %c0_11 = arith.constant 0 : index
    %11 = vector.load %arg6[%c0_10, %c0_11] : memref<128x1xf32, #tpu.memory_space<vmem>>, vector<128x1xf32>
    tpu.vector_store %arg6[%c0_10, %c0_11], %10 {strides = array<i32>} : memref<128x1xf32, #tpu.memory_space<vmem>>, vector<128x1xf32>,
    return
  }
  func.func @transform_0(%arg0: i32) -> (i32, i32) {
    %c0_i32 = arith.constant 0 : i32
    %c0_i32_0 = arith.constant 0 : i32
    return %arg0, %c0_i32 : i32, i32
  }
  func.func @transform_1(%arg0: i32) -> (i32, i32) {
    %c0_i32 = arith.constant 0 : i32
    %c0_i32_0 = arith.constant 0 : i32
    %c0_i32_1 = arith.constant 0 : i32
    return %c0_i32, %c0_i32_0 : i32, i32
  }
  func.func @transform_2(%arg0: i32) -> (i32, i32) {
    %c0_i32 = arith.constant 0 : i32
    %c0_i32_0 = arith.constant 0 : i32
    %c0_i32_1 = arith.constant 0 : i32
    return %c0_i32, %c0_i32_0 : i32, i32
  }
  func.func @transform_3(%arg0: i32) -> (i32, i32) {
    %c0_i32 = arith.constant 0 : i32
    %c0_i32_0 = arith.constant 0 : i32
    return %arg0, %c0_i32 : i32, i32
  }
  func.func @transform_4(%arg0: i32) -> (i32, i32) {
    %c0_i32 = arith.constant 0 : i32
    %c0_i32_0 = arith.constant 0 : i32
    return %arg0, %c0_i32 : i32, i32
  }
  func.func @transform_5(%arg0: i32) -> (i32, i32) {
    %c0_i32 = arith.constant 0 : i32
    %c0_i32_0 = arith.constant 0 : i32
    return %arg0, %c0_i32 : i32, i32
  }
}

module attributes {stable_mosaic.version = 11 : i64} {
  func.func @_gat_attention_kernel(%arg0: i32, %arg1: i32, %arg2: memref<128x256xi8, #tpu.memory_space<vmem>>, %arg3: memref<256x128xbf16, #tpu.memory_space<vmem>>, %arg4: memref<1x256xf32, #tpu.memory_space<vmem>>, %arg5: memref<128x1xf32, #tpu.memory_space<vmem>>, %arg6: memref<1x128xf32, #tpu.memory_space<vmem>>, %arg7: memref<128x128xf32, #tpu.memory_space<vmem>>, %arg8: memref<128x1xf32, #tpu.memory_space<vmem>>, %arg9: memref<128x1xf32, #tpu.memory_space<vmem>>) attributes {dimension_semantics = [#tpu.dimension_semantics<parallel>, #tpu.dimension_semantics<arbitrary>], iteration_bounds = array<i64: 2, 1>, scalar_prefetch = 0 : i64, scratch_operands = 2 : i64, tpu.core_type = #tpu.core_type<tc>, window_params = [{transform_indices = @transform_0, window_bounds = array<i64: 128, 256>}, {transform_indices = @transform_1, window_bounds = array<i64: 256, 128>}, {transform_indices = @transform_2, window_bounds = array<i64: 1, 256>}, {transform_indices = @transform_3, window_bounds = array<i64: 128, 1>}, {pipeline_mode = #tpu.pipeline_mode<synchronous>, transform_indices = @transform_4, window_bounds = array<i64: 1, 128>}, {transform_indices = @transform_5, window_bounds = array<i64: 128, 128>}]} {
    %c0_i32 = arith.constant 0 : i32
    %0 = arith.cmpi eq, %arg1, %c0_i32 : i32
    %1 = arith.extui %0 : i1 to i32
    %c0_i32_0 = arith.constant 0 : i32
    %2 = arith.cmpi ne, %1, %c0_i32_0 : i32
    scf.if %2 {
      %cst_29 = arith.constant -1.000000e+30 : f32
      %46 = vector.broadcast %cst_29 : f32 to vector<128x1xf32>
      %c0_30 = arith.constant 0 : index
      %c0_31 = arith.constant 0 : index
      %47 = vector.load %arg8[%c0_30, %c0_31] : memref<128x1xf32, #tpu.memory_space<vmem>>, vector<128x1xf32>
      tpu.vector_store %arg8[%c0_30, %c0_31], %46 {strides = array<i32>} : memref<128x1xf32, #tpu.memory_space<vmem>>, vector<128x1xf32>,
      %cst_32 = arith.constant 0.000000e+00 : f32
      %48 = vector.broadcast %cst_32 : f32 to vector<128x1xf32>
      %c0_33 = arith.constant 0 : index
      %c0_34 = arith.constant 0 : index
      %49 = vector.load %arg9[%c0_33, %c0_34] : memref<128x1xf32, #tpu.memory_space<vmem>>, vector<128x1xf32>
      tpu.vector_store %arg9[%c0_33, %c0_34], %48 {strides = array<i32>} : memref<128x1xf32, #tpu.memory_space<vmem>>, vector<128x1xf32>,
      %cst_35 = arith.constant 0.000000e+00 : f32
      %50 = vector.broadcast %cst_35 : f32 to vector<128x128xf32>
      %c0_36 = arith.constant 0 : index
      %c0_37 = arith.constant 0 : index
      %51 = vector.load %arg7[%c0_36, %c0_37] : memref<128x128xf32, #tpu.memory_space<vmem>>, vector<128x128xf32>
      tpu.vector_store %arg7[%c0_36, %c0_37], %50 {strides = array<i32>} : memref<128x128xf32, #tpu.memory_space<vmem>>, vector<128x128xf32>,
    } else {
    }
    %c0 = arith.constant 0 : index
    %c0_1 = arith.constant 0 : index
    %3 = vector.load %arg2[%c0, %c0_1] : memref<128x256xi8, #tpu.memory_space<vmem>>, vector<128x256xi8>
    %4 = arith.sitofp %3 : vector<128x256xi8> to vector<128x256xf32>
    %c0_2 = arith.constant 0 : index
    %c0_3 = arith.constant 0 : index
    %5 = vector.load %arg5[%c0_2, %c0_3] : memref<128x1xf32, #tpu.memory_space<vmem>>, vector<128x1xf32>
    %c0_4 = arith.constant 0 : index
    %c0_5 = arith.constant 0 : index
    %6 = vector.load %arg4[%c0_4, %c0_5] : memref<1x256xf32, #tpu.memory_space<vmem>>, vector<1x256xf32>
    %7 = vector.broadcast %5 : vector<128x1xf32> to vector<128x256xf32>
    %8 = vector.broadcast %6 : vector<1x256xf32> to vector<128x256xf32>
    %9 = arith.addf %7, %8 : vector<128x256xf32>
    %cst = arith.constant 2.000000e-01 : f32
    %10 = vector.broadcast %cst : f32 to vector<128x256xf32>
    %11 = arith.mulf %10, %9 : vector<128x256xf32>
    %12 = arith.maximumf %9, %11 : vector<128x256xf32>
    %cst_6 = arith.constant 0.000000e+00 : f32
    %13 = vector.broadcast %cst_6 : f32 to vector<128x256xf32>
    %14 = arith.cmpf ogt, %4, %13 : vector<128x256xf32>
    %cst_7 = arith.constant -1.000000e+30 : f32
    %15 = vector.broadcast %cst_7 : f32 to vector<128x256xf32>
    %16 = arith.select %14, %12, %15 : vector<128x256xi1>, vector<128x256xf32>
    %c0_8 = arith.constant 0 : index
    %c0_9 = arith.constant 0 : index
    %17 = vector.load %arg8[%c0_8, %c0_9] : memref<128x1xf32, #tpu.memory_space<vmem>>, vector<128x1xf32>
    %cst_10 = arith.constant dense<0xFF800000> : vector<128xf32>
    %18 = vector.multi_reduction <maximumf>, %16, %cst_10 [1] : vector<128x256xf32> to vector<128xf32>
    %19 = vector.shape_cast %18 : vector<128xf32> to vector<128x1xf32>
    %20 = arith.maximumf %17, %19 : vector<128x1xf32>
    %c0_11 = arith.constant 0 : index
    %c0_12 = arith.constant 0 : index
    %21 = vector.load %arg8[%c0_11, %c0_12] : memref<128x1xf32, #tpu.memory_space<vmem>>, vector<128x1xf32>
    %22 = arith.subf %21, %20 : vector<128x1xf32>
    %23 = math.exp %22 : vector<128x1xf32>
    %24 = vector.broadcast %20 : vector<128x1xf32> to vector<128x256xf32>
    %25 = arith.subf %16, %24 : vector<128x256xf32>
    %26 = math.exp %25 : vector<128x256xf32>
    %27 = arith.mulf %4, %26 : vector<128x256xf32>
    %c0_13 = arith.constant 0 : index
    %c0_14 = arith.constant 0 : index
    %28 = vector.load %arg9[%c0_13, %c0_14] : memref<128x1xf32, #tpu.memory_space<vmem>>, vector<128x1xf32>
    %29 = arith.mulf %23, %28 : vector<128x1xf32>
    %cst_15 = arith.constant dense<0.000000e+00> : vector<128xf32>
    %30 = vector.multi_reduction <add>, %27, %cst_15 [1] : vector<128x256xf32> to vector<128xf32>
    %31 = vector.shape_cast %30 : vector<128xf32> to vector<128x1xf32>
    %32 = arith.addf %29, %31 : vector<128x1xf32>
    %c0_16 = arith.constant 0 : index
    %c0_17 = arith.constant 0 : index
    %33 = vector.load %arg9[%c0_16, %c0_17] : memref<128x1xf32, #tpu.memory_space<vmem>>, vector<128x1xf32>
    tpu.vector_store %arg9[%c0_16, %c0_17], %32 {strides = array<i32>} : memref<128x1xf32, #tpu.memory_space<vmem>>, vector<128x1xf32>,
    %c0_18 = arith.constant 0 : index
    %c0_19 = arith.constant 0 : index
    %34 = vector.load %arg7[%c0_18, %c0_19] : memref<128x128xf32, #tpu.memory_space<vmem>>, vector<128x128xf32>
    %35 = vector.broadcast %23 : vector<128x1xf32> to vector<128x128xf32>
    %36 = arith.mulf %35, %34 : vector<128x128xf32>
    %37 = arith.truncf %27 : vector<128x256xf32> to vector<128x256xbf16>
    %c0_20 = arith.constant 0 : index
    %c0_21 = arith.constant 0 : index
    %38 = vector.load %arg3[%c0_20, %c0_21] : memref<256x128xbf16, #tpu.memory_space<vmem>>, vector<256x128xbf16>
    %cst_22 = arith.constant dense<0.000000e+00> : vector<128x128xf32>
    %39 = tpu.matmul %37, %38, %cst_22 {dimension_numbers = #tpu.dot_dimension_numbers<[1], [0], [0], [1], [0, 0, 1, 1], [], []>} : vector<128x256xbf16>, vector<256x128xbf16>, vector<128x128xf32> -> vector<128x128xf32>
    %40 = arith.addf %36, %39 : vector<128x128xf32>
    %c0_23 = arith.constant 0 : index
    %c0_24 = arith.constant 0 : index
    %41 = vector.load %arg7[%c0_23, %c0_24] : memref<128x128xf32, #tpu.memory_space<vmem>>, vector<128x128xf32>
    tpu.vector_store %arg7[%c0_23, %c0_24], %40 {strides = array<i32>} : memref<128x128xf32, #tpu.memory_space<vmem>>, vector<128x128xf32>,
    %c0_25 = arith.constant 0 : index
    %c0_26 = arith.constant 0 : index
    %42 = vector.load %arg8[%c0_25, %c0_26] : memref<128x1xf32, #tpu.memory_space<vmem>>, vector<128x1xf32>
    tpu.vector_store %arg8[%c0_25, %c0_26], %20 {strides = array<i32>} : memref<128x1xf32, #tpu.memory_space<vmem>>, vector<128x1xf32>,
    %c0_i32_27 = arith.constant 0 : i32
    %43 = arith.cmpi eq, %arg1, %c0_i32_27 : i32
    %44 = arith.extui %43 : i1 to i32
    %c0_i32_28 = arith.constant 0 : i32
    %45 = arith.cmpi ne, %44, %c0_i32_28 : i32
    scf.if %45 {
      %c0_29 = arith.constant 0 : index
      %c0_30 = arith.constant 0 : index
      %46 = vector.load %arg7[%c0_29, %c0_30] : memref<128x128xf32, #tpu.memory_space<vmem>>, vector<128x128xf32>
      %c0_31 = arith.constant 0 : index
      %c0_32 = arith.constant 0 : index
      %47 = vector.load %arg9[%c0_31, %c0_32] : memref<128x1xf32, #tpu.memory_space<vmem>>, vector<128x1xf32>
      %48 = tpu.reciprocal %47 {approx = true} : vector<128x1xf32> -> vector<128x1xf32>
      %49 = vector.broadcast %48 : vector<128x1xf32> to vector<128x128xf32>
      %50 = arith.mulf %46, %49 : vector<128x128xf32>
      %c0_33 = arith.constant 0 : index
      %c0_34 = arith.constant 0 : index
      %51 = vector.load %arg6[%c0_33, %c0_34] : memref<1x128xf32, #tpu.memory_space<vmem>>, vector<1x128xf32>
      %52 = vector.broadcast %51 : vector<1x128xf32> to vector<128x128xf32>
      %53 = arith.addf %50, %52 : vector<128x128xf32>
      %cst_35 = arith.constant 0.000000e+00 : f32
      %54 = vector.broadcast %cst_35 : f32 to vector<128x128xf32>
      %55 = arith.maximumf %53, %54 : vector<128x128xf32>
      %c0_36 = arith.constant 0 : index
      %c0_37 = arith.constant 0 : index
      %56 = vector.load %arg7[%c0_36, %c0_37] : memref<128x128xf32, #tpu.memory_space<vmem>>, vector<128x128xf32>
      tpu.vector_store %arg7[%c0_36, %c0_37], %55 {strides = array<i32>} : memref<128x128xf32, #tpu.memory_space<vmem>>, vector<128x128xf32>,
    } else {
    }
    return
  }
  func.func @transform_0(%arg0: i32, %arg1: i32) -> (i32, i32) {
    %c0_i32 = arith.constant 0 : i32
    return %arg0, %arg1 : i32, i32
  }
  func.func @transform_1(%arg0: i32, %arg1: i32) -> (i32, i32) {
    %c0_i32 = arith.constant 0 : i32
    %c0_i32_0 = arith.constant 0 : i32
    return %arg1, %c0_i32 : i32, i32
  }
  func.func @transform_2(%arg0: i32, %arg1: i32) -> (i32, i32) {
    %c0_i32 = arith.constant 0 : i32
    %c0_i32_0 = arith.constant 0 : i32
    return %c0_i32, %arg1 : i32, i32
  }
  func.func @transform_3(%arg0: i32, %arg1: i32) -> (i32, i32) {
    %c0_i32 = arith.constant 0 : i32
    %c0_i32_0 = arith.constant 0 : i32
    return %arg0, %c0_i32 : i32, i32
  }
  func.func @transform_4(%arg0: i32, %arg1: i32) -> (i32, i32) {
    %c0_i32 = arith.constant 0 : i32
    %c0_i32_0 = arith.constant 0 : i32
    %c0_i32_1 = arith.constant 0 : i32
    return %c0_i32, %c0_i32_0 : i32, i32
  }
  func.func @transform_5(%arg0: i32, %arg1: i32) -> (i32, i32) {
    %c0_i32 = arith.constant 0 : i32
    %c0_i32_0 = arith.constant 0 : i32
    return %arg0, %c0_i32 : i32, i32
  }
}

module attributes {stable_mosaic.version = 11 : i64} {
  func.func @_gat_attention_kernel(%arg0: i32, %arg1: i32, %arg2: memref<128x256xi8, #tpu.memory_space<vmem>>, %arg3: memref<256x128xbf16, #tpu.memory_space<vmem>>, %arg4: memref<1x256xf32, #tpu.memory_space<vmem>>, %arg5: memref<128x1xf32, #tpu.memory_space<vmem>>, %arg6: memref<1x128xf32, #tpu.memory_space<vmem>>, %arg7: memref<128x128xf32, #tpu.memory_space<vmem>>, %arg8: memref<128x1xf32, #tpu.memory_space<vmem>>, %arg9: memref<128x1xf32, #tpu.memory_space<vmem>>) attributes {dimension_semantics = [#tpu.dimension_semantics<parallel>, #tpu.dimension_semantics<arbitrary>], iteration_bounds = array<i64: 2, 1>, scalar_prefetch = 0 : i64, scratch_operands = 2 : i64, tpu.core_type = #tpu.core_type<tc>, window_params = [{transform_indices = @transform_0, window_bounds = array<i64: 128, 256>}, {transform_indices = @transform_1, window_bounds = array<i64: 256, 128>}, {transform_indices = @transform_2, window_bounds = array<i64: 1, 256>}, {transform_indices = @transform_3, window_bounds = array<i64: 128, 1>}, {pipeline_mode = #tpu.pipeline_mode<synchronous>, transform_indices = @transform_4, window_bounds = array<i64: 1, 128>}, {transform_indices = @transform_5, window_bounds = array<i64: 128, 128>}]} {
    %c0_i32 = arith.constant 0 : i32
    %0 = arith.cmpi eq, %arg1, %c0_i32 : i32
    %1 = arith.extui %0 : i1 to i32
    %c0_i32_0 = arith.constant 0 : i32
    %2 = arith.cmpi ne, %1, %c0_i32_0 : i32
    scf.if %2 {
      %cst_29 = arith.constant -1.000000e+30 : f32
      %46 = vector.broadcast %cst_29 : f32 to vector<128x1xf32>
      %c0_30 = arith.constant 0 : index
      %c0_31 = arith.constant 0 : index
      %47 = vector.load %arg8[%c0_30, %c0_31] : memref<128x1xf32, #tpu.memory_space<vmem>>, vector<128x1xf32>
      tpu.vector_store %arg8[%c0_30, %c0_31], %46 {strides = array<i32>} : memref<128x1xf32, #tpu.memory_space<vmem>>, vector<128x1xf32>,
      %cst_32 = arith.constant 0.000000e+00 : f32
      %48 = vector.broadcast %cst_32 : f32 to vector<128x1xf32>
      %c0_33 = arith.constant 0 : index
      %c0_34 = arith.constant 0 : index
      %49 = vector.load %arg9[%c0_33, %c0_34] : memref<128x1xf32, #tpu.memory_space<vmem>>, vector<128x1xf32>
      tpu.vector_store %arg9[%c0_33, %c0_34], %48 {strides = array<i32>} : memref<128x1xf32, #tpu.memory_space<vmem>>, vector<128x1xf32>,
      %cst_35 = arith.constant 0.000000e+00 : f32
      %50 = vector.broadcast %cst_35 : f32 to vector<128x128xf32>
      %c0_36 = arith.constant 0 : index
      %c0_37 = arith.constant 0 : index
      %51 = vector.load %arg7[%c0_36, %c0_37] : memref<128x128xf32, #tpu.memory_space<vmem>>, vector<128x128xf32>
      tpu.vector_store %arg7[%c0_36, %c0_37], %50 {strides = array<i32>} : memref<128x128xf32, #tpu.memory_space<vmem>>, vector<128x128xf32>,
    } else {
    }
    %c0 = arith.constant 0 : index
    %c0_1 = arith.constant 0 : index
    %3 = vector.load %arg2[%c0, %c0_1] : memref<128x256xi8, #tpu.memory_space<vmem>>, vector<128x256xi8>
    %4 = arith.sitofp %3 : vector<128x256xi8> to vector<128x256xf32>
    %c0_2 = arith.constant 0 : index
    %c0_3 = arith.constant 0 : index
    %5 = vector.load %arg5[%c0_2, %c0_3] : memref<128x1xf32, #tpu.memory_space<vmem>>, vector<128x1xf32>
    %c0_4 = arith.constant 0 : index
    %c0_5 = arith.constant 0 : index
    %6 = vector.load %arg4[%c0_4, %c0_5] : memref<1x256xf32, #tpu.memory_space<vmem>>, vector<1x256xf32>
    %7 = vector.broadcast %5 : vector<128x1xf32> to vector<128x256xf32>
    %8 = vector.broadcast %6 : vector<1x256xf32> to vector<128x256xf32>
    %9 = arith.addf %7, %8 : vector<128x256xf32>
    %cst = arith.constant 2.000000e-01 : f32
    %10 = vector.broadcast %cst : f32 to vector<128x256xf32>
    %11 = arith.mulf %10, %9 : vector<128x256xf32>
    %12 = arith.maximumf %9, %11 : vector<128x256xf32>
    %cst_6 = arith.constant 0.000000e+00 : f32
    %13 = vector.broadcast %cst_6 : f32 to vector<128x256xf32>
    %14 = arith.cmpf ogt, %4, %13 : vector<128x256xf32>
    %cst_7 = arith.constant -1.000000e+30 : f32
    %15 = vector.broadcast %cst_7 : f32 to vector<128x256xf32>
    %16 = arith.select %14, %12, %15 : vector<128x256xi1>, vector<128x256xf32>
    %c0_8 = arith.constant 0 : index
    %c0_9 = arith.constant 0 : index
    %17 = vector.load %arg8[%c0_8, %c0_9] : memref<128x1xf32, #tpu.memory_space<vmem>>, vector<128x1xf32>
    %cst_10 = arith.constant dense<0xFF800000> : vector<128xf32>
    %18 = vector.multi_reduction <maximumf>, %16, %cst_10 [1] : vector<128x256xf32> to vector<128xf32>
    %19 = vector.shape_cast %18 : vector<128xf32> to vector<128x1xf32>
    %20 = arith.maximumf %17, %19 : vector<128x1xf32>
    %c0_11 = arith.constant 0 : index
    %c0_12 = arith.constant 0 : index
    %21 = vector.load %arg8[%c0_11, %c0_12] : memref<128x1xf32, #tpu.memory_space<vmem>>, vector<128x1xf32>
    %22 = arith.subf %21, %20 : vector<128x1xf32>
    %23 = math.exp %22 : vector<128x1xf32>
    %24 = vector.broadcast %20 : vector<128x1xf32> to vector<128x256xf32>
    %25 = arith.subf %16, %24 : vector<128x256xf32>
    %26 = math.exp %25 : vector<128x256xf32>
    %27 = arith.mulf %4, %26 : vector<128x256xf32>
    %c0_13 = arith.constant 0 : index
    %c0_14 = arith.constant 0 : index
    %28 = vector.load %arg9[%c0_13, %c0_14] : memref<128x1xf32, #tpu.memory_space<vmem>>, vector<128x1xf32>
    %29 = arith.mulf %23, %28 : vector<128x1xf32>
    %cst_15 = arith.constant dense<0.000000e+00> : vector<128xf32>
    %30 = vector.multi_reduction <add>, %27, %cst_15 [1] : vector<128x256xf32> to vector<128xf32>
    %31 = vector.shape_cast %30 : vector<128xf32> to vector<128x1xf32>
    %32 = arith.addf %29, %31 : vector<128x1xf32>
    %c0_16 = arith.constant 0 : index
    %c0_17 = arith.constant 0 : index
    %33 = vector.load %arg9[%c0_16, %c0_17] : memref<128x1xf32, #tpu.memory_space<vmem>>, vector<128x1xf32>
    tpu.vector_store %arg9[%c0_16, %c0_17], %32 {strides = array<i32>} : memref<128x1xf32, #tpu.memory_space<vmem>>, vector<128x1xf32>,
    %c0_18 = arith.constant 0 : index
    %c0_19 = arith.constant 0 : index
    %34 = vector.load %arg7[%c0_18, %c0_19] : memref<128x128xf32, #tpu.memory_space<vmem>>, vector<128x128xf32>
    %35 = vector.broadcast %23 : vector<128x1xf32> to vector<128x128xf32>
    %36 = arith.mulf %35, %34 : vector<128x128xf32>
    %37 = arith.truncf %27 : vector<128x256xf32> to vector<128x256xbf16>
    %c0_20 = arith.constant 0 : index
    %c0_21 = arith.constant 0 : index
    %38 = vector.load %arg3[%c0_20, %c0_21] : memref<256x128xbf16, #tpu.memory_space<vmem>>, vector<256x128xbf16>
    %cst_22 = arith.constant dense<0.000000e+00> : vector<128x128xf32>
    %39 = tpu.matmul %37, %38, %cst_22 {dimension_numbers = #tpu.dot_dimension_numbers<[1], [0], [0], [1], [0, 0, 1, 1], [], []>} : vector<128x256xbf16>, vector<256x128xbf16>, vector<128x128xf32> -> vector<128x128xf32>
    %40 = arith.addf %36, %39 : vector<128x128xf32>
    %c0_23 = arith.constant 0 : index
    %c0_24 = arith.constant 0 : index
    %41 = vector.load %arg7[%c0_23, %c0_24] : memref<128x128xf32, #tpu.memory_space<vmem>>, vector<128x128xf32>
    tpu.vector_store %arg7[%c0_23, %c0_24], %40 {strides = array<i32>} : memref<128x128xf32, #tpu.memory_space<vmem>>, vector<128x128xf32>,
    %c0_25 = arith.constant 0 : index
    %c0_26 = arith.constant 0 : index
    %42 = vector.load %arg8[%c0_25, %c0_26] : memref<128x1xf32, #tpu.memory_space<vmem>>, vector<128x1xf32>
    tpu.vector_store %arg8[%c0_25, %c0_26], %20 {strides = array<i32>} : memref<128x1xf32, #tpu.memory_space<vmem>>, vector<128x1xf32>,
    %c0_i32_27 = arith.constant 0 : i32
    %43 = arith.cmpi eq, %arg1, %c0_i32_27 : i32
    %44 = arith.extui %43 : i1 to i32
    %c0_i32_28 = arith.constant 0 : i32
    %45 = arith.cmpi ne, %44, %c0_i32_28 : i32
    scf.if %45 {
      %c0_29 = arith.constant 0 : index
      %c0_30 = arith.constant 0 : index
      %46 = vector.load %arg7[%c0_29, %c0_30] : memref<128x128xf32, #tpu.memory_space<vmem>>, vector<128x128xf32>
      %c0_31 = arith.constant 0 : index
      %c0_32 = arith.constant 0 : index
      %47 = vector.load %arg9[%c0_31, %c0_32] : memref<128x1xf32, #tpu.memory_space<vmem>>, vector<128x1xf32>
      %48 = tpu.reciprocal %47 {approx = true} : vector<128x1xf32> -> vector<128x1xf32>
      %49 = vector.broadcast %48 : vector<128x1xf32> to vector<128x128xf32>
      %50 = arith.mulf %46, %49 : vector<128x128xf32>
      %c0_33 = arith.constant 0 : index
      %c0_34 = arith.constant 0 : index
      %51 = vector.load %arg6[%c0_33, %c0_34] : memref<1x128xf32, #tpu.memory_space<vmem>>, vector<1x128xf32>
      %52 = vector.broadcast %51 : vector<1x128xf32> to vector<128x128xf32>
      %53 = arith.addf %50, %52 : vector<128x128xf32>
      %c0_35 = arith.constant 0 : index
      %c0_36 = arith.constant 0 : index
      %54 = vector.load %arg7[%c0_35, %c0_36] : memref<128x128xf32, #tpu.memory_space<vmem>>, vector<128x128xf32>
      tpu.vector_store %arg7[%c0_35, %c0_36], %53 {strides = array<i32>} : memref<128x128xf32, #tpu.memory_space<vmem>>, vector<128x128xf32>,
    } else {
    }
    return
  }
  func.func @transform_0(%arg0: i32, %arg1: i32) -> (i32, i32) {
    %c0_i32 = arith.constant 0 : i32
    return %arg0, %arg1 : i32, i32
  }
  func.func @transform_1(%arg0: i32, %arg1: i32) -> (i32, i32) {
    %c0_i32 = arith.constant 0 : i32
    %c0_i32_0 = arith.constant 0 : i32
    return %arg1, %c0_i32 : i32, i32
  }
  func.func @transform_2(%arg0: i32, %arg1: i32) -> (i32, i32) {
    %c0_i32 = arith.constant 0 : i32
    %c0_i32_0 = arith.constant 0 : i32
    return %c0_i32, %arg1 : i32, i32
  }
  func.func @transform_3(%arg0: i32, %arg1: i32) -> (i32, i32) {
    %c0_i32 = arith.constant 0 : i32
    %c0_i32_0 = arith.constant 0 : i32
    return %arg0, %c0_i32 : i32, i32
  }
  func.func @transform_4(%arg0: i32, %arg1: i32) -> (i32, i32) {
    %c0_i32 = arith.constant 0 : i32
    %c0_i32_0 = arith.constant 0 : i32
    %c0_i32_1 = arith.constant 0 : i32
    return %c0_i32, %c0_i32_0 : i32, i32
  }
  func.func @transform_5(%arg0: i32, %arg1: i32) -> (i32, i32) {
    %c0_i32 = arith.constant 0 : i32
    %c0_i32_0 = arith.constant 0 : i32
    return %arg0, %c0_i32 : i32, i32
  }
}

</mosaic_0001>

<bundles_post_ra>
// kernel: encoder_forward.6
= control target key start
LH: loop header
LB: loop body
LE: loop exit
PB: predicated region body
PF: predicated region fallthrough
CT: control target
= control target key end

     0   :  { %s1173_s18 = smov 0   ;;  %s1365_s0 = inlined_call_operand.vmem [shape: f32[256,128], index: 0, kind: input, shape index: {}]   ;;  %s1366_s1 = inlined_call_operand.vmem [shape: bf16[128,128], index: 1, kind: input, shape index: {}]   ;;  %s1367_s2 = inlined_call_operand.vmem [shape: bf16[128,128], index: 2, kind: input, shape index: {}]   ;;  %s1368_s3 = inlined_call_operand.vmem [shape: bf16[256,128], index: 3, kind: output, shape index: {0}]   ;;  %s1369_s4 = inlined_call_operand.vmem [shape: f32[256,1], index: 4, kind: output, shape index: {1}]   ;;  %s1370_s5 = inlined_call_operand.vmem [shape: f32[256,1], index: 5, kind: output, shape index: {2}]  }
   0x1 LB: > { %s903_s19 = sadd.s32 4294967295, %s1140_s18   ;;  %p907_p0 = scmp.ge.s32.totalorder %s1140_s18, 1  ;;  %s1140_s18 = sphi %s1173_s18, %s16_s18  }
   0x2   : > { %p193_p1 = scmp.lt.s32.totalorder %s1140_s18, 3 }
   0x4   : > { %p194_p2 = pnand %p907_p0, %p193_p1 }
   0x5   : > { %v1118_v0 = vld [vmem:[%s1366_s1] sm:$0xff] (!%p194_p2)   ;;  %s908_s22 = sshll.u32 (!%p194_p2), %s903_s19, 4  ;;  %v1119_v1 = vld [vmem:[%s1366_s1 + $0x8] sm:$0xff] (!%p194_p2)   ;;  %v1120_v2 = vld [vmem:[%s1366_s1 + $0x10] sm:$0xff] (!%p194_p2)   ;;  %vm682_vm0 = vcmask (!%p194_p2), 7168   ;;  %s1142_s16 = smov (!%p194_p2), 127  }
   0x6   : > { %197 = sbr.rel (%p194_p2) target bundleno = 615 (0x267), region = 32  ;;  %p232_p3 = scmp.lt.s32.totalorder (!%p194_p2), %s908_s22, 31  ;;  %1045 = vmatprep.subr.bf16.mxu0 (!%p194_p2), %v1118_v0  ;;  %v1121_v3 = vld [vmem:[%s1366_s1 + $0x18] sm:$0xff] (!%p194_p2)   ;;  %v1122_v7 = vld [vmem:[%s1366_s1 + $0x20] sm:$0xff] (!%p194_p2)   ;;  %v1127_v9 = vld [vmem:[%s1367_s2 + $0x8] sm:$0xff] (!%p194_p2)  }
   0x7   : > { %1046 = vmatpush3.bf16.msra.mxu0 (!%p194_p2), %v1118_v0  ;;  %v1126_v8 = vld [vmem:[%s1367_s2] sm:$0xff] (!%p194_p2)   ;;  %v1123_v10 = vld [vmem:[%s1366_s1 + $0x28] sm:$0xff] (!%p194_p2)   ;;  %v1128_v11 = vld [vmem:[%s1367_s2 + $0x10] sm:$0xff] (!%p194_p2)  }
   0x8   : > { %1047 = vmatprep.subr.bf16.mxu0 (!%p194_p2), %v1119_v1  ;;  %1077 = vmatprep.subr.bf16.mxu1 (!%p194_p2), %v1126_v8  ;;  %v1124_v12 = vld [vmem:[%s1366_s1 + $0x30] sm:$0xff] (!%p194_p2)   ;;  %v1129_v13 = vld [vmem:[%s1367_s2 + $0x18] sm:$0xff] (!%p194_p2)   ;;  %v1130_v15 = vld [vmem:[%s1367_s2 + $0x20] sm:$0xff] (!%p194_p2)  }
   0x9   : > { %1078 = vmatpush3.bf16.msra.mxu1 (!%p194_p2), %v1126_v8  ;;  %v1125_v14 = vld [vmem:[%s1366_s1 + $0x38] sm:$0xff] (!%p194_p2)   ;;  %v1131_v21 = vld [vmem:[%s1367_s2 + $0x28] sm:$0xff] (!%p194_p2)   ;;  %v1132_v23 = vld [vmem:[%s1367_s2 + $0x30] sm:$0xff] (!%p194_p2)  }
   0xa   : > { %1079 = vmatprep.subr.bf16.mxu1 (!%p194_p2), %v1127_v9  ;;  %v1133_v39 = vld [vmem:[%s1367_s2 + $0x38] sm:$0xff] (!%p194_p2)  }
   0xb   : > { %1048 = vmatpush3.bf16.msra.mxu0 (!%p194_p2), %v1119_v1 }
   0xc   : > { %1049 = vmatprep.subr.bf16.mxu0 (!%p194_p2), %v1120_v2 }
   0xd   : > { %s1372_s22 = smov (!%p232_p3, %s908_s22), 31  ;;  %1080 = vmatpush3.bf16.msra.mxu1 %v1127_v9 }
   0xe   : > { %s1193_s27 = sshll.u32 %s1372_s22, 3  ;;  %1081 = vmatprep.subr.bf16.mxu1 %v1128_v11  ;;  %s911_s11 = sshll.u32 %s1372_s22, 2 }
   0xf   : > { %s1199_s30 = scalar_lea.vmem %s1365_s0, %s1193_s27  ;;  %1050 = vmatpush3.bf16.msra.mxu0 %v1120_v2  ;;  %s1260_s14 = scalar_lea.vmem %s1368_s3, %s911_s11 }
  0x10   : > { %v256_v4 = vld [vmem:[%s1199_s30] sm:$0xff]  ;;  %v257_v5 = vld [vmem:[%s1199_s30 + $0x8] sm:$0xff]  ;;  %1051 = vmatprep.subr.bf16.mxu0 %v1121_v3  ;;  %v258_v16 = vld [vmem:[%s1199_s30 + $0x10] sm:$0xff]  ;;  %s1274_s15 = scalar_lea.vmem %s1369_s4, %s1193_s27  ;;  %s1328_s20 = scalar_lea.vmem %s1370_s5, %s1193_s27 }
  0x11   : > { %v272_v6 = vpack.c.bf16 %v257_v5, %v256_v4  ;;  %1082 = vmatpush3.bf16.msra.mxu1 %v1128_v11  ;;  %v259_v17 = vld [vmem:[%s1199_s30 + $0x18] sm:$0xff]  ;;  %v260_v18 = vld [vmem:[%s1199_s30 + $0x20] sm:$0xff]  ;;  %v261_v19 = vld [vmem:[%s1199_s30 + $0x28] sm:$0xff] }
  0x12   : > { %1083 = vmatprep.subr.bf16.mxu1 %v1129_v13  ;;  %v273_v20 = vpack.c.bf16 %v259_v17, %v258_v16  ;;  %v274_v22 = vpack.c.bf16 %v261_v19, %v260_v18  ;;  %v262_v24 = vld [vmem:[%s1199_s30 + $0x30] sm:$0xff]  ;;  %v263_v25 = vld [vmem:[%s1199_s30 + $0x38] sm:$0xff]  ;;  %v264_v26 = vld [vmem:[%s1199_s30 + $0x40] sm:$0xff] }
  0x13   : > { %1061 = vmatprep.mubr.bf16.mxu0 %v272_v6  ;;  %1052 = vmatpush3.bf16.msra.mxu0 %v1121_v3  ;;  %v265_v27 = vld [vmem:[%s1199_s30 + $0x48] sm:$0xff]  ;;  %v275_v28 = vpack.c.bf16 %v263_v25, %v262_v24  ;;  %v266_v30 = vld [vmem:[%s1199_s30 + $0x50] sm:$0xff]  ;;  %v267_v31 = vld [vmem:[%s1199_s30 + $0x58] sm:$0xff] }
  0x14   : > { %1053 = vmatprep.subr.bf16.mxu0 %v1122_v7  ;;  %v276_v29 = vpack.c.bf16 %v265_v27, %v264_v26  ;;  %v268_v32 = vld [vmem:[%s1199_s30 + $0x60] sm:$0xff]  ;;  %v269_v33 = vld [vmem:[%s1199_s30 + $0x68] sm:$0xff]  ;;  %v277_v34 = vpack.c.bf16 %v267_v31, %v266_v30  ;;  %v270_v36 = vld [vmem:[%s1199_s30 + $0x70] sm:$0xff] }
  0x15   : > { %1084 = vmatpush3.bf16.msra.mxu1 %v1129_v13  ;;  %v278_v35 = vpack.c.bf16 %v269_v33, %v268_v32  ;;  %v271_v37 = vld [vmem:[%s1199_s30 + $0x78] sm:$0xff] }
  0x16   : > { %1085 = vmatprep.subr.bf16.mxu1 %v1130_v15  ;;  %v279_v38 = vpack.c.bf16 %v271_v37, %v270_v36 }
  0x17   : > { %1054 = vmatpush3.bf16.msra.mxu0 %v1122_v7 }
  0x18   : > { %1055 = vmatprep.subr.bf16.mxu0 %v1123_v10 }
  0x19   : > { %1086 = vmatpush3.bf16.msra.mxu1 %v1130_v15 }
  0x1a   : > { %1087 = vmatprep.subr.bf16.mxu1 %v1131_v21 }
  0x1b   : > { %1056 = vmatpush3.bf16.msra.mxu0 %v1123_v10 }
  0x1c   : > { %1057 = vmatprep.subr.bf16.mxu0 %v1124_v12 }
  0x1d   : > { %1088 = vmatpush3.bf16.msra.mxu1 %v1131_v21 }
  0x1e   : > { %1089 = vmatprep.subr.bf16.mxu1 %v1132_v23 }
  0x1f   : > { %1058 = vmatpush3.bf16.msra.mxu0 %v1124_v12 }
  0x20   : > { %1059 = vmatprep.subr.bf16.mxu0 %v1125_v14 }
  0x21   : > { %1090 = vmatpush3.bf16.msra.mxu1 %v1132_v23 }
  0x22   : > { %1091 = vmatprep.subr.bf16.mxu1 %v1133_v39 }
  0x23   : > { %1060 = vmatpush3.bf16.msra.mxu0 %v1125_v14 }
  0x25   : > { %1092 = vmatpush3.bf16.msra.mxu1 %v1133_v39 }
  0x26   : > { %1062 = vmatmul.mubr.bf16.vlgmr.msra.gmra.mrb[0].mxu0 %v273_v20 }
  0x27   : > { %1065 = vmatprep.mubr.bf16.mxu0 %v274_v22 }
  0x2e   : > { %1066 = vmatmul.mubr.bf16.gmra.mrb[4].mxu0 %v275_v28 }
  0x2f   : > { %1069 = vmatprep.mubr.bf16.mxu0 %v276_v29 }
  0x36   : > { %1070 = vmatmul.mubr.bf16.gmra.mrb[8].mxu0 %v277_v34 }
  0x37   : > { %1073 = vmatprep.mubr.bf16.mxu0 %v278_v35 }
  0x3e   : > { %1074 = vmatmul.mubr.bf16.gmra.mrb[12].mxu0 %v279_v38 }
  0xf9   : > { %v1063_v40 = vpop.f32.mrb[0].mxu0 }
  0xfa   : > { %v378_v41 = vpop.f32.mrb[1].mxu0 }
  0xfb   : > { %v1064_v42 = vpop.f32.mrb[2].mxu0 }
  0xfc   : > { %v442_v43 = vpack.c.bf16 %v1064_v42, %v1063_v40  ;;  %v381_v44 = vpop.f32.mrb[3].mxu0 }
  0xfd   : > { %v441_v45 = vpack.c.bf16 %v381_v44, %v378_v41 }
  0xfe   : > { %1006 = vst [vmem:[%s1260_s14 + $0x8] sm:$0xff] %v442_v43  }
  0xff   : > { %970 = vst [vmem:[%s1260_s14] sm:$0xff] %v441_v45   ;;  %1093 = vmatprep.mubr.bf16.mxu1 %v441_v45 }
 0x100   : > { %1094 = vmatmul.mubr.bf16.vlgmr.msra.gmra.mrb[0].mxu1 %v442_v43 }
 0x101   : > { %v1067_v46 = vpop.f32.mrb[4].mxu0 }
 0x102   : > { %v394_v47 = vpop.f32.mrb[5].mxu0 }
 0x103   : > { %v1068_v48 = vpop.f32.mrb[6].mxu0 }
 0x104   : > { %v444_v49 = vpack.c.bf16 %v1068_v48, %v1067_v46  ;;  %v397_v50 = vpop.f32.mrb[7].mxu0 }
 0x105   : > { %v443_v51 = vpack.c.bf16 %v397_v50, %v394_v47 }
 0x106   : > { %1008 = vst [vmem:[%s1260_s14 + $0x18] sm:$0xff] %v444_v49  }
 0x107   : > { %1007 = vst [vmem:[%s1260_s14 + $0x10] sm:$0xff] %v443_v51   ;;  %1097 = vmatprep.mubr.bf16.mxu1 %v443_v51 }
 0x108   : > { %1098 = vmatmul.mubr.bf16.gmra.mrb[4].mxu1 %v444_v49 }
 0x109   : > { %v1071_v52 = vpop.f32.mrb[8].mxu0 }
 0x10a   : > { %v410_v53 = vpop.f32.mrb[9].mxu0 }
 0x10b   : > { %v1072_v54 = vpop.f32.mrb[10].mxu0 }
 0x10c   : > { %v446_v55 = vpack.c.bf16 %v1072_v54, %v1071_v52  ;;  %v413_v56 = vpop.f32.mrb[11].mxu0 }
 0x10d   : > { %v445_v57 = vpack.c.bf16 %v413_v56, %v410_v53 }
 0x10e   : > { %1010 = vst [vmem:[%s1260_s14 + $0x28] sm:$0xff] %v446_v55  }
 0x10f   : > { %1009 = vst [vmem:[%s1260_s14 + $0x20] sm:$0xff] %v445_v57   ;;  %1101 = vmatprep.mubr.bf16.mxu1 %v445_v57 }
 0x110   : > { %1102 = vmatmul.mubr.bf16.gmra.mrb[8].mxu1 %v446_v55 }
 0x111   : > { %v1075_v58 = vpop.f32.mrb[12].mxu0 }
 0x112   : > { %v426_v59 = vpop.f32.mrb[13].mxu0 }
 0x113   : > { %v1076_v60 = vpop.f32.mrb[14].mxu0 }
 0x114   : > { %v448_v61 = vpack.c.bf16 %v1076_v60, %v1075_v58  ;;  %v429_v62 = vpop.f32.mrb[15].mxu0 }
 0x115   : > { %v447_v63 = vpack.c.bf16 %v429_v62, %v426_v59 }
 0x116   : > { %1012 = vst [vmem:[%s1260_s14 + $0x38] sm:$0xff] %v448_v61  }
 0x117   : > { %1011 = vst [vmem:[%s1260_s14 + $0x30] sm:$0xff] %v447_v63   ;;  %1105 = vmatprep.mubr.bf16.mxu1 %v447_v63 }
 0x118   : > { %1106 = vmatmul.mubr.bf16.gmra.mrb[12].mxu1 %v448_v61 }
 0x1d3   : > { %v1095_v0 = vpop.f32.mrb[0].mxu1 }
 0x1d4   : > { %685 = vst.msk [vmem:[%s1274_s15 + $0x10] sm:$0xff] %vm682_vm0, %v1095_v0  ;;  %719 = vrot.lane.b32.xlu1 %v1095_v0, %s1142_s16  ;;  %v619_v1 = vpop.f32.mrb[1].mxu1 }
 0x1d5   : > { %683 = vst.msk [vmem:[%s1274_s15] sm:$0xff] %vm682_vm0, %v619_v1  ;;  %715 = vrot.lane.b32.xlu0 %v619_v1, %s1142_s16  ;;  %v1096_v2 = vpop.f32.mrb[2].mxu1 }
 0x1d6   : > { %686 = vst.msk [vmem:[%s1274_s15 + $0x18] sm:$0xff] %vm682_vm0, %v1096_v2  ;;  %v622_v3 = vpop.f32.mrb[3].mxu1 }
 0x1d7   : > { %684 = vst.msk [vmem:[%s1274_s15 + $0x8] sm:$0xff] %vm682_vm0, %v622_v3 }
 0x1d8   : > { %721 = vrot.lane.b32.xlu1 %v1096_v2, %s1142_s16 }
 0x1d9   : > { %717 = vrot.lane.b32.xlu0 %v622_v3, %s1142_s16 }
 0x1db   : > { %v1099_v4 = vpop.f32.mrb[4].mxu1 }
 0x1dc   : > { %689 = vst.msk [vmem:[%s1274_s15 + $0x30] sm:$0xff] %vm682_vm0, %v1099_v4  ;;  %v635_v5 = vpop.f32.mrb[5].mxu1 }
 0x1dd   : > { %687 = vst.msk [vmem:[%s1274_s15 + $0x20] sm:$0xff] %vm682_vm0, %v635_v5  ;;  %727 = vrot.lane.b32.xlu0 %v1099_v4, %s1142_s16  ;;  %v1100_v6 = vpop.f32.mrb[6].mxu1 }
 0x1de   : > { %690 = vst.msk [vmem:[%s1274_s15 + $0x38] sm:$0xff] %vm682_vm0, %v1100_v6  ;;  %729 = vrot.lane.b32.xlu1 %v1100_v6, %s1142_s16  ;;  %v638_v7 = vpop.f32.mrb[7].mxu1 }
 0x1df   : > { %688 = vst.msk [vmem:[%s1274_s15 + $0x28] sm:$0xff] %vm682_vm0, %v638_v7 }
 0x1e1   : > { %723 = vrot.lane.b32.xlu0 %v635_v5, %s1142_s16 }
 0x1e2   : > { %725 = vrot.lane.b32.xlu1 %v638_v7, %s1142_s16 }
 0x1e3   : > { %v1103_v8 = vpop.f32.mrb[8].mxu1 }
 0x1e4   : > { %693 = vst.msk [vmem:[%s1274_s15 + $0x50] sm:$0xff] %vm682_vm0, %v1103_v8  ;;  %v651_v9 = vpop.f32.mrb[9].mxu1 }
 0x1e5   : > { %691 = vst.msk [vmem:[%s1274_s15 + $0x40] sm:$0xff] %vm682_vm0, %v651_v9  ;;  %735 = vrot.lane.b32.xlu0 %v1103_v8, %s1142_s16  ;;  %v1104_v10 = vpop.f32.mrb[10].mxu1 }
 0x1e6   : > { %694 = vst.msk [vmem:[%s1274_s15 + $0x58] sm:$0xff] %vm682_vm0, %v1104_v10  ;;  %737 = vrot.lane.b32.xlu1 %v1104_v10, %s1142_s16  ;;  %v654_v11 = vpop.f32.mrb[11].mxu1 }
 0x1e7   : > { %692 = vst.msk [vmem:[%s1274_s15 + $0x48] sm:$0xff] %vm682_vm0, %v654_v11 }
 0x1e9   : > { %731 = vrot.lane.b32.xlu0 %v651_v9, %s1142_s16 }
 0x1ea   : > { %733 = vrot.lane.b32.xlu1 %v654_v11, %s1142_s16 }
 0x1eb   : > { %v1107_v12 = vpop.f32.mrb[12].mxu1 }
 0x1ec   : > { %697 = vst.msk [vmem:[%s1274_s15 + $0x70] sm:$0xff] %vm682_vm0, %v1107_v12  ;;  %v667_v13 = vpop.f32.mrb[13].mxu1 }
 0x1ed   : > { %695 = vst.msk [vmem:[%s1274_s15 + $0x60] sm:$0xff] %vm682_vm0, %v667_v13  ;;  %739 = vrot.lane.b32.xlu0 %v667_v13, %s1142_s16  ;;  %v1108_v14 = vpop.f32.mrb[14].mxu1 }
 0x1ee   : > { %698 = vst.msk [vmem:[%s1274_s15 + $0x78] sm:$0xff] %vm682_vm0, %v1108_v14  ;;  %v670_v15 = vpop.f32.mrb[15].mxu1 }
 0x1ef   : > { %696 = vst.msk [vmem:[%s1274_s15 + $0x68] sm:$0xff] %vm682_vm0, %v670_v15  ;;  %741 = vrot.lane.b32.xlu1 %v670_v15, %s1142_s16 }
 0x1f1   : > { %743 = vrot.lane.b32.xlu0 %v1107_v12, %s1142_s16 }
 0x1f3   : > { %745 = vrot.lane.b32.xlu1 %v1108_v14, %s1142_s16 }
 0x246   : > { %v720_v16 = vpop.permute.xlu1 %719 }
 0x247   : > { %765 = vst.msk [vmem:[%s1328_s20 + $0x10] sm:$0xff] %vm682_vm0, %v720_v16  ;;  %v716_v17 = vpop.permute.xlu0 %715 }
 0x248   : > { %763 = vst.msk [vmem:[%s1328_s20] sm:$0xff] %vm682_vm0, %v716_v17 }
 0x24a   : > { %v722_v18 = vpop.permute.xlu1 %721 }
 0x24b   : > { %766 = vst.msk [vmem:[%s1328_s20 + $0x18] sm:$0xff] %vm682_vm0, %v722_v18  ;;  %v718_v19 = vpop.permute.xlu0 %717 }
 0x24c   : > { %764 = vst.msk [vmem:[%s1328_s20 + $0x8] sm:$0xff] %vm682_vm0, %v718_v19 }
 0x24f   : > { %v728_v20 = vpop.permute.xlu0 %727 }
 0x250   : > { %769 = vst.msk [vmem:[%s1328_s20 + $0x30] sm:$0xff] %vm682_vm0, %v728_v20  ;;  %v730_v21 = vpop.permute.xlu1 %729 }
 0x251   : > { %770 = vst.msk [vmem:[%s1328_s20 + $0x38] sm:$0xff] %vm682_vm0, %v730_v21 }
 0x253   : > { %v724_v22 = vpop.permute.xlu0 %723 }
 0x254   : > { %767 = vst.msk [vmem:[%s1328_s20 + $0x20] sm:$0xff] %vm682_vm0, %v724_v22  ;;  %v726_v23 = vpop.permute.xlu1 %725 }
 0x255   : > { %768 = vst.msk [vmem:[%s1328_s20 + $0x28] sm:$0xff] %vm682_vm0, %v726_v23 }
 0x257   : > { %v736_v24 = vpop.permute.xlu0 %735 }
 0x258   : > { %773 = vst.msk [vmem:[%s1328_s20 + $0x50] sm:$0xff] %vm682_vm0, %v736_v24  ;;  %v738_v25 = vpop.permute.xlu1 %737 }
 0x259   : > { %774 = vst.msk [vmem:[%s1328_s20 + $0x58] sm:$0xff] %vm682_vm0, %v738_v25 }
 0x25b   : > { %v732_v26 = vpop.permute.xlu0 %731 }
 0x25c   : > { %771 = vst.msk [vmem:[%s1328_s20 + $0x40] sm:$0xff] %vm682_vm0, %v732_v26  ;;  %v734_v27 = vpop.permute.xlu1 %733 }
 0x25d   : > { %772 = vst.msk [vmem:[%s1328_s20 + $0x48] sm:$0xff] %vm682_vm0, %v734_v27 }
 0x25f   : > { %v740_v28 = vpop.permute.xlu0 %739 }
 0x260   : > { %775 = vst.msk [vmem:[%s1328_s20 + $0x60] sm:$0xff] %vm682_vm0, %v740_v28 }
 0x261   : > { %v742_v29 = vpop.permute.xlu1 %741 }
 0x262   : > { %776 = vst.msk [vmem:[%s1328_s20 + $0x68] sm:$0xff] %vm682_vm0, %v742_v29 }
 0x263   : > { %v744_v30 = vpop.permute.xlu0 %743 }
 0x264   : > { %777 = vst.msk [vmem:[%s1328_s20 + $0x70] sm:$0xff] %vm682_vm0, %v744_v30 }
 0x265   : > { %v746_v31 = vpop.permute.xlu1 %745 }
 0x266   : > { %778 = vst.msk [vmem:[%s1328_s20 + $0x78] sm:$0xff] %vm682_vm0, %v746_v31 }
 0x267 PF: > { %s16_s18 = sadd.s32 1, %s1140_s18  }
 0x268   : > { %p13_p4 = scmp.ge.s32.totalorder %s16_s18, 4  }
 0x26a   :  { %15 = sbr.rel (!%p13_p4) target bundleno = 1 (0x1), region = 86 }

// kernel: encoder_forward.7
= control target key start
LH: loop header
LB: loop body
LE: loop exit
PB: predicated region body
PF: predicated region fallthrough
CT: control target
= control target key end

     0   :  { %s2222_s18 = smov 0   ;;  %s2224_s19 = smov 0   ;;  %s3220_s0 = inlined_call_operand.vmem [shape: s8[256,256], index: 0, kind: input, shape index: {}]   ;;  %s3221_s1 = inlined_call_operand.vmem [shape: bf16[256,128], index: 1, kind: input, shape index: {}]   ;;  %s3222_s2 = inlined_call_operand.vmem [shape: f32[1,256], index: 2, kind: input, shape index: {}]   ;;  %s3223_s3 = inlined_call_operand.vmem [shape: f32[256,1], index: 3, kind: input, shape index: {}]   ;;  %s3224_s4 = inlined_call_operand.vmem [shape: f32[1,128], index: 4, kind: input, shape index: {}]   ;;  %s3225_s5 = inlined_call_operand.vmem [shape: f32[256,128], index: 5, kind: output, shape index: {}]  }
   0x1   :  { %s2226_s20 = smov 0  }
   0x2 LB: > { %s27_s21 = sadd.s32 1, %s2183_s19  ;;  %p1884_p0 = scmp.ge.s32.totalorder %s2187_s20, 1  ;;  %s2187_s20 = sphi %s2226_s20, %s15_s20   ;;  %s2183_s19 = sphi %s2224_s19, %s3385_s19   ;;  %s2179_s18 = sphi %s2222_s18, %s3384_s18  }
   0x3   : > { %p29_p1 = scmp.ge.s32.totalorder %s27_s21, 2  ;;  %p240_p2 = scmp.lt.s32.totalorder %s2187_s20, 3 }
   0x5   : > { %s3387_s21 = smov (%p29_p1, %s27_s21), 0  ;;  %p241_p3 = pnand %p1884_p0, %p240_p2 }
   0x7   : > { %244 = sbr.rel (%p241_p3) target bundleno = 803 (0x323), region = 40 }
   0xe   : > { %s1888_s22 = sshll.u32 %s2179_s18, 4  ;;  %v2189_v0 = vmov 0   ;;  %vm327_vm0 = vcmask 7168   ;;  %v2190_v17 = vmov -1e+30   ;;  %s1885_s27 = sshll.u32 %s2179_s18, 2  ;;  %v546_v18 = vlaneseq }
   0xf   : > { %2020 = vset.pattern.permute.xlu1 %v2189_v0  ;;  %2019 = vset.pattern.permute.xlu0 %v2189_v0  ;;  %p311_p4 = scmp.lt.s32.totalorder %s1888_s22, 31  ;;  %328 = vst.msk [vmem:[#allocation2] sm:$0xff] %vm327_vm0, %v2190_v17  ;;  %329 = vst.msk [vmem:[#allocation2 + $0x8] sm:$0xff] %vm327_vm0, %v2190_v17  ;;  %p289_p5 = scmp.lt.s32.totalorder %s1885_s27, 7  ;;  %v464_v24 = vld [vmem:[%s3222_s2] sm:$0x3] }
  0x10   : > { %330 = vst.msk [vmem:[#allocation2 + $0x10] sm:$0xff] %vm327_vm0, %v2190_v17  ;;  %331 = vst.msk [vmem:[#allocation2 + $0x18] sm:$0xff] %vm327_vm0, %v2190_v17  ;;  %v547_v19 = vshrl.u32 %v546_v18, 7 }
  0x11   : > { %s3389_s22 = smov (!%p311_p4, %s1888_s22), 31  ;;  %332 = vst.msk [vmem:[#allocation2 + $0x20] sm:$0xff] %vm327_vm0, %v2190_v17  ;;  %333 = vst.msk [vmem:[#allocation2 + $0x28] sm:$0xff] %vm327_vm0, %v2190_v17  ;;  %s3391_s27 = smov (!%p289_p5, %s1885_s27), 7 }
  0x12   : > { %s1889_s23 = sshll.u32 %s3389_s22, 3  ;;  %334 = vst.msk [vmem:[#allocation2 + $0x30] sm:$0xff] %vm327_vm0, %v2190_v17  ;;  %335 = vst.msk [vmem:[#allocation2 + $0x38] sm:$0xff] %vm327_vm0, %v2190_v17  ;;  %s1911_s28 = sshll.u32 %s3391_s27, 4  ;;  %v548_v22 = vsub.s32 0, %v547_v19  ;;  %v552_v25 = vsub.s32 1, %v547_v19 }
  0x13   : > { %s314_s26 = scalar_lea.vmem %s3223_s3, %s1889_s23  ;;  %336 = vst.msk [vmem:[#allocation2 + $0x40] sm:$0xff] %vm327_vm0, %v2190_v17  ;;  %337 = vst.msk [vmem:[#allocation2 + $0x48] sm:$0xff] %vm327_vm0, %v2190_v17  ;;  %s2271_s6 = scalar_lea.vmem %s3220_s0, %s1911_s28 }
  0x14   : > { %v456_v1 = vld [vmem:[%s314_s26 + $0x40] sm:$0xff]  ;;  %v457_v3 = vld [vmem:[%s314_s26 + $0x48] sm:$0xff]  ;;  %v451_v5 = vld [vmem:[%s314_s26 + $0x18] sm:$0xff]  ;;  %338 = vst.msk [vmem:[#allocation2 + $0x50] sm:$0xff] %vm327_vm0, %v2190_v17  ;;  %v2280_v30 = vrot.slane %v464_v24, %v548_v22  ;;  %v2282_v35 = vrot.slane %v464_v24, %v552_v25  ;;  %s3158_s30 = scalar_lea.vmem %s3225_s5, %s1889_s23 }
  0x15   : > { %v448_v2 = vld [vmem:[%s314_s26] sm:$0xff]  ;;  %507 = vperm.xlu1 %2020, %v456_v1   ;;  %v449_v4 = vld [vmem:[%s314_s26 + $0x8] sm:$0xff]  ;;  %v450_v6 = vld [vmem:[%s314_s26 + $0x10] sm:$0xff]  ;;  %339 = vst.msk [vmem:[#allocation2 + $0x58] sm:$0xff] %vm327_vm0, %v2190_v17 }
  0x16   : > { %467 = vperm.xlu0 %2019, %v448_v2   ;;  %v459_v7 = vld [vmem:[%s314_s26 + $0x58] sm:$0xff]  ;;  %v458_v8 = vld [vmem:[%s314_s26 + $0x50] sm:$0xff]  ;;  %v453_v9 = vld [vmem:[%s314_s26 + $0x28] sm:$0xff]  ;;  %340 = vst.msk [vmem:[#allocation2 + $0x60] sm:$0xff] %vm327_vm0, %v2190_v17 }
  0x17   : > { %v452_v10 = vld [vmem:[%s314_s26 + $0x20] sm:$0xff]  ;;  %v461_v11 = vld [vmem:[%s314_s26 + $0x68] sm:$0xff]  ;;  %v455_v13 = vld [vmem:[%s314_s26 + $0x38] sm:$0xff]  ;;  %341 = vst.msk [vmem:[#allocation2 + $0x68] sm:$0xff] %vm327_vm0, %v2190_v17 }
  0x18   : > { %v460_v12 = vld [vmem:[%s314_s26 + $0x60] sm:$0xff]  ;;  %v454_v14 = vld [vmem:[%s314_s26 + $0x30] sm:$0xff]  ;;  %v463_v15 = vld [vmem:[%s314_s26 + $0x78] sm:$0xff]  ;;  %342 = vst.msk [vmem:[#allocation2 + $0x70] sm:$0xff] %vm327_vm0, %v2190_v17 }
  0x19   : > { %512 = vperm.xlu1 %2020, %v457_v3   ;;  %v462_v16 = vld [vmem:[%s314_s26 + $0x70] sm:$0xff]  ;;  %343 = vst.msk [vmem:[#allocation2 + $0x78] sm:$0xff] %vm327_vm0, %v2190_v17  ;;  %v376_v20 = vld [vmem:[%s2271_s6] sm:$0xff]  ;;  %v377_v21 = vld [vmem:[%s2271_s6 + $0x8] sm:$0xff] }
  0x1a   : > { %472 = vperm.xlu0 %2019, %v449_v4   ;;  %v380_v23 = vld [vmem:[%s2271_s6 + $0x20] sm:$0xff]  ;;  %v384_v26 = vunpack.c.0.s8 %v376_v20  ;;  %v385_v27 = vunpack.c.0.s8 %v377_v21  ;;  %v381_v28 = vld [vmem:[%s2271_s6 + $0x28] sm:$0xff]  ;;  %v386_v31 = vunpack.c.1.s8 %v376_v20  ;;  %v387_v32 = vunpack.c.1.s8 %v377_v21  ;;  %v378_v43 = vld [vmem:[%s2271_s6 + $0x10] sm:$0xff] }
  0x1b   : > { %v400_v29 = vunpack.c.0.s8 %v380_v23  ;;  %v401_v33 = vunpack.c.0.s8 %v381_v28  ;;  %v402_v34 = vunpack.c.1.s8 %v380_v23  ;;  %v403_v38 = vunpack.c.1.s8 %v381_v28  ;;  %v2292_v44 = vld [vmem:[%s2271_s6 + $0x18] sm:$0xff]  ;;  %v2306_v57 = vld [vmem:[%s2271_s6 + $0x30] sm:$0xff] }
  0x1c   : > { %v2284_v36 = vcvt.s32.f32 %v384_v26  ;;  %v2286_v37 = vcvt.s32.f32 %v385_v27  ;;  %v388_v40 = vunpack.c.2.s8 %v376_v20  ;;  %v389_v41 = vunpack.c.2.s8 %v377_v21  ;;  %v2309_v58 = vld [vmem:[%s2271_s6 + $0x38] sm:$0xff] }
  0x1d   : > { %482 = vperm.xlu1 %2020, %v451_v5   ;;  %v2288_v39 = vcvt.s32.f32 %v400_v29  ;;  %v390_v42 = vunpack.c.3.s8 %v376_v20  ;;  %v404_v45 = vunpack.c.2.s8 %v380_v23  ;;  %v405_v46 = vunpack.c.2.s8 %v381_v28 }
  0x1e   : > { %477 = vperm.xlu0 %2019, %v450_v6   ;;  %3272 = vst [vmem:[#allocation4_spill] sm:$0xff] %v2284_v36  ;;  %3273 = vst [vmem:[#allocation5_spill] sm:$0xff] %v2286_v37  ;;  %v391_v47 = vunpack.c.3.s8 %v377_v21  ;;  %v406_v48 = vunpack.c.3.s8 %v380_v23  ;;  %v2294_v49 = vcvt.s32.f32 %v386_v31  ;;  %v2296_v50 = vcvt.s32.f32 %v387_v32 }
  0x1f   : > { %3274 = vst [vmem:[#allocation6_spill] sm:$0xff] %v2288_v39  ;;  %v2298_v51 = vcvt.s32.f32 %v401_v33  ;;  %v2300_v52 = vcvt.s32.f32 %v402_v34  ;;  %v2302_v53 = vcvt.s32.f32 %v403_v38  ;;  %v392_v54 = vunpack.c.0.s8 %v378_v43 }
  0x20   : > { %3275 = vst [vmem:[#allocation7_spill] sm:$0xff] %v2294_v49  ;;  %3276 = vst [vmem:[#allocation8_spill] sm:$0xff] %v2296_v50  ;;  %v393_v55 = vunpack.c.0.s8 %v2292_v44  ;;  %v407_v56 = vunpack.c.3.s8 %v381_v28  ;;  %v2311_v59 = vcvt.s32.f32 %v388_v40  ;;  %v2313_v60 = vcvt.s32.f32 %v389_v41 }
  0x21   : > { %522 = vperm.xlu1 %2020, %v459_v7   ;;  %3277 = vst [vmem:[#allocation9_spill] sm:$0xff] %v2298_v51  ;;  %3278 = vst [vmem:[#allocation10_spill] sm:$0xff] %v2300_v52  ;;  %v2315_v61 = vcvt.s32.f32 %v390_v42  ;;  %v394_v62 = vunpack.c.1.s8 %v378_v43  ;;  %v2317_v63 = vcvt.s32.f32 %v404_v45  ;;  %v2319_v0 = vcvt.s32.f32 %v405_v46 }
  0x22   : > { %517 = vperm.xlu0 %2019, %v458_v8   ;;  %3279 = vst [vmem:[#allocation11_spill] sm:$0xff] %v2302_v53  ;;  %3280 = vst [vmem:[#allocation12_spill] sm:$0xff] %v2311_v59  ;;  %v2321_v1 = vcvt.s32.f32 %v391_v47  ;;  %v2323_v2 = vcvt.s32.f32 %v406_v48  ;;  %v408_v3 = vunpack.c.0.s8 %v2306_v57  ;;  %v409_v4 = vunpack.c.0.s8 %v2309_v58 }
  0x23   : > { %3281 = vst [vmem:[#allocation13_spill] sm:$0xff] %v2313_v60  ;;  %3282 = vst [vmem:[#allocation14_spill] sm:$0xff] %v2315_v61  ;;  %v395_v5 = vunpack.c.1.s8 %v2292_v44  ;;  %v410_v6 = vunpack.c.1.s8 %v2306_v57  ;;  %vm652_vm1 = vcmp.gt.f32.partialorder %v2284_v36, 0.0  ;;  %v2330_v7 = vcvt.s32.f32 %v392_v54 }
  0x24   : > { %3283 = vst [vmem:[#allocation15_spill] sm:$0xff] %v2317_v63  ;;  %3284 = vst [vmem:[#allocation16_spill] sm:$0xff] %v2319_v0  ;;  %v2332_v8 = vcvt.s32.f32 %v393_v55  ;;  %vm653_vm2 = vcmp.gt.f32.partialorder %v2286_v37, 0.0  ;;  %vm668_vm3 = vcmp.gt.f32.partialorder %v2288_v39, 0.0  ;;  %v399_v20 = vunpack.c.3.s8 %v2292_v44 }
  0x25   : > { %492 = vperm.xlu1 %2020, %v453_v9   ;;  %3285 = vst [vmem:[#allocation17_spill] sm:$0xff] %v2321_v1  ;;  %3286 = vst [vmem:[#allocation18_spill] sm:$0xff] %v2330_v7  ;;  %v2334_v9 = vcvt.s32.f32 %v407_v56  ;;  %vm654_vm4 = vcmp.gt.f32.partialorder %v2294_v49, 0.0  ;;  %v2349_v21 = vcvt.s32.f32 %v408_v3  ;;  %v2351_v22 = vcvt.s32.f32 %v409_v4 }
  0x26   : > { %487 = vperm.xlu0 %2019, %v452_v10   ;;  %3287 = vst [vmem:[#allocation19_spill] sm:$0xff] %v2332_v8  ;;  %v411_v10 = vunpack.c.1.s8 %v2309_v58  ;;  %v2353_v23 = vcvt.s32.f32 %v395_v5  ;;  %v2355_v24 = vcvt.s32.f32 %v410_v6  ;;  %vm655_vm5 = vcmp.gt.f32.partialorder %v2296_v50, 0.0 }
  0x27   : > { %vm669_vm6 = vcmp.gt.f32.partialorder %v2298_v51, 0.0  ;;  %v412_v41 = vunpack.c.2.s8 %v2306_v57  ;;  %v413_v42 = vunpack.c.2.s8 %v2309_v58  ;;  %vm656_vm7 = vcmp.gt.f32.partialorder %v2311_v59, 0.0 }
  0x28   : > { %v2361_v28 = vcvt.s32.f32 %v411_v10  ;;  %vm657_vm8 = vcmp.gt.f32.partialorder %v2313_v60, 0.0  ;;  %vm670_vm9 = vcmp.gt.f32.partialorder %v2300_v52, 0.0  ;;  %vm671_vm10 = vcmp.gt.f32.partialorder %v2302_v53, 0.0 }
  0x29   : > { %532 = vperm.xlu1 %2020, %v461_v11   ;;  %vm672_vm11 = vcmp.gt.f32.partialorder %v2317_v63, 0.0  ;;  %vm673_vm12 = vcmp.gt.f32.partialorder %v2319_v0, 0.0  ;;  %vm658_vm13 = vcmp.gt.f32.partialorder %v2315_v61, 0.0  ;;  %vm659_vm14 = vcmp.gt.f32.partialorder %v2321_v1, 0.0 }
  0x2a   : > { %527 = vperm.xlu0 %2019, %v460_v12   ;;  %vm660_vm15 = vcmp.gt.f32.partialorder %v2330_v7, 0.0 }
  0x2d   : > { %502 = vperm.xlu1 %2020, %v455_v13   ;;  %v2337_v13 = vcvt.s32.f32 %v394_v62 }
  0x2e   : > { %497 = vperm.xlu0 %2019, %v454_v14   ;;  %v396_v14 = vunpack.c.2.s8 %v378_v43 }
  0x30   : > { %v2365_v33 = vcvt.s32.f32 %v396_v14 }
  0x31   : > { %542 = vperm.xlu1 %2020, %v463_v15   ;;  %v397_v15 = vunpack.c.2.s8 %v2292_v44 }
  0x32   : > { %537 = vperm.xlu0 %2019, %v462_v16   ;;  %v398_v16 = vunpack.c.3.s8 %v378_v43  ;;  %v2376_v43 = vcvt.s32.f32 %v399_v20 }
  0x33   : > { %v2367_v34 = vcvt.s32.f32 %v397_v15  ;;  %v2400_v15 = vcvt.s32.f32 %v412_v41 }
  0x34   : > { %v2369_v38 = vcvt.s32.f32 %v398_v16 }
  0x94   : > { %v508_v11 = vpop.permute.xlu1 %507 }
  0x95   : > { %v468_v12 = vpop.permute.xlu0 %467  ;;  %v2341_v17 = vadd.f32 %v2280_v30, %v508_v11  ;;  %v2358_v25 = vadd.f32 %v2282_v35, %v508_v11 }
  0x96   : > { %v556_v18 = vadd.f32 %v2280_v30, %v468_v12  ;;  %v557_v19 = vadd.f32 %v2282_v35, %v468_v12 }
  0x97   : > { %v604_v26 = vmul.f32 0.2, %v2341_v17  ;;  %v605_v48 = vmul.f32 0.2, %v2358_v25 }
  0x98   : > { %v588_v27 = vmul.f32 0.2, %v556_v18  ;;  %v589_v29 = vmul.f32 0.2, %v557_v19  ;;  %v513_v31 = vpop.permute.xlu1 %512 }
  0x99   : > { %v473_v32 = vpop.permute.xlu0 %472  ;;  %v2372_v40 = vadd.f32 %v2280_v30, %v513_v31  ;;  %v2379_v45 = vadd.f32 %v2282_v35, %v513_v31  ;;  %v636_v54 = vmax.f32 %v2341_v17, %v604_v26  ;;  %v637_v20 = vmax.f32 %v2358_v25, %v605_v48 }
  0x9a   : > { %v620_v44 = vmax.f32 %v556_v18, %v588_v27  ;;  %v558_v46 = vadd.f32 %v2280_v30, %v473_v32  ;;  %v559_v47 = vadd.f32 %v2282_v35, %v473_v32  ;;  %v621_v62 = vmax.f32 %v557_v19, %v589_v29 }
  0x9b   : > { %v2389_v3 = vmul.f32 0.2, %v2372_v40  ;;  %v2392_v11 = vmul.f32 0.2, %v2379_v45  ;;  %v2407_v19 = vcvt.s32.f32 %v413_v42  ;;  %v2422_v25 = vsel %vm668_vm3, %v636_v54, -1e+30 }
  0x9c   : > { %v590_v4 = vmul.f32 0.2, %v558_v46  ;;  %v591_v5 = vmul.f32 0.2, %v559_v47  ;;  %v483_v6 = vpop.permute.xlu1 %482  ;;  %v2405_v18 = vsel %vm652_vm1, %v620_v44, -1e+30 }
  0x9d   : > { %v478_v10 = vpop.permute.xlu0 %477  ;;  %v2395_v12 = vadd.f32 %v2280_v30, %v483_v6  ;;  %v2411_v27 = vadd.f32 %v2282_v35, %v483_v6  ;;  %v638_v31 = vmax.f32 %v2372_v40, %v2389_v3  ;;  %v2418_v41 = vsel %vm653_vm2, %v621_v62, -1e+30 }
  0x9e   : > { %v560_v14 = vadd.f32 %v2280_v30, %v478_v10  ;;  %v622_v16 = vmax.f32 %v558_v46, %v590_v4  ;;  %v561_v17 = vadd.f32 %v2282_v35, %v478_v10  ;;  %v623_v26 = vmax.f32 %v559_v47, %v591_v5 }
  0x9f   : > { %v639_v46 = vmax.f32 %v2379_v45, %v2392_v11  ;;  %v2427_v47 = vmul.f32 0.2, %v2395_v12  ;;  %v732_v40 = vmax.f32 %v2405_v18, %v2418_v41  ;;  %v2445_v4 = vmul.f32 0.2, %v2411_v27 }
  0xa0   : > { %v592_v29 = vmul.f32 0.2, %v560_v14  ;;  %v593_v32 = vmul.f32 0.2, %v561_v17  ;;  %v523_v44 = vpop.permute.xlu1 %522  ;;  %v2433_v48 = vsel %vm654_vm4, %v622_v16, -1e+30 }
  0xa1   : > { %v518_v42 = vpop.permute.xlu0 %517  ;;  %v2437_v3 = vadd.f32 %v2280_v30, %v523_v44  ;;  %v2440_v54 = vadd.f32 %v2282_v35, %v523_v44  ;;  %733 = vmax.xlane.f32.xlu0 %v732_v40  ;;  %v2450_v6 = vsel %vm655_vm5, %v623_v26, -1e+30  ;;  %v2454_v10 = vsel %vm669_vm6, %v637_v20, -1e+30 }
  0xa2   : > { %v624_v62 = vmax.f32 %v560_v14, %v592_v29  ;;  %v576_v45 = vadd.f32 %v2280_v30, %v518_v42  ;;  %v577_v5 = vadd.f32 %v2282_v35, %v518_v42  ;;  %v625_v11 = vmax.f32 %v561_v17, %v593_v32 }
  0xa3   : > { %v2458_v14 = vmul.f32 0.2, %v2437_v3  ;;  %v735_v29 = vmax.f32 %v2433_v48, %v2450_v6  ;;  %v2464_v26 = vmul.f32 0.2, %v2440_v54  ;;  %v756_v20 = vmax.f32 %v2422_v25, %v2454_v10 }
  0xa4   : > { %v608_v16 = vmul.f32 0.2, %v576_v45  ;;  %v493_v44 = vpop.permute.xlu1 %492  ;;  %v609_v40 = vmul.f32 0.2, %v577_v5  ;;  %v626_v32 = vmax.f32 %v2395_v12, %v2427_v47  ;;  %v2481_v39 = vsel %vm656_vm7, %v624_v62, -1e+30 }
  0xa5   : > { %v488_v42 = vpop.permute.xlu0 %487  ;;  %v2469_v17 = vadd.f32 %v2280_v30, %v493_v44  ;;  %736 = vmax.xlane.f32.xlu1 %v735_v29  ;;  %v2474_v56 = vadd.f32 %v2282_v35, %v493_v44  ;;  %vm661_vm1 = vcmp.gt.f32.partialorder %v2332_v8, 0.0  ;;  %v627_v50 = vmax.f32 %v2411_v27, %v2445_v4  ;;  %757 = vmax.xlane.f32.xlu0 %v756_v20 }
  0xa6   : > { %v2477_v55 = vadd.f32 %v2280_v30, %v488_v42  ;;  %v565_v29 = vadd.f32 %v2282_v35, %v488_v42  ;;  %v640_v44 = vmax.f32 %v576_v45, %v608_v16  ;;  %v2496_v59 = vsel %vm657_vm8, %v625_v11, -1e+30 }
  0xa7   : > { %v2490_v47 = vmul.f32 0.2, %v2469_v17  ;;  %v2500_v51 = vsel %vm670_vm9, %v638_v31, -1e+30  ;;  %vm674_vm2 = vcmp.gt.f32.partialorder %v2323_v2, 0.0  ;;  %vm675_vm3 = vcmp.gt.f32.partialorder %v2334_v9, 0.0 }
  0xa8   : > { %v596_v62 = vmul.f32 0.2, %v2477_v55  ;;  %v533_v27 = vpop.permute.xlu1 %532  ;;  %v643_v42 = vmax.f32 %v2440_v54, %v2464_v26  ;;  %v641_v45 = vmax.f32 %v577_v5, %v609_v40  ;;  %v597_v16 = vmul.f32 0.2, %v565_v29 }
  0xa9   : > { %v528_v4 = vpop.permute.xlu0 %527  ;;  %v738_v20 = vmax.f32 %v2481_v39, %v2496_v59  ;;  %v2509_v11 = vmul.f32 0.2, %v2474_v56  ;;  %v2513_v31 = vsel %vm671_vm10, %v639_v46, -1e+30  ;;  %v2516_v12 = vadd.f32 %v2280_v30, %v533_v27 }
  0xaa   : > { %v2519_v52 = vadd.f32 %v2282_v35, %v533_v27  ;;  %vm676_vm4 = vcmp.gt.f32.partialorder %v2349_v21, 0.0  ;;  %v759_v5 = vmax.f32 %v2500_v51, %v2513_v31  ;;  %v580_v26 = vadd.f32 %v2280_v30, %v528_v4 }
  0xab   : > { %739 = vmax.xlane.f32.xlu1 %v738_v20  ;;  %v581_v46 = vadd.f32 %v2282_v35, %v528_v4  ;;  %vm677_vm5 = vcmp.gt.f32.partialorder %v2351_v22, 0.0  ;;  %vm662_vm6 = vcmp.gt.f32.partialorder %v2337_v13, 0.0  ;;  %vm663_vm7 = vcmp.gt.f32.partialorder %v2353_v23, 0.0 }
  0xac   : > { %v628_v40 = vmax.f32 %v2477_v55, %v596_v62  ;;  %v629_v27 = vmax.f32 %v565_v29, %v597_v16  ;;  %v2533_v53 = vmul.f32 0.2, %v2516_v12  ;;  %v2537_v20 = vsel %vm672_vm11, %v640_v44, -1e+30  ;;  %v503_v54 = vpop.permute.xlu1 %502  ;;  %760 = vmax.xlane.f32.xlu0 %v759_v5 }
  0xad   : > { %v498_v60 = vpop.permute.xlu0 %497  ;;  %v612_v4 = vmul.f32 0.2, %v580_v26  ;;  %v613_v49 = vmul.f32 0.2, %v581_v46  ;;  %v2541_v37 = vsel %vm673_vm12, %v641_v45, -1e+30  ;;  %v2544_v36 = vadd.f32 %v2280_v30, %v503_v54 }
  0xae   : > { %vm664_vm8 = vcmp.gt.f32.partialorder %v2365_v33, 0.0  ;;  %vm665_vm9 = vcmp.gt.f32.partialorder %v2367_v34, 0.0  ;;  %vm678_vm10 = vcmp.gt.f32.partialorder %v2355_v24, 0.0  ;;  %v631_v55 = vmax.f32 %v2474_v56, %v2509_v11 }
  0xaf   : > { %v615_v29 = vmul.f32 0.2, %v2519_v52  ;;  %v762_v44 = vmax.f32 %v2537_v20, %v2541_v37  ;;  %v2556_v62 = vsel %vm658_vm13, %v626_v32, -1e+30  ;;  %vm679_vm11 = vcmp.gt.f32.partialorder %v2361_v28, 0.0 }
  0xb0   : > { %v646_v45 = vmax.f32 %v2516_v12, %v2533_v53  ;;  %v644_v16 = vmax.f32 %v580_v26, %v612_v4  ;;  %v2563_v5 = vsel %vm659_vm14, %v627_v50, -1e+30  ;;  %v2566_v56 = vadd.f32 %v2282_v35, %v503_v54  ;;  %v543_v61 = vpop.permute.xlu1 %542 }
  0xb1   : > { %763 = vmax.xlane.f32.xlu1 %v762_v44  ;;  %v741_v11 = vmax.f32 %v2556_v62, %v2563_v5  ;;  %v602_v32 = vmul.f32 0.2, %v2544_v36  ;;  %v568_v63 = vadd.f32 %v2280_v30, %v498_v60  ;;  %v569_v0 = vadd.f32 %v2282_v35, %v498_v60  ;;  %v538_v1 = vpop.permute.xlu0 %537 }
  0xb2   : > { %vm680_vm12 = vcmp.gt.f32.partialorder %v2400_v15, 0.0  ;;  %vm681_vm13 = vcmp.gt.f32.partialorder %v2407_v19, 0.0  ;;  %v645_v50 = vmax.f32 %v581_v46, %v613_v49  ;;  %v2577_v53 = vsel %vm660_vm15, %v628_v40, -1e+30 }
  0xb3   : > { %v2581_v12 = vsel %vm661_vm1, %v629_v27, -1e+30  ;;  %v586_v54 = vadd.f32 %v2280_v30, %v543_v61  ;;  %742 = vmax.xlane.f32.xlu0 %v741_v11  ;;  %v603_v26 = vmul.f32 0.2, %v2566_v56  ;;  %v600_v60 = vmul.f32 0.2, %v568_v63 }
  0xb4   : > { %3288 = vst [vmem:[#allocation20_spill] sm:$0xff] %v2581_v12  ;;  %v601_v4 = vmul.f32 0.2, %v569_v0  ;;  %v744_v44 = vmax.f32 %v2577_v53, %v2581_v12  ;;  %v647_v49 = vmax.f32 %v2519_v52, %v615_v29  ;;  %v3289_v46 = vmax.f32 %v2437_v3, %v2458_v14 }
  0xb5   : > { %v2597_v27 = vsel %vm675_vm3, %v643_v42, -1e+30  ;;  %v587_v11 = vadd.f32 %v2282_v35, %v543_v61  ;;  %v634_v8 = vmax.f32 %v2544_v36, %v602_v32  ;;  %v632_v7 = vmax.f32 %v568_v63, %v600_v60 }
  0xb6   : > { %v2593_v40 = vsel %vm674_vm2, %v3289_v46, -1e+30  ;;  %v633_v12 = vmax.f32 %v569_v0, %v601_v4  ;;  %745 = vmax.xlane.f32.xlu1 %v744_v44  ;;  %v618_v29 = vmul.f32 0.2, %v586_v54  ;;  %v584_v3 = vadd.f32 %v2280_v30, %v538_v1 }
  0xb7   : > { %v765_v52 = vmax.f32 %v2593_v40, %v2597_v27  ;;  %v585_v14 = vadd.f32 %v2282_v35, %v538_v1  ;;  %v2607_v46 = vsel %vm676_vm4, %v644_v16, -1e+30  ;;  %v635_v42 = vmax.f32 %v2566_v56, %v603_v26 }
  0xb8   : > { %v2612_v36 = vsel %vm677_vm5, %v645_v50, -1e+30  ;;  %v3290_v61 = vmax.f32 %v2469_v17, %v2490_v47  ;;  %v2623_v30 = vsel %vm663_vm7, %v631_v55, -1e+30  ;;  %v619_v35 = vmul.f32 0.2, %v587_v11 }
  0xb9   : > { %766 = vmax.xlane.f32.xlu0 %v765_v52  ;;  %v616_v0 = vmul.f32 0.2, %v584_v3  ;;  %v617_v1 = vmul.f32 0.2, %v585_v14  ;;  %v768_v16 = vmax.f32 %v2607_v46, %v2612_v36  ;;  %v2631_v17 = vsel %vm664_vm8, %v632_v7, -1e+30 }
  0xba   : > { %v2619_v63 = vsel %vm662_vm6, %v3290_v61, -1e+30  ;;  %v2635_v47 = vsel %vm665_vm9, %v633_v12, -1e+30  ;;  %v2639_v55 = vsel %vm678_vm10, %v646_v45, -1e+30  ;;  %v3291_v7 = vunpack.c.3.s8 %v2306_v57 }
  0xbb   : > { %v747_v56 = vmax.f32 %v2619_v63, %v2623_v30  ;;  %v648_v32 = vmax.f32 %v584_v3, %v616_v0  ;;  %v649_v50 = vmax.f32 %v585_v14, %v617_v1  ;;  %769 = vmax.xlane.f32.xlu1 %v768_v16  ;;  %v750_v26 = vmax.f32 %v2631_v17, %v2635_v47  ;;  %v2022_v0 = vld [vmem:[%s3221_s1] sm:$0xff]   ;;  %v2023_v1 = vld [vmem:[%s3221_s1 + $0x48] sm:$0xff]  }
  0xbc   : > { %v2645_v60 = vsel %vm679_vm11, %v647_v49, -1e+30  ;;  %vm666_vm14 = vcmp.gt.f32.partialorder %v2369_v38, 0.0  ;;  %vm667_vm15 = vcmp.gt.f32.partialorder %v2376_v43, 0.0  ;;  %v2651_v12 = vcvt.s32.f32 %v3291_v7  ;;  %v2024_v16 = vld [vmem:[%s3221_s1 + $0x8] sm:$0xff]   ;;  %v2718_v7 = vld [vmem:[#allocation2 + $0x40] sm:$0xff] }
  0xbd   : > { %748 = vmax.xlane.f32.xlu0 %v747_v56  ;;  %v3292_v45 = vunpack.c.3.s8 %v2309_v58  ;;  %v2659_v44 = vsel %vm680_vm12, %v648_v32, -1e+30  ;;  %v2663_v49 = vsel %vm681_vm13, %v649_v50, -1e+30  ;;  %v650_v52 = vmax.f32 %v586_v54, %v618_v29  ;;  %v2711_v56 = vld [vmem:[#allocation2] sm:$0xff]  ;;  %3294 = vst [vmem:[#allocation22_spill] sm:$0xff] %v2718_v7 }
  0xbe   : > { %v771_v3 = vmax.f32 %v2639_v55, %v2645_v60  ;;  %v651_v14 = vmax.f32 %v587_v11, %v619_v35  ;;  %v774_v57 = vmax.f32 %v2659_v44, %v2663_v49  ;;  %v2669_v58 = vsel %vm666_vm14, %v634_v8, -1e+30  ;;  %v2021_v35 = vld [vmem:[%s3221_s1 + $0x40] sm:$0xff]  }
  0xbf   : > { %v2655_v4 = vcvt.s32.f32 %v3292_v45  ;;  %751 = vmax.xlane.f32.xlu1 %v750_v26  ;;  %v2671_v61 = vsel %vm667_vm15, %v635_v42, -1e+30  ;;  %vm682_vm1 = vcmp.gt.f32.partialorder %v2651_v12, 0.0  ;;  %v2191_v42 = vmov 0.0   ;;  %1912 = vmatprep.subr.bf16.mxu0 %v2021_v35  ;;  %v2716_v26 = vld [vmem:[#allocation2 + $0x8] sm:$0xff]  ;;  %v2028_v45 = vld [vmem:[%s3221_s1 + $0x18] sm:$0xff]  }
  0xc0   : > { %v753_v54 = vmax.f32 %v2669_v58, %v2671_v61  ;;  %v2677_v29 = vsel %vm682_vm1, %v650_v52, -1e+30  ;;  %344 = vst.msk [vmem:[#allocation3] sm:$0xff] %vm327_vm0, %v2191_v42  ;;  %345 = vst.msk [vmem:[#allocation3 + $0x8] sm:$0xff] %vm327_vm0, %v2191_v42  ;;  %1976 = vmatprep.subr.bf16.mxu1 %v2021_v35  ;;  %1913 = vmatpush3.bf16.msra.mxu0 %v2022_v0 }
  0xc1   : > { %772 = vmax.xlane.f32.xlu0 %v771_v3  ;;  %vm683_vm2 = vcmp.gt.f32.partialorder %v2655_v4, 0.0  ;;  %346 = vst.msk [vmem:[#allocation3 + $0x10] sm:$0xff] %vm327_vm0, %v2191_v42  ;;  %347 = vst.msk [vmem:[#allocation3 + $0x18] sm:$0xff] %vm327_vm0, %v2191_v42  ;;  %1984 = vmatpush3.bf16.msra.mxu1 %v2022_v0  ;;  %v2743_v0 = vld [vmem:[#allocation2 + $0x48] sm:$0xff] }
  0xc2   : > { %v2679_v11 = vsel %vm683_vm2, %v651_v14, -1e+30  ;;  %348 = vst.msk [vmem:[#allocation3 + $0x20] sm:$0xff] %vm327_vm0, %v2191_v42  ;;  %349 = vst.msk [vmem:[#allocation3 + $0x28] sm:$0xff] %vm327_vm0, %v2191_v42  ;;  %1914 = vmatprep.subr.bf16.mxu0 %v2023_v1  ;;  %1977 = vmatprep.subr.bf16.mxu1 %v2023_v1  ;;  %v2025_v1 = vld [vmem:[%s3221_s1 + $0x50] sm:$0xff]  }
  0xc3   : > { %775 = vmax.xlane.f32.xlu1 %v774_v57  ;;  %v777_v8 = vmax.f32 %v2677_v29, %v2679_v11  ;;  %350 = vst.msk [vmem:[#allocation3 + $0x30] sm:$0xff] %vm327_vm0, %v2191_v42  ;;  %351 = vst.msk [vmem:[#allocation3 + $0x38] sm:$0xff] %vm327_vm0, %v2191_v42 }
  0xc4   : > { %352 = vst.msk [vmem:[#allocation3 + $0x40] sm:$0xff] %vm327_vm0, %v2191_v42  ;;  %353 = vst.msk [vmem:[#allocation3 + $0x48] sm:$0xff] %vm327_vm0, %v2191_v42  ;;  %1915 = vmatpush3.bf16.msra.mxu0 %v2024_v16 }
  0xc5   : > { %754 = vmax.xlane.f32.xlu0 %v753_v54  ;;  %354 = vst.msk [vmem:[#allocation3 + $0x50] sm:$0xff] %vm327_vm0, %v2191_v42  ;;  %355 = vst.msk [vmem:[#allocation3 + $0x58] sm:$0xff] %vm327_vm0, %v2191_v42  ;;  %1985 = vmatpush3.bf16.msra.mxu1 %v2024_v16  ;;  %v2026_v16 = vld [vmem:[%s3221_s1 + $0x10] sm:$0xff]  }
  0xc6   : > { %356 = vst.msk [vmem:[#allocation3 + $0x60] sm:$0xff] %vm327_vm0, %v2191_v42  ;;  %357 = vst.msk [vmem:[#allocation3 + $0x68] sm:$0xff] %vm327_vm0, %v2191_v42  ;;  %1916 = vmatprep.subr.bf16.mxu0 %v2025_v1  ;;  %1978 = vmatprep.subr.bf16.mxu1 %v2025_v1  ;;  %v2762_v54 = vld [vmem:[#allocation2 + $0x50] sm:$0xff]  ;;  %v2030_v1 = vld [vmem:[%s3221_s1 + $0x20] sm:$0xff]  }
  0xc7   : > { %358 = vst.msk [vmem:[#allocation3 + $0x70] sm:$0xff] %vm327_vm0, %v2191_v42  ;;  %359 = vst.msk [vmem:[#allocation3 + $0x78] sm:$0xff] %vm327_vm0, %v2191_v42 }
  0xc8   : > { %3293 = vst [vmem:[#allocation21_spill] sm:$0xff] %v2716_v26  ;;  %3297 = vst [vmem:[#allocation25_spill] sm:$0xff] %v2743_v0  ;;  %1917 = vmatpush3.bf16.msra.mxu0 %v2026_v16 }
  0xc9   : > { %778 = vmax.xlane.f32.xlu0 %v777_v8  ;;  %v2736_v8 = vld [vmem:[#allocation2 + $0x10] sm:$0xff]  ;;  %3300 = vst [vmem:[#allocation28_spill] sm:$0xff] %v2762_v54  ;;  %1986 = vmatpush3.bf16.msra.mxu1 %v2026_v16 }
 0x12e   : > { %v734_v32 = vpop.xlane.xlu0 %733 }
 0x12f   : > { %v2714_v50 = vmax.f32 %v2711_v56, %v734_v32 }
 0x131   : > { %1550 = vst.msk [vmem:[#allocation2] sm:$0xff] %vm327_vm0, %v2714_v50  ;;  %846 = vperm.xlu1 %2020, %v2714_v50  }
 0x132   : > { %v737_v52 = vpop.xlane.xlu1 %736  ;;  %v758_v14 = vpop.xlane.xlu0 %757 }
 0x133   : > { %v2726_v3 = vmax.f32 %v2716_v26, %v737_v52  ;;  %v2729_v57 = vmax.f32 %v2718_v7, %v758_v14  ;;  %v2772_v14 = vld [vmem:[#allocation2 + $0x18] sm:$0xff]  ;;  %v2780_v7 = vld [vmem:[#allocation2 + $0x20] sm:$0xff] }
 0x134   : > { %3301 = vst [vmem:[#allocation29_spill] sm:$0xff] %v2772_v14  ;;  %3303 = vst [vmem:[#allocation31_spill] sm:$0xff] %v2780_v7 }
 0x135   : > { %3295 = vst [vmem:[#allocation23_spill] sm:$0xff] %v2726_v3  ;;  %3296 = vst [vmem:[#allocation24_spill] sm:$0xff] %v2729_v57  ;;  %851 = vperm.xlu0 %2019, %v2726_v3   ;;  %886 = vperm.xlu1 %2020, %v2729_v57  }
 0x136   : > { %1551 = vst.msk [vmem:[#allocation2 + $0x8] sm:$0xff] %vm327_vm0, %v2726_v3  ;;  %1558 = vst.msk [vmem:[#allocation2 + $0x40] sm:$0xff] %vm327_vm0, %v2729_v57  ;;  %v2835_v3 = vld [vmem:[#allocation2 + $0x30] sm:$0xff] }
 0x137   : > { %3312 = vst [vmem:[#allocation40_spill] sm:$0xff] %v2835_v3 }
 0x138   : > { %v740_v35 = vpop.xlane.xlu1 %739 }
 0x139   : > { %v2752_v32 = vmax.f32 %v2736_v8, %v740_v35  ;;  %v761_v52 = vpop.xlane.xlu0 %760  ;;  %v2027_v35 = vld [vmem:[%s3221_s1 + $0x58] sm:$0xff]  }
 0x13a   : > { %v2759_v42 = vmax.f32 %v2743_v0, %v761_v52  ;;  %1918 = vmatprep.subr.bf16.mxu0 %v2027_v35  ;;  %1979 = vmatprep.subr.bf16.mxu1 %v2027_v35  ;;  %v2793_v0 = vld [vmem:[#allocation2 + $0x58] sm:$0xff] }
 0x13b   : > { %3298 = vst [vmem:[#allocation26_spill] sm:$0xff] %v2752_v32  ;;  %1552 = vst.msk [vmem:[#allocation2 + $0x10] sm:$0xff] %vm327_vm0, %v2752_v32  ;;  %856 = vperm.xlu0 %2019, %v2752_v32   ;;  %1919 = vmatpush3.bf16.msra.mxu0 %v2028_v45 }
 0x13c   : > { %3299 = vst [vmem:[#allocation27_spill] sm:$0xff] %v2759_v42  ;;  %1559 = vst.msk [vmem:[#allocation2 + $0x48] sm:$0xff] %vm327_vm0, %v2759_v42  ;;  %891 = vperm.xlu1 %2020, %v2759_v42   ;;  %1987 = vmatpush3.bf16.msra.mxu1 %v2028_v45 }
 0x13d   : > { %3305 = vst [vmem:[#allocation33_spill] sm:$0xff] %v2793_v0 }
 0x13e   : > { %v764_v52 = vpop.xlane.xlu1 %763 }
 0x13f   : > { %v2778_v57 = vmax.f32 %v2762_v54, %v764_v52  ;;  %v2029_v52 = vld [vmem:[%s3221_s1 + $0x60] sm:$0xff]  }
 0x140   : > { %v743_v16 = vpop.xlane.xlu0 %742  ;;  %1920 = vmatprep.subr.bf16.mxu0 %v2029_v52  ;;  %1980 = vmatprep.subr.bf16.mxu1 %v2029_v52  ;;  %v2032_v52 = vld [vmem:[%s3221_s1 + $0x28] sm:$0xff]  }
 0x141   : > { %3302 = vst [vmem:[#allocation30_spill] sm:$0xff] %v2778_v57  ;;  %1560 = vst.msk [vmem:[#allocation2 + $0x50] sm:$0xff] %vm327_vm0, %v2778_v57  ;;  %v2787_v42 = vmax.f32 %v2772_v14, %v743_v16  ;;  %896 = vperm.xlu0 %2019, %v2778_v57   ;;  %1921 = vmatpush3.bf16.msra.mxu0 %v2030_v1  ;;  %v2814_v14 = vld [vmem:[#allocation2 + $0x60] sm:$0xff]  ;;  %v2033_v57 = vld [vmem:[%s3221_s1 + $0x70] sm:$0xff]  }
 0x142   : > { %3308 = vst [vmem:[#allocation36_spill] sm:$0xff] %v2814_v14  ;;  %1988 = vmatpush3.bf16.msra.mxu1 %v2030_v1 }
 0x143   : > { %3304 = vst [vmem:[#allocation32_spill] sm:$0xff] %v2787_v42  ;;  %v746_v35 = vpop.xlane.xlu1 %745  ;;  %1553 = vst.msk [vmem:[#allocation2 + $0x18] sm:$0xff] %vm327_vm0, %v2787_v42  ;;  %861 = vperm.xlu1 %2020, %v2787_v42   ;;  %v2819_v42 = vld [vmem:[#allocation2 + $0x28] sm:$0xff] }
 0x144   : > { %v2804_v16 = vmax.f32 %v2780_v7, %v746_v35  ;;  %v2031_v35 = vld [vmem:[%s3221_s1 + $0x68] sm:$0xff]   ;;  %3309 = vst [vmem:[#allocation37_spill] sm:$0xff] %v2819_v42 }
 0x145   : > { %1922 = vmatprep.subr.bf16.mxu0 %v2031_v35  ;;  %1981 = vmatprep.subr.bf16.mxu1 %v2031_v35  ;;  %v2034_v35 = vld [vmem:[%s3221_s1 + $0x30] sm:$0xff]  }
 0x146   : > { %3306 = vst [vmem:[#allocation34_spill] sm:$0xff] %v2804_v16  ;;  %v767_v45 = vpop.xlane.xlu0 %766  ;;  %1554 = vst.msk [vmem:[#allocation2 + $0x20] sm:$0xff] %vm327_vm0, %v2804_v16  ;;  %866 = vperm.xlu0 %2019, %v2804_v16   ;;  %1923 = vmatpush3.bf16.msra.mxu0 %v2032_v52 }
 0x147   : > { %v2811_v54 = vmax.f32 %v2793_v0, %v767_v45  ;;  %1989 = vmatpush3.bf16.msra.mxu1 %v2032_v52  ;;  %1924 = vmatprep.subr.bf16.mxu0 %v2033_v57  ;;  %v2861_v0 = vld [vmem:[#allocation2 + $0x70] sm:$0xff] }
 0x148   : > { %v770_v45 = vpop.xlane.xlu1 %769  ;;  %1982 = vmatprep.subr.bf16.mxu1 %v2033_v57  ;;  %3316 = vst [vmem:[#allocation44_spill] sm:$0xff] %v2861_v0  ;;  %v2036_v57 = vld [vmem:[%s3221_s1 + $0x38] sm:$0xff]  }
 0x149   : > { %3307 = vst [vmem:[#allocation35_spill] sm:$0xff] %v2811_v54  ;;  %1561 = vst.msk [vmem:[#allocation2 + $0x58] sm:$0xff] %vm327_vm0, %v2811_v54  ;;  %901 = vperm.xlu1 %2020, %v2811_v54   ;;  %v2830_v16 = vmax.f32 %v2814_v14, %v770_v45  ;;  %v2845_v45 = vld [vmem:[#allocation2 + $0x68] sm:$0xff] }
 0x14a   : > { %v749_v1 = vpop.xlane.xlu0 %748  ;;  %3313 = vst [vmem:[#allocation41_spill] sm:$0xff] %v2845_v45  ;;  %1925 = vmatpush3.bf16.msra.mxu0 %v2034_v35 }
 0x14b   : > { %3310 = vst [vmem:[#allocation38_spill] sm:$0xff] %v2830_v16  ;;  %v2833_v7 = vmax.f32 %v2819_v42, %v749_v1  ;;  %1562 = vst.msk [vmem:[#allocation2 + $0x60] sm:$0xff] %vm327_vm0, %v2830_v16  ;;  %906 = vperm.xlu0 %2019, %v2830_v16   ;;  %v2035_v1 = vld [vmem:[%s3221_s1 + $0x78] sm:$0xff]   ;;  %1990 = vmatpush3.bf16.msra.mxu1 %v2034_v35 }
 0x14c   : > { %v752_v52 = vpop.xlane.xlu1 %751  ;;  %1926 = vmatprep.subr.bf16.mxu0 %v2035_v1  ;;  %1983 = vmatprep.subr.bf16.mxu1 %v2035_v1 }
 0x14d   : > { %3311 = vst [vmem:[#allocation39_spill] sm:$0xff] %v2833_v7  ;;  %1555 = vst.msk [vmem:[#allocation2 + $0x28] sm:$0xff] %vm327_vm0, %v2833_v7  ;;  %871 = vperm.xlu1 %2020, %v2833_v7   ;;  %v2856_v54 = vmax.f32 %v2835_v3, %v752_v52  ;;  %v2871_v52 = vld [vmem:[#allocation2 + $0x38] sm:$0xff] }
 0x14e   : > { %v773_v16 = vpop.xlane.xlu0 %772  ;;  %3317 = vst [vmem:[#allocation45_spill] sm:$0xff] %v2871_v52  ;;  %1927 = vmatpush3.bf16.msra.mxu0 %v2036_v57 }
 0x14f   : > { %3314 = vst [vmem:[#allocation42_spill] sm:$0xff] %v2856_v54  ;;  %v2859_v14 = vmax.f32 %v2845_v45, %v773_v16  ;;  %1556 = vst.msk [vmem:[#allocation2 + $0x30] sm:$0xff] %vm327_vm0, %v2856_v54  ;;  %876 = vperm.xlu0 %2019, %v2856_v54   ;;  %1991 = vmatpush3.bf16.msra.mxu1 %v2036_v57 }
 0x150   : > { %v776_v35 = vpop.xlane.xlu1 %775 }
 0x151   : > { %3315 = vst [vmem:[#allocation43_spill] sm:$0xff] %v2859_v14  ;;  %1563 = vst.msk [vmem:[#allocation2 + $0x68] sm:$0xff] %vm327_vm0, %v2859_v14  ;;  %911 = vperm.xlu1 %2020, %v2859_v14   ;;  %v2882_v7 = vmax.f32 %v2861_v0, %v776_v35  ;;  %v2892_v14 = vld [vmem:[#allocation2 + $0x78] sm:$0xff] }
 0x152   : > { %v755_v54 = vpop.xlane.xlu0 %754  ;;  %3320 = vst [vmem:[#allocation48_spill] sm:$0xff] %v2892_v14 }
 0x153   : > { %3318 = vst [vmem:[#allocation46_spill] sm:$0xff] %v2882_v7  ;;  %v2885_v3 = vmax.f32 %v2871_v52, %v755_v54  ;;  %1564 = vst.msk [vmem:[#allocation2 + $0x70] sm:$0xff] %vm327_vm0, %v2882_v7  ;;  %916 = vperm.xlu0 %2019, %v2882_v7  }
 0x155   : > { %3319 = vst [vmem:[#allocation47_spill] sm:$0xff] %v2885_v3  ;;  %1557 = vst.msk [vmem:[#allocation2 + $0x38] sm:$0xff] %vm327_vm0, %v2885_v3  ;;  %881 = vperm.xlu1 %2020, %v2885_v3  }
 0x156   : > { %v779_v54 = vpop.xlane.xlu0 %778 }
 0x157   : > { %v2900_v1 = vmax.f32 %v2892_v14, %v779_v54 }
 0x159   : > { %3321 = vst [vmem:[#allocation49_spill] sm:$0xff] %v2900_v1  ;;  %1565 = vst.msk [vmem:[#allocation2 + $0x78] sm:$0xff] %vm327_vm0, %v2900_v1  ;;  %921 = vperm.xlu1 %2020, %v2900_v1  }
 0x1b0   : > { %v847_v16 = vpop.permute.xlu1 %846 }
 0x1b1   : > { %v924_v35 = vsub.f32 %v2405_v18, %v847_v16  ;;  %v925_v7 = vsub.f32 %v2418_v41, %v847_v16 }
 0x1b3   : > { %v956_v0 = vmul.f32 1.442695, %v924_v35  ;;  %v958_v45 = vmul.f32 1.442695, %v925_v7 }
 0x1b4   : > { %v852_v3 = vpop.permute.xlu0 %851  ;;  %v887_v52 = vpop.permute.xlu1 %886 }
 0x1b5   : > { %v926_v54 = vsub.f32 %v2433_v48, %v852_v3  ;;  %v927_v42 = vsub.f32 %v2450_v6, %v852_v3  ;;  %2037 = vpow2.f32 %v956_v0  ;;  %v940_v57 = vsub.f32 %v2422_v25, %v887_v52 }
 0x1b6   : > { %v941_v14 = vsub.f32 %v2454_v10, %v887_v52  ;;  %2039 = vpow2.f32 %v958_v45 }
 0x1b7   : > { %v960_v1 = vmul.f32 1.442695, %v926_v54  ;;  %v988_v26 = vmul.f32 1.442695, %v940_v57  ;;  %v962_v18 = vmul.f32 1.442695, %v927_v42 }
 0x1b8   : > { %v990_v32 = vmul.f32 1.442695, %v941_v14  ;;  %v3322_v57 = vld [vmem:[#allocation4_spill] sm:$0xff] }
 0x1b9   : > { %2041 = vpow2.f32 %v960_v1 }
 0x1ba   : > { %v857_v41 = vpop.permute.xlu0 %856  ;;  %2043 = vpow2.f32 %v988_v26 }
 0x1bb   : > { %v928_v7 = vsub.f32 %v2481_v39, %v857_v41  ;;  %v929_v16 = vsub.f32 %v2496_v59, %v857_v41  ;;  %2045 = vpow2.f32 %v990_v32  ;;  %v892_v48 = vpop.permute.xlu1 %891 }
 0x1bc   : > { %2047 = vpow2.f32 %v962_v18  ;;  %v942_v6 = vsub.f32 %v2500_v51, %v892_v48  ;;  %v943_v25 = vsub.f32 %v2513_v31, %v892_v48  ;;  %v3323_v18 = vld [vmem:[#allocation5_spill] sm:$0xff] }
 0x1bd   : > { %v964_v10 = vmul.f32 1.442695, %v928_v7  ;;  %v966_v3 = vmul.f32 1.442695, %v929_v16 }
 0x1be   : > { %v992_v0 = vmul.f32 1.442695, %v942_v6  ;;  %v994_v45 = vmul.f32 1.442695, %v943_v25 }
 0x1bf   : > { %2049 = vpow2.f32 %v964_v10  ;;  %v2038_v14 = vpop.eup %2037  ;;  %v3325_v10 = vld [vmem:[#allocation7_spill] sm:$0xff] }
 0x1c0   : > { %v897_v42 = vpop.permute.xlu0 %896  ;;  %2051 = vpow2.f32 %v966_v3  ;;  %v2040_v32 = vpop.eup %2039  ;;  %v1020_v54 = vmul.f32 %v2038_v14, %v3322_v57 }
 0x1c1   : > { %v944_v26 = vsub.f32 %v2537_v20, %v897_v42  ;;  %v945_v39 = vsub.f32 %v2541_v37, %v897_v42  ;;  %2053 = vpow2.f32 %v994_v45  ;;  %v1021_v41 = vmul.f32 %v2040_v32, %v3323_v18 }
 0x1c2   : > { %v862_v59 = vpop.permute.xlu1 %861  ;;  %2055 = vpow2.f32 %v992_v0 }
 0x1c3   : > { %v930_v52 = vsub.f32 %v2556_v62, %v862_v59  ;;  %v931_v51 = vsub.f32 %v2563_v5, %v862_v59  ;;  %v996_v31 = vmul.f32 1.442695, %v944_v26  ;;  %v998_v35 = vmul.f32 1.442695, %v945_v39  ;;  %v2042_v7 = vpop.eup %2041  ;;  %v3324_v62 = vld [vmem:[#allocation20_spill] sm:$0xff]  ;;  %v3326_v59 = vld [vmem:[#allocation9_spill] sm:$0xff] }
 0x1c4   : > { %v2044_v48 = vpop.eup %2043  ;;  %v1084_v5 = vadd.f32 %v1021_v41, %v1020_v54  ;;  %v1022_v3 = vmul.f32 %v2042_v7, %v3325_v10  ;;  %v3328_v7 = vld [vmem:[#allocation6_spill] sm:$0xff] }
 0x1c5   : > { %v867_v1 = vpop.permute.xlu0 %866  ;;  %v968_v20 = vmul.f32 1.442695, %v930_v52  ;;  %v970_v16 = vmul.f32 1.442695, %v931_v51  ;;  %2057 = vpow2.f32 %v996_v31  ;;  %v2046_v0 = vpop.eup %2045 }
 0x1c6   : > { %v932_v37 = vsub.f32 %v2577_v53, %v867_v1  ;;  %2059 = vpow2.f32 %v998_v35  ;;  %v933_v25 = vsub.f32 %v3324_v62, %v867_v1  ;;  %v2048_v39 = vpop.eup %2047  ;;  %1085 = vadd.xlane.f32.xlu0 %v1084_v5  ;;  %v1277_v53 = vpack.c.bf16 %v1022_v3, %v1020_v54  ;;  %v3327_v35 = vld [vmem:[#allocation8_spill] sm:$0xff] }
 0x1c7   : > { %2061 = vpow2.f32 %v968_v20  ;;  %v2929_v32 = vmul.f32 %v2046_v0, %v3326_v59  ;;  %v1023_v1 = vmul.f32 %v2048_v39, %v3327_v35  ;;  %v2935_v20 = vmul.f32 %v2044_v48, %v3328_v7  ;;  %v3330_v48 = vld [vmem:[#allocation13_spill] sm:$0xff] }
 0x1c8   : > { %v902_v6 = vpop.permute.xlu1 %901  ;;  %v972_v26 = vmul.f32 1.442695, %v932_v37  ;;  %2063 = vpow2.f32 %v970_v16  ;;  %v974_v14 = vmul.f32 1.442695, %v933_v25 }
 0x1c9   : > { %v946_v45 = vsub.f32 %v2593_v40, %v902_v6  ;;  %v947_v42 = vsub.f32 %v2597_v27, %v902_v6  ;;  %v2050_v57 = vpop.eup %2049  ;;  %v1278_v6 = vpack.c.bf16 %v1023_v1, %v1021_v41  ;;  %v1087_v5 = vadd.f32 %v1023_v1, %v1022_v3  ;;  %v3331_v3 = vld [vmem:[#allocation11_spill] sm:$0xff] }
 0x1ca   : > { %2065 = vpow2.f32 %v972_v26  ;;  %v907_v31 = vpop.permute.xlu0 %906  ;;  %v2052_v54 = vpop.eup %2051 }
 0x1cb   : > { %v1000_v52 = vmul.f32 1.442695, %v946_v45  ;;  %v1002_v51 = vmul.f32 1.442695, %v947_v42  ;;  %2067 = vpow2.f32 %v974_v14  ;;  %v948_v27 = vsub.f32 %v2607_v46, %v907_v31  ;;  %v2054_v10 = vpop.eup %2053  ;;  %1453 = vmatprep.mubr.bf16.mxu0 %v1278_v6  ;;  %1088 = vadd.xlane.f32.xlu1 %v1087_v5 }
 0x1cc   : > { %v872_v40 = vpop.permute.xlu1 %871  ;;  %v949_v18 = vsub.f32 %v2612_v36, %v907_v31  ;;  %v3329_v36 = vld [vmem:[#allocation12_spill] sm:$0xff]  ;;  %v1025_v26 = vmul.f32 %v2052_v54, %v3330_v48  ;;  %v2056_v39 = vpop.eup %2055  ;;  %1454 = vmatmul.mubr.bf16.vlgmr.msra.gmra.mrb[0].mxu0 %v1277_v53  ;;  %v2946_v14 = vmul.f32 %v2054_v10, %v3331_v3 }
 0x1cd   : > { %2069 = vpow2.f32 %v1000_v52  ;;  %v934_v16 = vsub.f32 %v2619_v63, %v872_v40  ;;  %v935_v37 = vsub.f32 %v2623_v30, %v872_v40  ;;  %v1004_v62 = vmul.f32 1.442695, %v948_v27  ;;  %v3335_v3 = vld [vmem:[#allocation16_spill] sm:$0xff] }
 0x1ce   : > { %2071 = vpow2.f32 %v1002_v51  ;;  %v1006_v25 = vmul.f32 1.442695, %v949_v18  ;;  %v877_v46 = vpop.permute.xlu0 %876  ;;  %v2940_v42 = vmul.f32 %v2050_v57, %v3329_v36  ;;  %v3332_v18 = vld [vmem:[#allocation10_spill] sm:$0xff]  ;;  %v3334_v36 = vld [vmem:[#allocation17_spill] sm:$0xff] }
 0x1cf   : > { %v976_v0 = vmul.f32 1.442695, %v934_v16  ;;  %v978_v45 = vmul.f32 1.442695, %v935_v37  ;;  %2073 = vpow2.f32 %v1004_v62  ;;  %v936_v30 = vsub.f32 %v2631_v17, %v877_v46  ;;  %v2058_v59 = vpop.eup %2057  ;;  %v3333_v37 = vld [vmem:[#allocation14_spill] sm:$0xff] }
 0x1d0   : > { %v912_v63 = vpop.permute.xlu1 %911  ;;  %v937_v41 = vsub.f32 %v2635_v47, %v877_v46  ;;  %v1090_v31 = vadd.f32 %v1025_v26, %v2940_v42  ;;  %v2060_v35 = vpop.eup %2059  ;;  %v1286_v17 = vpack.c.bf16 %v2946_v14, %v2929_v32  ;;  %v2954_v7 = vmul.f32 %v2056_v39, %v3332_v18 }
 0x1d1   : > { %2075 = vpow2.f32 %v976_v0  ;;  %v950_v52 = vsub.f32 %v2639_v55, %v912_v63  ;;  %v951_v51 = vsub.f32 %v2645_v60, %v912_v63  ;;  %v980_v1 = vmul.f32 1.442695, %v936_v30  ;;  %v2062_v47 = vpop.eup %2061 }
 0x1d2   : > { %2077 = vpow2.f32 %v978_v45  ;;  %v982_v57 = vmul.f32 1.442695, %v937_v41  ;;  %1091 = vadd.xlane.f32.xlu0 %v1090_v31  ;;  %v917_v27 = vpop.permute.xlu0 %916  ;;  %v2064_v55 = vpop.eup %2063  ;;  %1485 = vmatprep.mubr.bf16.mxu1 %v1286_v17  ;;  %v1026_v6 = vmul.f32 %v2062_v47, %v3333_v37  ;;  %v1285_v10 = vpack.c.bf16 %v2954_v7, %v2935_v20  ;;  %v3337_v47 = vld [vmem:[#allocation19_spill] sm:$0xff] }
 0x1d3   : > { %2079 = vpow2.f32 %v1006_v25  ;;  %v1008_v53 = vmul.f32 1.442695, %v950_v52  ;;  %v1010_v40 = vmul.f32 1.442695, %v951_v51  ;;  %v952_v54 = vsub.f32 %v2659_v44, %v917_v27 }
 0x1d4   : > { %2081 = vpow2.f32 %v980_v1  ;;  %v882_v60 = vpop.permute.xlu1 %881  ;;  %v953_v16 = vsub.f32 %v2663_v49, %v917_v27  ;;  %v2066_v62 = vpop.eup %2065  ;;  %v1027_v48 = vmul.f32 %v2064_v55, %v3334_v36  ;;  %1486 = vmatmul.mubr.bf16.vlgmr.msra.gmra.mrb[0].mxu1 %v1285_v10  ;;  %v1279_v63 = vpack.c.bf16 %v1026_v6, %v2940_v42  ;;  %v3336_v42 = vld [vmem:[#allocation18_spill] sm:$0xff]  ;;  %v3338_v27 = vld [vmem:[#allocation15_spill] sm:$0xff] }
 0x1d5   : > { %2083 = vpow2.f32 %v1008_v53  ;;  %v938_v25 = vsub.f32 %v2669_v58, %v882_v60  ;;  %v939_v5 = vsub.f32 %v2671_v61, %v882_v60  ;;  %v2068_v0 = vpop.eup %2067  ;;  %v1012_v45 = vmul.f32 1.442695, %v952_v54 }
 0x1d6   : > { %2085 = vpow2.f32 %v1010_v40  ;;  %v1014_v46 = vmul.f32 1.442695, %v953_v16  ;;  %v1280_v61 = vpack.c.bf16 %v1027_v48, %v1025_v26  ;;  %v1093_v41 = vadd.f32 %v1027_v48, %v1026_v6 }
 0x1d7   : > { %v2070_v44 = vpop.eup %2069  ;;  %2087 = vpow2.f32 %v982_v57  ;;  %v984_v49 = vmul.f32 1.442695, %v938_v25  ;;  %v986_v39 = vmul.f32 1.442695, %v939_v5  ;;  %v2966_v52 = vmul.f32 %v2060_v35, %v3335_v3 }
 0x1d8   : > { %v2072_v30 = vpop.eup %2071  ;;  %2089 = vpow2.f32 %v1012_v45  ;;  %v922_v58 = vpop.permute.xlu1 %921  ;;  %1461 = vmatprep.mubr.bf16.mxu0 %v1280_v61  ;;  %1094 = vadd.xlane.f32.xlu0 %v1093_v41  ;;  %v1028_v17 = vmul.f32 %v2066_v62, %v3336_v42  ;;  %v1029_v26 = vmul.f32 %v2068_v0, %v3337_v47  ;;  %v1042_v55 = vmul.f32 %v2070_v44, %v2323_v2 }
 0x1d9   : > { %2091 = vpow2.f32 %v984_v49  ;;  %v954_v51 = vsub.f32 %v2677_v29, %v922_v58  ;;  %v955_v31 = vsub.f32 %v2679_v11, %v922_v58  ;;  %v2971_v1 = vmul.f32 %v2072_v30, %v2334_v9  ;;  %v2074_v57 = vpop.eup %2073  ;;  %1462 = vmatmul.mubr.bf16.gmra.mrb[4].mxu0 %v1279_v63 }
 0x1da   : > { %2093 = vpow2.f32 %v986_v39  ;;  %v1040_v11 = vmul.f32 %v2058_v59, %v3338_v27  ;;  %v1096_v9 = vadd.f32 %v1029_v26, %v1028_v17  ;;  %v1044_v48 = vmul.f32 %v2074_v57, %v2349_v21 }
 0x1db   : > { %v2076_v53 = vpop.eup %2075  ;;  %v1016_v40 = vmul.f32 1.442695, %v954_v51  ;;  %v1018_v35 = vmul.f32 1.442695, %v955_v31  ;;  %v1288_v29 = vpack.c.bf16 %v2971_v1, %v2966_v52  ;;  %2095 = vpow2.f32 %v1014_v46 }
 0x1dc   : > { %v2078_v18 = vpop.eup %2077  ;;  %v1030_v60 = vmul.f32 %v2076_v53, %v2337_v13  ;;  %1097 = vadd.xlane.f32.xlu1 %v1096_v9  ;;  %v1287_v6 = vpack.c.bf16 %v1042_v55, %v1040_v11  ;;  %v1108_v21 = vadd.f32 %v2929_v32, %v2935_v20  ;;  %v1111_v31 = vadd.f32 %v2946_v14, %v2954_v7  ;;  %v3340_v7 = vld [vmem:[#allocation26_spill] sm:$0xff] }
 0x1dd   : > { %v2080_v54 = vpop.eup %2079  ;;  %2097 = vpow2.f32 %v1016_v40  ;;  %1493 = vmatprep.mubr.bf16.mxu1 %v1288_v29  ;;  %v1031_v16 = vmul.f32 %v2078_v18, %v2353_v23  ;;  %v1114_v42 = vadd.f32 %v2966_v52, %v1040_v11  ;;  %v3339_v20 = vsub.f32 %v2711_v56, %v2714_v50  ;;  %v3346_v29 = vld [vmem:[#allocation32_spill] sm:$0xff]  ;;  %v3348_v18 = vld [vmem:[#allocation31_spill] sm:$0xff]  ;;  %v3349_v9 = vld [vmem:[#allocation34_spill] sm:$0xff] }
 0x1de   : > { %v2082_v37 = vpop.eup %2081  ;;  %2099 = vpow2.f32 %v1018_v35  ;;  %v1281_v59 = vpack.c.bf16 %v1030_v60, %v1028_v17  ;;  %1494 = vmatmul.mubr.bf16.gmra.mrb[4].mxu1 %v1287_v6  ;;  %v1045_v45 = vmul.f32 %v2080_v54, %v2351_v22  ;;  %v3341_v52 = vsub.f32 %v2736_v8, %v3340_v7  ;;  %v3345_v35 = vld [vmem:[#allocation29_spill] sm:$0xff]  ;;  %v3355_v6 = vld [vmem:[#allocation42_spill] sm:$0xff] }
 0x1df   : > { %v2084_v62 = vpop.eup %2083  ;;  %v1099_v25 = vadd.f32 %v1031_v16, %v1030_v60  ;;  %v1282_v5 = vpack.c.bf16 %v1031_v16, %v1029_v26  ;;  %v1032_v0 = vmul.f32 %v2082_v37, %v2365_v33  ;;  %v812_v14 = vmul.f32 1.442695, %v3339_v20  ;;  %v3343_v26 = vld [vmem:[#allocation23_spill] sm:$0xff]  ;;  %v3354_v37 = vld [vmem:[#allocation40_spill] sm:$0xff]  ;;  %v3382_v7 = vld [vmem:[#allocation49_spill] sm:$0xff] }
 0x1e0   : > { %v2086_v10 = vpop.eup %2085  ;;  %v1046_v2 = vmul.f32 %v2084_v62, %v2355_v24  ;;  %v816_v47 = vmul.f32 1.442695, %v3341_v52  ;;  %v3347_v27 = vsub.f32 %v3345_v35, %v3346_v29  ;;  %v3350_v56 = vsub.f32 %v3348_v18, %v3349_v9  ;;  %v3352_v60 = vld [vmem:[#allocation39_spill] sm:$0xff]  ;;  %v1052_v18 = vld [vmem:[#allocation3] sm:$0xff] }
 0x1e1   : > { %v2088_v13 = vpop.eup %2087  ;;  %1100 = vadd.xlane.f32.xlu0 %v1099_v25  ;;  %1469 = vmatprep.mubr.bf16.mxu0 %v1282_v5  ;;  %v1047_v23 = vmul.f32 %v2086_v10, %v2361_v28  ;;  %2101 = vpow2.f32 %v812_v14  ;;  %v3356_v62 = vsub.f32 %v3354_v37, %v3355_v6  ;;  %v3357_v5 = vld [vmem:[#allocation45_spill] sm:$0xff]  ;;  %v3381_v14 = vld [vmem:[#allocation48_spill] sm:$0xff] }
 0x1e2   : > { %v2090_v46 = vpop.eup %2089  ;;  %v1033_v36 = vmul.f32 %v2088_v13, %v2367_v34  ;;  %1470 = vmatmul.mubr.bf16.gmra.mrb[8].mxu0 %v1281_v59  ;;  %v1289_v33 = vpack.c.bf16 %v1046_v2, %v1044_v48  ;;  %2103 = vpow2.f32 %v816_v47  ;;  %v818_v11 = vmul.f32 1.442695, %v3347_v27  ;;  %v3358_v59 = vld [vmem:[#allocation47_spill] sm:$0xff]  ;;  %v3360_v13 = vld [vmem:[#allocation22_spill] sm:$0xff] }
 0x1e3   : > { %v2092_v44 = vpop.eup %2091  ;;  %v1290_v49 = vpack.c.bf16 %v1047_v23, %v1045_v45  ;;  %v820_v50 = vmul.f32 1.442695, %v3350_v56  ;;  %v824_v25 = vmul.f32 1.442695, %v3356_v62  ;;  %v3359_v10 = vsub.f32 %v3357_v5, %v3358_v59  ;;  %v1055_v59 = vld [vmem:[#allocation3 + $0x18] sm:$0xff] }
 0x1e4   : > { %v2094_v39 = vpop.eup %2093  ;;  %v1102_v63 = vadd.f32 %v1033_v36, %v1032_v0  ;;  %v1034_v24 = vmul.f32 %v2092_v44, %v2369_v38  ;;  %v3383_v52 = vsub.f32 %v3381_v14, %v3382_v7  ;;  %v1064_v7 = vld [vmem:[#allocation3 + $0x60] sm:$0xff] }
 0x1e5   : > { %1501 = vmatprep.mubr.bf16.mxu1 %v1290_v49  ;;  %v1035_v30 = vmul.f32 %v2094_v39, %v2376_v43  ;;  %v2096_v58 = vpop.eup %2095  ;;  %v1048_v43 = vmul.f32 %v2090_v46, %v2400_v15 }
 0x1e6   : > { %1103 = vadd.xlane.f32.xlu1 %v1102_v63  ;;  %v1283_v41 = vpack.c.bf16 %v1034_v24, %v1032_v0  ;;  %1502 = vmatmul.mubr.bf16.gmra.mrb[8].mxu1 %v1289_v33  ;;  %v1049_v38 = vmul.f32 %v2096_v58, %v2407_v19  ;;  %v1120_v19 = vadd.f32 %v1045_v45, %v1044_v48  ;;  %v826_v0 = vmul.f32 1.442695, %v3359_v10  ;;  %v3361_v45 = vld [vmem:[#allocation24_spill] sm:$0xff]  ;;  %v3364_v48 = vld [vmem:[#allocation27_spill] sm:$0xff] }
 0x1e7   : > { %v2098_v22 = vpop.eup %2097  ;;  %v1105_v28 = vadd.f32 %v1035_v30, %v1034_v24  ;;  %v1284_v61 = vpack.c.bf16 %v1035_v30, %v1033_v36  ;;  %v3363_v36 = vld [vmem:[#allocation25_spill] sm:$0xff]  ;;  %v3366_v33 = vld [vmem:[#allocation28_spill] sm:$0xff]  ;;  %v3367_v24 = vld [vmem:[#allocation30_spill] sm:$0xff]  ;;  %v842_v47 = vmul.f32 1.442695, %v3383_v52 }
 0x1e8   : > { %v2100_v34 = vpop.eup %2099  ;;  %v1050_v3 = vmul.f32 %v2098_v22, %v2651_v12  ;;  %v1117_v12 = vadd.f32 %v2971_v1, %v1042_v55  ;;  %v1126_v32 = vadd.f32 %v1049_v38, %v1048_v43  ;;  %v3342_v1 = vld [vmem:[#allocation21_spill] sm:$0xff]  ;;  %v3365_v44 = vsub.f32 %v3363_v36, %v3364_v48 }
 0x1e9   : > { %1106 = vadd.xlane.f32.xlu0 %v1105_v28  ;;  %1477 = vmatprep.mubr.bf16.mxu0 %v1284_v61  ;;  %v1051_v51 = vmul.f32 %v2100_v34, %v2655_v4  ;;  %v1123_v4 = vadd.f32 %v1047_v23, %v1046_v2  ;;  %v3344_v53 = vsub.f32 %v3342_v1, %v3343_v26  ;;  %v3351_v55 = vld [vmem:[#allocation37_spill] sm:$0xff]  ;;  %v3370_v28 = vld [vmem:[#allocation35_spill] sm:$0xff] }
 0x1ea   : > { %1109 = vadd.xlane.f32.xlu1 %v1108_v21  ;;  %1478 = vmatmul.mubr.bf16.gmra.mrb[12].mxu0 %v1283_v41  ;;  %v1291_v17 = vpack.c.bf16 %v1050_v3, %v1048_v43  ;;  %v3353_v54 = vsub.f32 %v3351_v55, %v3352_v60  ;;  %v3362_v23 = vsub.f32 %v3360_v13, %v3361_v45  ;;  %v830_v49 = vmul.f32 1.442695, %v3365_v44  ;;  %v3369_v22 = vld [vmem:[#allocation33_spill] sm:$0xff] }
 0x1eb   : > { %v1292_v57 = vpack.c.bf16 %v1051_v51, %v1049_v38  ;;  %v1129_v15 = vadd.f32 %v1051_v51, %v1050_v3  ;;  %v814_v40 = vmul.f32 1.442695, %v3344_v53  ;;  %v2102_v16 = vpop.eup %2101  ;;  %v3368_v30 = vsub.f32 %v3366_v33, %v3367_v24  ;;  %v3372_v3 = vld [vmem:[#allocation36_spill] sm:$0xff]  ;;  %v3373_v38 = vld [vmem:[#allocation38_spill] sm:$0xff]  ;;  %v1053_v55 = vld [vmem:[#allocation3 + $0x8] sm:$0xff] }
 0x1ec   : > { %v822_v8 = vmul.f32 1.442695, %v3353_v54  ;;  %v2104_v2 = vpop.eup %2103  ;;  %v828_v46 = vmul.f32 1.442695, %v3362_v23  ;;  %v3371_v61 = vsub.f32 %v3369_v22, %v3370_v28  ;;  %v3374_v51 = vsub.f32 %v3372_v3, %v3373_v38  ;;  %v1054_v54 = vld [vmem:[#allocation3 + $0x10] sm:$0xff]  ;;  %v1059_v22 = vld [vmem:[#allocation3 + $0x38] sm:$0xff] }
 0x1ed   : > { %1112 = vadd.xlane.f32.xlu0 %v1111_v31  ;;  %1509 = vmatprep.mubr.bf16.mxu1 %v1292_v57  ;;  %2105 = vpow2.f32 %v814_v40  ;;  %v832_v58 = vmul.f32 1.442695, %v3368_v30  ;;  %v3375_v31 = vld [vmem:[#allocation41_spill] sm:$0xff]  ;;  %v3376_v57 = vld [vmem:[#allocation43_spill] sm:$0xff]  ;;  %v1068_v9 = vmul.f32 %v2102_v16, %v1052_v18  ;;  %v1070_v6 = vmul.f32 %v2104_v2, %v1054_v54  ;;  %v1058_v33 = vld [vmem:[#allocation3 + $0x30] sm:$0xff] }
 0x1ee   : > { %1115 = vadd.xlane.f32.xlu1 %v1114_v42  ;;  %1510 = vmatmul.mubr.bf16.gmra.mrb[12].mxu1 %v1291_v17  ;;  %2107 = vpow2.f32 %v818_v11  ;;  %v834_v41 = vmul.f32 1.442695, %v3371_v61  ;;  %v836_v43 = vmul.f32 1.442695, %v3374_v51  ;;  %v3377_v42 = vsub.f32 %v3375_v31, %v3376_v57  ;;  %v1060_v61 = vld [vmem:[#allocation3 + $0x40] sm:$0xff] }
 0x1ef   : > { %2109 = vpow2.f32 %v820_v50 }
 0x1f0   : > { %2111 = vpow2.f32 %v822_v8  ;;  %v838_v17 = vmul.f32 1.442695, %v3377_v42  ;;  %v1062_v42 = vld [vmem:[#allocation3 + $0x50] sm:$0xff] }
 0x1f1   : > { %1118 = vadd.xlane.f32.xlu0 %v1117_v12  ;;  %2113 = vpow2.f32 %v824_v25 }
 0x1f2   : > { %1121 = vadd.xlane.f32.xlu1 %v1120_v19  ;;  %2115 = vpow2.f32 %v826_v0  ;;  %v1056_v0 = vld [vmem:[#allocation3 + $0x20] sm:$0xff] }
 0x1f3   : > { %2117 = vpow2.f32 %v828_v46  ;;  %v1057_v46 = vld [vmem:[#allocation3 + $0x28] sm:$0xff] }
 0x1f4   : > { %2119 = vpow2.f32 %v830_v49 }
 0x1f5   : > { %1124 = vadd.xlane.f32.xlu0 %v1123_v4  ;;  %2121 = vpow2.f32 %v832_v58  ;;  %v3378_v4 = vld [vmem:[#allocation44_spill] sm:$0xff] }
 0x1f6   : > { %1127 = vadd.xlane.f32.xlu1 %v1126_v32  ;;  %2123 = vpow2.f32 %v834_v41  ;;  %v3379_v32 = vld [vmem:[#allocation46_spill] sm:$0xff] }
 0x1f7   : > { %v2106_v39 = vpop.eup %2105  ;;  %2125 = vpow2.f32 %v836_v43  ;;  %v1061_v43 = vld [vmem:[#allocation3 + $0x48] sm:$0xff] }
 0x1f8   : > { %v2108_v63 = vpop.eup %2107  ;;  %2127 = vpow2.f32 %v838_v17  ;;  %v1069_v60 = vmul.f32 %v2106_v39, %v1053_v55  ;;  %v1066_v55 = vld [vmem:[#allocation3 + $0x70] sm:$0xff] }
 0x1f9   : > { %1130 = vadd.xlane.f32.xlu0 %v1129_v15  ;;  %v2110_v34 = vpop.eup %2109  ;;  %v3380_v15 = vsub.f32 %v3378_v4, %v3379_v32 }
 0x1fa   : > { %v3035_v21 = vpop.eup %2111  ;;  %v1072_v23 = vmul.f32 %v2110_v34, %v1056_v0 }
 0x1fb   : > { %v3044_v12 = vpop.eup %2113  ;;  %v840_v20 = vmul.f32 1.442695, %v3380_v15  ;;  %v1073_v49 = vmul.f32 %v3035_v21, %v1057_v46  ;;  %v1063_v15 = vld [vmem:[#allocation3 + $0x58] sm:$0xff] }
 0x1fc   : > { %v3046_v19 = vpop.eup %2115  ;;  %v1074_v58 = vmul.f32 %v3044_v12, %v1058_v33 }
 0x1fd   : > { %v3056_v1 = vpop.eup %2117  ;;  %2129 = vpow2.f32 %v840_v20 }
 0x1fe   : > { %v3058_v26 = vpop.eup %2119  ;;  %2131 = vpow2.f32 %v842_v47  ;;  %v1076_v38 = vmul.f32 %v3056_v1, %v1060_v61 }
 0x1ff   : > { %v3062_v53 = vpop.eup %2121  ;;  %v1077_v4 = vmul.f32 %v3058_v26, %v1061_v43 }
 0x200   : > { %v3064_v40 = vpop.eup %2123 }
 0x201   : > { %v3068_v35 = vpop.eup %2125 }
 0x202   : > { %v3070_v29 = vpop.eup %2127 }
 0x207   : > { %1183 = vperm.xlu1 %2020, %v2102_v16   ;;  %v3074_v27 = vpop.eup %2129  ;;  %v1071_v16 = vmul.f32 %v2108_v63, %v1055_v59 }
 0x208   : > { %v3076_v11 = vpop.eup %2131 }
 0x20b   : > { %1193 = vperm.xlu1 %2020, %v2104_v2  }
 0x20f   : > { %1198 = vperm.xlu1 %2020, %v2108_v63   ;;  %1188 = vperm.xlu0 %2019, %v2106_v39  }
 0x213   : > { %1208 = vperm.xlu1 %2020, %v3035_v21   ;;  %1203 = vperm.xlu0 %2019, %v2110_v34   ;;  %v1075_v21 = vmul.f32 %v3046_v19, %v1059_v22 }
 0x217   : > { %1218 = vperm.xlu1 %2020, %v3046_v19   ;;  %1213 = vperm.xlu0 %2019, %v3044_v12   ;;  %v1078_v19 = vmul.f32 %v3062_v53, %v1062_v42 }
 0x21b   : > { %1228 = vperm.xlu1 %2020, %v3058_v26   ;;  %1223 = vperm.xlu0 %2019, %v3056_v1   ;;  %v1079_v1 = vmul.f32 %v3064_v40, %v1063_v15  ;;  %v1080_v26 = vmul.f32 %v3068_v35, %v1064_v7 }
 0x21f   : > { %1238 = vperm.xlu1 %2020, %v3064_v40   ;;  %1233 = vperm.xlu0 %2019, %v3062_v53  }
 0x223   : > { %1248 = vperm.xlu1 %2020, %v3070_v29   ;;  %1243 = vperm.xlu0 %2019, %v3068_v35   ;;  %v1082_v35 = vmul.f32 %v3074_v27, %v1066_v55 }
 0x227   : > { %1258 = vperm.xlu1 %2020, %v3076_v11   ;;  %1253 = vperm.xlu0 %2019, %v3074_v27  }
 0x253   : > { %v1086_v56 = vpop.xlane.xlu0 %1085 }
 0x254   : > { %v1132_v50 = vadd.f32 %v1086_v56, %v1068_v9  ;;  %v1065_v56 = vld [vmem:[#allocation3 + $0x68] sm:$0xff] }
 0x256   : > { %1149 = vst.msk [vmem:[#allocation3] sm:$0xff] %vm327_vm0, %v1132_v50 }
 0x258   : > { %v1089_v8 = vpop.xlane.xlu1 %1088 }
 0x259   : > { %v1133_v37 = vadd.f32 %v1089_v8, %v1069_v60 }
 0x25b   : > { %1150 = vst.msk [vmem:[#allocation3 + $0x8] sm:$0xff] %vm327_vm0, %v1133_v37  ;;  %v1081_v37 = vmul.f32 %v3070_v29, %v1065_v56 }
 0x25d   : > { %v1585_v5 = vld [vmem:[#allocation3] sm:$0xff] }
 0x25e   : > { %2133 = vrcp.f32 %v1585_v5 }
 0x25f   : > { %v1092_v62 = vpop.xlane.xlu0 %1091 }
 0x260   : > { %v1134_v25 = vadd.f32 %v1092_v62, %v1070_v6  ;;  %v1067_v62 = vld [vmem:[#allocation3 + $0x78] sm:$0xff] }
 0x261   : > { %v1083_v0 = vmul.f32 %v3076_v11, %v1067_v62 }
 0x262   : > { %1151 = vst.msk [vmem:[#allocation3 + $0x10] sm:$0xff] %vm327_vm0, %v1134_v25  ;;  %v1586_v13 = vld [vmem:[#allocation3 + $0x8] sm:$0xff] }
 0x263   : > { %2135 = vrcp.f32 %v1586_v13 }
 0x265   : > { %v1095_v10 = vpop.xlane.xlu0 %1094 }
 0x266   : > { %v1135_v45 = vadd.f32 %v1095_v10, %v1071_v16 }
 0x268   : > { %1152 = vst.msk [vmem:[#allocation3 + $0x18] sm:$0xff] %vm327_vm0, %v1135_v45  ;;  %v2134_v48 = vpop.eup %2133 }
 0x269   : > { %v1587_v2 = vld [vmem:[#allocation3 + $0x10] sm:$0xff]  ;;  %v1098_v36 = vpop.xlane.xlu1 %1097  ;;  %1619 = vperm.xlu0 %2019, %v2134_v48  }
 0x26a   : > { %2137 = vrcp.f32 %v1587_v2  ;;  %v1136_v44 = vadd.f32 %v1098_v36, %v1072_v23 }
 0x26c   : > { %1153 = vst.msk [vmem:[#allocation3 + $0x20] sm:$0xff] %vm327_vm0, %v1136_v44 }
 0x26d   : > { %v2136_v30 = vpop.eup %2135 }
 0x26e   : > { %v1101_v39 = vpop.xlane.xlu0 %1100  ;;  %1624 = vperm.xlu1 %2020, %v2136_v30  }
 0x26f   : > { %v1137_v63 = vadd.f32 %v1101_v39, %v1073_v49  ;;  %v1588_v24 = vld [vmem:[#allocation3 + $0x18] sm:$0xff] }
 0x270   : > { %2139 = vrcp.f32 %v1588_v24 }
 0x271   : > { %1154 = vst.msk [vmem:[#allocation3 + $0x28] sm:$0xff] %vm327_vm0, %v1137_v63 }
 0x273   : > { %v1104_v28 = vpop.xlane.xlu1 %1103  ;;  %v1589_v3 = vld [vmem:[#allocation3 + $0x20] sm:$0xff] }
 0x274   : > { %v1138_v41 = vadd.f32 %v1104_v28, %v1074_v58  ;;  %v2138_v34 = vpop.eup %2137  ;;  %2141 = vrcp.f32 %v1589_v3 }
 0x275   : > { %1629 = vperm.xlu0 %2019, %v2138_v34  }
 0x276   : > { %1155 = vst.msk [vmem:[#allocation3 + $0x30] sm:$0xff] %vm327_vm0, %v1138_v41  ;;  %v1107_v51 = vpop.xlane.xlu0 %1106 }
 0x277   : > { %v1110_v31 = vpop.xlane.xlu1 %1109  ;;  %v1139_v57 = vadd.f32 %v1107_v51, %v1075_v21 }
 0x278   : > { %v1140_v17 = vadd.f32 %v1110_v31, %v1076_v38  ;;  %v1590_v12 = vld [vmem:[#allocation3 + $0x28] sm:$0xff] }
 0x279   : > { %1156 = vst.msk [vmem:[#allocation3 + $0x38] sm:$0xff] %vm327_vm0, %v1139_v57  ;;  %2143 = vrcp.f32 %v1590_v12 }
 0x27a   : > { %1157 = vst.msk [vmem:[#allocation3 + $0x40] sm:$0xff] %vm327_vm0, %v1140_v17  ;;  %v1113_v32 = vpop.xlane.xlu0 %1112  ;;  %v2140_v52 = vpop.eup %2139 }
 0x27b   : > { %v1116_v20 = vpop.xlane.xlu1 %1115  ;;  %v1141_v14 = vadd.f32 %v1113_v32, %v1077_v4  ;;  %1634 = vperm.xlu1 %2020, %v2140_v52  }
 0x27c   : > { %v1142_v47 = vadd.f32 %v1116_v20, %v1078_v19 }
 0x27d   : > { %1158 = vst.msk [vmem:[#allocation3 + $0x48] sm:$0xff] %vm327_vm0, %v1141_v14  ;;  %v1591_v18 = vld [vmem:[#allocation3 + $0x30] sm:$0xff] }
 0x27e   : > { %1159 = vst.msk [vmem:[#allocation3 + $0x50] sm:$0xff] %vm327_vm0, %v1142_v47  ;;  %v1119_v9 = vpop.xlane.xlu0 %1118  ;;  %2145 = vrcp.f32 %v1591_v18  ;;  %v2142_v60 = vpop.eup %2141 }
 0x27f   : > { %v1122_v53 = vpop.xlane.xlu1 %1121  ;;  %v1143_v50 = vadd.f32 %v1119_v9, %v1079_v1  ;;  %1639 = vperm.xlu0 %2019, %v2142_v60  }
 0x280   : > { %v1144_v54 = vadd.f32 %v1122_v53, %v1080_v26  ;;  %v1592_v8 = vld [vmem:[#allocation3 + $0x38] sm:$0xff] }
 0x281   : > { %1160 = vst.msk [vmem:[#allocation3 + $0x58] sm:$0xff] %vm327_vm0, %v1143_v50  ;;  %v1593_v40 = vld [vmem:[#allocation3 + $0x40] sm:$0xff]  ;;  %2147 = vrcp.f32 %v1592_v8 }
 0x282   : > { %1161 = vst.msk [vmem:[#allocation3 + $0x60] sm:$0xff] %vm327_vm0, %v1144_v54  ;;  %v1125_v6 = vpop.xlane.xlu0 %1124  ;;  %2149 = vrcp.f32 %v1593_v40 }
 0x283   : > { %v2144_v25 = vpop.eup %2143  ;;  %v1128_v5 = vpop.xlane.xlu1 %1127  ;;  %v1145_v59 = vadd.f32 %v1125_v6, %v1081_v37 }
 0x284   : > { %v1146_v16 = vadd.f32 %v1128_v5, %v1082_v35  ;;  %1644 = vperm.xlu1 %2020, %v2144_v25   ;;  %v1594_v10 = vld [vmem:[#allocation3 + $0x48] sm:$0xff] }
 0x285   : > { %1162 = vst.msk [vmem:[#allocation3 + $0x68] sm:$0xff] %vm327_vm0, %v1145_v59  ;;  %v1595_v29 = vld [vmem:[#allocation3 + $0x50] sm:$0xff]  ;;  %2151 = vrcp.f32 %v1594_v10 }
 0x286   : > { %1163 = vst.msk [vmem:[#allocation3 + $0x70] sm:$0xff] %vm327_vm0, %v1146_v16  ;;  %v1131_v13 = vpop.xlane.xlu0 %1130  ;;  %2153 = vrcp.f32 %v1595_v29 }
 0x287   : > { %v1147_v27 = vadd.f32 %v1131_v13, %v1083_v0  ;;  %v1184_v60 = vpop.permute.xlu1 %1183 }
 0x288   : > { %v2146_v45 = vpop.eup %2145  ;;  %v1596_v23 = vld [vmem:[#allocation3 + $0x58] sm:$0xff] }
 0x289   : > { %1164 = vst.msk [vmem:[#allocation3 + $0x78] sm:$0xff] %vm327_vm0, %v1147_v27  ;;  %1649 = vperm.xlu0 %2019, %v2146_v45   ;;  %v1597_v46 = vld [vmem:[#allocation3 + $0x60] sm:$0xff]  ;;  %2155 = vrcp.f32 %v1596_v23 }
 0x28a   : > { %2157 = vrcp.f32 %v1597_v46 }
 0x28b   : > { %v2148_v2 = vpop.eup %2147  ;;  %v1194_v16 = vpop.permute.xlu1 %1193 }
 0x28c   : > { %v2150_v36 = vpop.eup %2149  ;;  %1654 = vperm.xlu1 %2020, %v2148_v2   ;;  %v1598_v48 = vld [vmem:[#allocation3 + $0x68] sm:$0xff] }
 0x28d   : > { %1659 = vperm.xlu0 %2019, %v2150_v36   ;;  %v1599_v11 = vld [vmem:[#allocation3 + $0x70] sm:$0xff]  ;;  %2159 = vrcp.f32 %v1598_v48 }
 0x28e   : > { %2161 = vrcp.f32 %v1599_v11  ;;  %v1189_v0 = vpop.permute.xlu0 %1188 }
 0x28f   : > { %v2152_v44 = vpop.eup %2151  ;;  %v1199_v46 = vpop.permute.xlu1 %1198 }
 0x290   : > { %v2154_v49 = vpop.eup %2153  ;;  %1664 = vperm.xlu1 %2020, %v2152_v44   ;;  %v1600_v39 = vld [vmem:[#allocation3 + $0x78] sm:$0xff] }
 0x291   : > { %1669 = vperm.xlu0 %2019, %v2154_v49   ;;  %2163 = vrcp.f32 %v1600_v39 }
 0x292   : > { %v1204_v2 = vpop.permute.xlu0 %1203 }
 0x293   : > { %v2156_v63 = vpop.eup %2155  ;;  %v1209_v36 = vpop.permute.xlu1 %1208 }
 0x294   : > { %v2158_v33 = vpop.eup %2157  ;;  %1674 = vperm.xlu1 %2020, %v2156_v63  }
 0x295   : > { %1679 = vperm.xlu0 %2019, %v2158_v33  }
 0x296   : > { %v1214_v48 = vpop.permute.xlu0 %1213 }
 0x297   : > { %v2160_v24 = vpop.eup %2159  ;;  %v1219_v11 = vpop.permute.xlu1 %1218 }
 0x298   : > { %v2162_v30 = vpop.eup %2161  ;;  %1684 = vperm.xlu1 %2020, %v2160_v24  }
 0x299   : > { %1689 = vperm.xlu0 %2019, %v2162_v30  }
 0x29a   : > { %v1224_v44 = vpop.permute.xlu0 %1223 }
 0x29b   : > { %v2164_v58 = vpop.eup %2163  ;;  %v1229_v49 = vpop.permute.xlu1 %1228 }
 0x29c   : > { %1694 = vperm.xlu1 %2020, %v2164_v58   ;;  %v1261_v58 = vmul.f32 0.0, %v1184_v60 }
 0x29e   : > { %v1234_v39 = vpop.permute.xlu0 %1233 }
 0x29f   : > { %v1928_v22 = vpop.f32.mrb[0].mxu0  ;;  %v3137_v63 = vpop.permute.xlu1 %1238 }
 0x2a0   : > { %v1929_v28 = vpop.f32.mrb[1].mxu0 }
 0x2a1   : > { %v1930_v61 = vadd.f32 %v1929_v28, %v1928_v22  ;;  %v1931_v41 = vpop.f32.mrb[2].mxu0  ;;  %v3148_v28 = vld [vmem:[%s3224_s4] ss:$0 sm:$0xff] }
 0x2a2   : > { %v1932_v34 = vpop.f32.mrb[3].mxu0  ;;  %v3139_v33 = vpop.permute.xlu0 %1243 }
 0x2a3   : > { %v3107_v21 = vadd.f32 %v1932_v34, %v1931_v41  ;;  %v3141_v24 = vpop.permute.xlu1 %1248  ;;  %v1518_v22 = vadd.f32 %v1930_v61, %v1261_v58 }
 0x2a6   : > { %v3143_v30 = vpop.permute.xlu0 %1253 }
 0x2a7   : > { %v1952_v3 = vpop.f32.mrb[0].mxu1 }
 0x2a8   : > { %v1953_v38 = vpop.f32.mrb[1].mxu1 }
 0x2a9   : > { %v3109_v51 = vadd.f32 %v1953_v38, %v1952_v3  ;;  %v1955_v43 = vpop.f32.mrb[2].mxu1  ;;  %v3150_v3 = vpop.permute.xlu1 %1258  ;;  %v1262_v38 = vmul.f32 0.0, %v1189_v0 }
 0x2aa   : > { %v1956_v31 = vpop.f32.mrb[3].mxu1 }
 0x2ab   : > { %v3111_v57 = vadd.f32 %v1956_v31, %v1955_v43  ;;  %v1519_v61 = vadd.f32 %v3107_v21, %v1262_v38 }
 0x2ac   : > { %v1934_v42 = vpop.f32.mrb[4].mxu0 }
 0x2ad   : > { %v1935_v17 = vpop.f32.mrb[5].mxu0 }
 0x2ae   : > { %v3113_v12 = vadd.f32 %v1935_v17, %v1934_v42  ;;  %v1937_v4 = vpop.f32.mrb[6].mxu0  ;;  %v1263_v42 = vmul.f32 0.0, %v1194_v16 }
 0x2af   : > { %v1938_v19 = vpop.f32.mrb[7].mxu0 }
 0x2b0   : > { %v3115_v32 = vadd.f32 %v1938_v19, %v1937_v4  ;;  %v1520_v19 = vadd.f32 %v3113_v12, %v1263_v42  ;;  %v1272_v42 = vmul.f32 0.0, %v3137_v63 }
 0x2b1   : > { %v1958_v15 = vpop.f32.mrb[4].mxu1 }
 0x2b2   : > { %v1959_v20 = vpop.f32.mrb[5].mxu1 }
 0x2b3   : > { %v3117_v14 = vadd.f32 %v1959_v20, %v1958_v15  ;;  %v1961_v7 = vpop.f32.mrb[6].mxu1 }
 0x2b4   : > { %v1962_v52 = vpop.f32.mrb[7].mxu1 }
 0x2b5   : > { %v1940_v47 = vpop.f32.mrb[8].mxu0  ;;  %v3119_v1 = vadd.f32 %v1962_v52, %v1961_v7 }
 0x2b6   : > { %v1941_v18 = vpop.f32.mrb[9].mxu0 }
 0x2b7   : > { %v3121_v26 = vadd.f32 %v1941_v18, %v1940_v47  ;;  %v1943_v9 = vpop.f32.mrb[10].mxu0  ;;  %v1264_v18 = vmul.f32 0.0, %v1199_v46 }
 0x2b8   : > { %v1944_v56 = vpop.f32.mrb[11].mxu0 }
 0x2b9   : > { %v3123_v53 = vadd.f32 %v1944_v56, %v1943_v9  ;;  %v1964_v50 = vpop.f32.mrb[8].mxu1  ;;  %v1521_v21 = vadd.f32 %v3115_v32, %v1264_v18 }
 0x2ba   : > { %v1965_v55 = vpop.f32.mrb[9].mxu1 }
 0x2bb   : > { %v3125_v54 = vadd.f32 %v1965_v55, %v1964_v50  ;;  %v1967_v8 = vpop.f32.mrb[10].mxu1  ;;  %v1265_v50 = vmul.f32 0.0, %v1204_v2  ;;  %v1269_v2 = vmul.f32 0.0, %v1224_v44 }
 0x2bc   : > { %v1968_v37 = vpop.f32.mrb[11].mxu1 }
 0x2bd   : > { %v1946_v40 = vpop.f32.mrb[12].mxu0  ;;  %v3127_v35 = vadd.f32 %v1968_v37, %v1967_v8  ;;  %v1522_v12 = vadd.f32 %v3121_v26, %v1265_v50  ;;  %v1266_v8 = vmul.f32 0.0, %v1209_v36  ;;  %v1526_v58 = vadd.f32 %v3109_v51, %v1269_v2 }
 0x2be   : > { %v1947_v6 = vpop.f32.mrb[13].mxu0 }
 0x2bf   : > { %v3129_v62 = vadd.f32 %v1947_v6, %v1946_v40  ;;  %v1949_v25 = vpop.f32.mrb[14].mxu0 }
 0x2c0   : > { %v1950_v5 = vpop.f32.mrb[15].mxu0 }
 0x2c1   : > { %v3131_v59 = vadd.f32 %v1950_v5, %v1949_v25  ;;  %v1970_v10 = vpop.f32.mrb[12].mxu1  ;;  %v1523_v25 = vadd.f32 %v3123_v53, %v1266_v8 }
 0x2c2   : > { %v1971_v29 = vpop.f32.mrb[13].mxu1 }
 0x2c3   : > { %v3133_v13 = vadd.f32 %v1971_v29, %v1970_v10  ;;  %v1973_v27 = vpop.f32.mrb[14].mxu1  ;;  %v1267_v10 = vmul.f32 0.0, %v1214_v48 }
 0x2c4   : > { %v1974_v45 = vpop.f32.mrb[15].mxu1 }
 0x2c5   : > { %v3135_v23 = vadd.f32 %v1974_v45, %v1973_v27  ;;  %v1524_v26 = vadd.f32 %v3129_v62, %v1267_v10  ;;  %v1268_v27 = vmul.f32 0.0, %v1219_v11 }
 0x2c7   : > { %v1525_v53 = vadd.f32 %v3131_v59, %v1268_v27 }
 0x2e8   : > { %v1620_v41 = vpop.permute.xlu0 %1619 }
 0x2e9   : > { %v1697_v34 = vmul.f32 %v1620_v41, %v1518_v22  ;;  %v1270_v41 = vmul.f32 0.0, %v1229_v49 }
 0x2eb   : > { %v1720_v43 = vadd.f32 %v3148_v28, %v1697_v34 }
 0x2ed   : > { %v1736_v31 = vmax.f32 %v1720_v43, 0.0  ;;  %v1625_v17 = vpop.permute.xlu1 %1624  ;;  %v1271_v43 = vmul.f32 0.0, %v1234_v39  ;;  %v1273_v39 = vmul.f32 0.0, %v3139_v33 }
 0x2ee   : > { %v1698_v4 = vmul.f32 %v1625_v17, %v1519_v61  ;;  %v1527_v61 = vadd.f32 %v3111_v57, %v1270_v41  ;;  %v1529_v57 = vadd.f32 %v3119_v1, %v1272_v42 }
 0x2ef   : > { %1752 = vst [vmem:[%s3158_s30] sm:$0xff] %v1736_v31  ;;  %v1528_v59 = vadd.f32 %v3117_v14, %v1271_v43  ;;  %v1530_v14 = vadd.f32 %v3125_v54, %v1273_v39 }
 0x2f0   : > { %v1721_v15 = vadd.f32 %v3148_v28, %v1698_v4 }
 0x2f2   : > { %v1737_v52 = vmax.f32 %v1721_v15, 0.0 }
 0x2f4   : > { %v1630_v20 = vpop.permute.xlu0 %1629  ;;  %1753 = vst [vmem:[%s3158_s30 + $0x8] sm:$0xff] %v1737_v52  ;;  %v1274_v52 = vmul.f32 0.0, %v3141_v24 }
 0x2f5   : > { %v1699_v7 = vmul.f32 %v1630_v20, %v1520_v19 }
 0x2f7   : > { %v1722_v47 = vadd.f32 %v3148_v28, %v1699_v7 }
 0x2f9   : > { %v1738_v9 = vmax.f32 %v1722_v47, 0.0 }
 0x2fa   : > { %v1635_v56 = vpop.permute.xlu1 %1634 }
 0x2fb   : > { %1754 = vst [vmem:[%s3158_s30 + $0x10] sm:$0xff] %v1738_v9  ;;  %v1700_v55 = vmul.f32 %v1635_v56, %v1521_v21  ;;  %v1275_v9 = vmul.f32 0.0, %v3143_v30  ;;  %v1531_v56 = vadd.f32 %v3127_v35, %v1274_v52 }
 0x2fd   : > { %v1723_v60 = vadd.f32 %v3148_v28, %v1700_v55  ;;  %v1532_v50 = vadd.f32 %v3133_v13, %v1275_v9 }
 0x2fe   : > { %v1640_v37 = vpop.permute.xlu0 %1639 }
 0x2ff   : > { %v1739_v40 = vmax.f32 %v1723_v60, 0.0  ;;  %v1701_v6 = vmul.f32 %v1640_v37, %v1522_v12  ;;  %v1276_v12 = vmul.f32 0.0, %v3150_v3 }
 0x301   : > { %1755 = vst [vmem:[%s3158_s30 + $0x18] sm:$0xff] %v1739_v40  ;;  %v1724_v5 = vadd.f32 %v3148_v28, %v1701_v6  ;;  %v1533_v40 = vadd.f32 %v3135_v23, %v1276_v12 }
 0x303   : > { %v1645_v32 = vpop.permute.xlu1 %1644  ;;  %v1740_v0 = vmax.f32 %v1724_v5, 0.0 }
 0x304   : > { %v1702_v16 = vmul.f32 %v1645_v32, %v1523_v25 }
 0x305   : > { %1756 = vst [vmem:[%s3158_s30 + $0x20] sm:$0xff] %v1740_v0 }
 0x306   : > { %v1725_v29 = vadd.f32 %v3148_v28, %v1702_v16 }
 0x308   : > { %v1741_v45 = vmax.f32 %v1725_v29, 0.0  ;;  %v1650_v46 = vpop.permute.xlu0 %1649 }
 0x309   : > { %v1703_v36 = vmul.f32 %v1650_v46, %v1524_v26 }
 0x30a   : > { %1757 = vst [vmem:[%s3158_s30 + $0x28] sm:$0xff] %v1741_v45 }
 0x30b   : > { %v1726_v22 = vadd.f32 %v3148_v28, %v1703_v36  ;;  %v1655_v48 = vpop.permute.xlu1 %1654 }
 0x30c   : > { %v1704_v34 = vmul.f32 %v1655_v48, %v1525_v53  ;;  %v1660_v38 = vpop.permute.xlu0 %1659 }
 0x30d   : > { %v1742_v62 = vmax.f32 %v1726_v22, 0.0  ;;  %v1705_v11 = vmul.f32 %v1660_v38, %v1526_v58 }
 0x30e   : > { %v1727_v44 = vadd.f32 %v3148_v28, %v1704_v34 }
 0x30f   : > { %1758 = vst [vmem:[%s3158_s30 + $0x30] sm:$0xff] %v1742_v62  ;;  %v1728_v51 = vadd.f32 %v3148_v28, %v1705_v11  ;;  %v1665_v31 = vpop.permute.xlu1 %1664 }
 0x310   : > { %v1743_v49 = vmax.f32 %v1727_v44, 0.0  ;;  %v1706_v17 = vmul.f32 %v1665_v31, %v1527_v61  ;;  %v1670_v4 = vpop.permute.xlu0 %1669 }
 0x311   : > { %v1744_v19 = vmax.f32 %v1728_v51, 0.0  ;;  %v1707_v15 = vmul.f32 %v1670_v4, %v1528_v59 }
 0x312   : > { %1759 = vst [vmem:[%s3158_s30 + $0x38] sm:$0xff] %v1743_v49  ;;  %v1729_v20 = vadd.f32 %v3148_v28, %v1706_v17 }
 0x313   : > { %1760 = vst [vmem:[%s3158_s30 + $0x40] sm:$0xff] %v1744_v19  ;;  %v1730_v7 = vadd.f32 %v3148_v28, %v1707_v15  ;;  %v1675_v63 = vpop.permute.xlu1 %1674 }
 0x314   : > { %v1745_v47 = vmax.f32 %v1729_v20, 0.0  ;;  %v1708_v18 = vmul.f32 %v1675_v63, %v1529_v57  ;;  %v1680_v33 = vpop.permute.xlu0 %1679 }
 0x315   : > { %v1746_v21 = vmax.f32 %v1730_v7, 0.0  ;;  %v1709_v1 = vmul.f32 %v1680_v33, %v1530_v14 }
 0x316   : > { %1761 = vst [vmem:[%s3158_s30 + $0x48] sm:$0xff] %v1745_v47  ;;  %v1731_v54 = vadd.f32 %v3148_v28, %v1708_v18 }
 0x317   : > { %1762 = vst [vmem:[%s3158_s30 + $0x50] sm:$0xff] %v1746_v21  ;;  %v1732_v55 = vadd.f32 %v3148_v28, %v1709_v1  ;;  %v1685_v24 = vpop.permute.xlu1 %1684 }
 0x318   : > { %v1747_v60 = vmax.f32 %v1731_v54, 0.0  ;;  %v1710_v30 = vmul.f32 %v1685_v24, %v1531_v56  ;;  %v1690_v8 = vpop.permute.xlu0 %1689 }
 0x319   : > { %v1748_v37 = vmax.f32 %v1732_v55, 0.0  ;;  %v1711_v35 = vmul.f32 %v1690_v8, %v1532_v50 }
 0x31a   : > { %1763 = vst [vmem:[%s3158_s30 + $0x58] sm:$0xff] %v1747_v60  ;;  %v1733_v6 = vadd.f32 %v3148_v28, %v1710_v30 }
 0x31b   : > { %1764 = vst [vmem:[%s3158_s30 + $0x60] sm:$0xff] %v1748_v37  ;;  %v1734_v13 = vadd.f32 %v3148_v28, %v1711_v35  ;;  %v1695_v25 = vpop.permute.xlu1 %1694 }
 0x31c   : > { %v1749_v5 = vmax.f32 %v1733_v6, 0.0  ;;  %v1712_v32 = vmul.f32 %v1695_v25, %v1533_v40 }
 0x31d   : > { %v1750_v16 = vmax.f32 %v1734_v13, 0.0 }
 0x31e   : > { %1765 = vst [vmem:[%s3158_s30 + $0x68] sm:$0xff] %v1749_v5  ;;  %v1735_v3 = vadd.f32 %v3148_v28, %v1712_v32 }
 0x31f   : > { %1766 = vst [vmem:[%s3158_s30 + $0x70] sm:$0xff] %v1750_v16 }
 0x320   : > { %v1751_v10 = vmax.f32 %v1735_v3, 0.0 }
 0x322   : > { %1767 = vst [vmem:[%s3158_s30 + $0x78] sm:$0xff] %v1751_v10 }
 0x323 PF: > { %s15_s20 = sadd.s32 1, %s2187_s20   ;;  %s3384_s18 = smov %s2183_s19 }
 0x324   : > { %p12_p6 = scmp.ge.s32.totalorder %s15_s20, 4   ;;  %s3385_s19 = smov %s3387_s21 }
 0x326   :  { %14 = sbr.rel (!%p12_p6) target bundleno = 2 (0x2), region = 87 }

// kernel: encoder_forward.11
= control target key start
LH: loop header
LB: loop body
LE: loop exit
PB: predicated region body
PF: predicated region fallthrough
CT: control target
= control target key end

     0   :  { %10 = vsyncpa [#allocation5], 0  ;;  %s3395_s0 = inlined_call_operand.vmem [shape: s8[256,256], index: 0, kind: input, shape index: {}]   ;;  %s3396_s1 = inlined_call_operand.vmem [shape: bf16[256,128], index: 1, kind: input, shape index: {}]   ;;  %s3397_s2 = inlined_call_operand.vmem [shape: f32[1,256], index: 2, kind: input, shape index: {}]   ;;  %s3398_s3 = inlined_call_operand.vmem [shape: f32[256,1], index: 3, kind: input, shape index: {}]   ;;  %s3399_s4 = inlined_call_operand.vmem [shape: f32[1,128], index: 4, kind: input, shape index: {}]   ;;  %s3400_s5 = inlined_call_operand.hbm [shape: f32[256,128], index: 5, kind: output, shape index: {}]  }
   0x1   :  { %12 = vsyncpa [#allocation5 + $0x1], 0  ;;  %s2318_s18 = smov 0   ;;  %s2320_s19 = smov 0  }
   0x2   :  { %s2322_s20 = smov 0   ;;  %s2324_s21 = smov 0  }
   0x3   :  { %s2326_s22 = smov 0   ;;  %s2328_s23 = smov 0  }
   0x4 LB: > { %s1879_s24 = sadd.s32 4294967295, %s2280_s23   ;;  %s1880_s25 = sadd.s32 4294967294, %s2280_s23   ;;  %s2280_s23 = sphi %s2328_s23, %s18_s23   ;;  %s2276_s22 = sphi %s2326_s22, %s3565_s22   ;;  %s2272_s21 = sphi %s2324_s21, %s3564_s21   ;;  %s2268_s20 = sphi %s2322_s20, %s3563_s20   ;;  %s2264_s19 = sphi %s2320_s19, %s3562_s19   ;;  %s2260_s18 = sphi %s2318_s18, %s3561_s18  }
   0x5   : > { %s30_s26 = sadd.s32 1, %s2276_s22  ;;  %s164_s27 = sadd.s32 1, %s2268_s20 }
   0x6   : > { %p32_p0 = scmp.ge.s32.totalorder %s30_s26, 2  ;;  %p174_p1 = scmp.ne.s32.totalorder %s2268_s20, %s2264_s19 }
   0x7   : > { %p175_p2 = scmp.eq.s32.totalorder %s1879_s24, 1  ;;  %p180_p3 = scmp.ne.s32.totalorder %s2264_s19, %s2260_s18 }
   0x8   : > { %s3567_s26 = smov (%p32_p0, %s30_s26), 0  ;;  %p181_p5 = scmp.eq.s32.totalorder %s1880_s25, 1 }
   0x9   : > { %p2358_p4 = por %p175_p2, %p174_p1  ;;  %s161_s29 = ssub.s32 %s2276_s22, %s3567_s26 }
   0xa   : > { %p1885_p6 = scmp.ge.s32.totalorder %s2280_s23, 1  ;;  %p162_p7 = scmp.eq.s32.totalorder %s161_s29, 0 }
   0xb   : > { %p2365_p8 = por %p181_p5, %p180_p3  ;;  %p243_p9 = scmp.lt.s32.totalorder %s2280_s23, 3 }
   0xc   : > { %s2371_s6 = scalar_select %p162_p7, %s2268_s20, %s164_s27  }
   0xd   : > { %p244_p10 = pnand %p1885_p6, %p243_p9 }
   0xf   : > { %247 = sbr.rel (%p244_p10) target bundleno = 823 (0x337), region = 40 }
  0x16   : > { %s1890_s7 = sshll.u32 %s2272_s21, 4  ;;  %v2282_v0 = vmov 0   ;;  %vm325_vm0 = vcmask 7168   ;;  %v2283_v17 = vmov -1e+30   ;;  %s1887_s12 = sshll.u32 %s2272_s21, 2  ;;  %v544_v18 = vlaneseq }
  0x17   : > { %2057 = vset.pattern.permute.xlu1 %v2282_v0  ;;  %2056 = vset.pattern.permute.xlu0 %v2282_v0  ;;  %p314_p11 = scmp.lt.s32.totalorder %s1890_s7, 31  ;;  %326 = vst.msk [vmem:[#allocation2] sm:$0xff] %vm325_vm0, %v2283_v17  ;;  %327 = vst.msk [vmem:[#allocation2 + $0x8] sm:$0xff] %vm325_vm0, %v2283_v17  ;;  %p292_p12 = scmp.lt.s32.totalorder %s1887_s12, 7  ;;  %v462_v24 = vld [vmem:[%s3397_s2] sm:$0x3] }
  0x18   : > { %328 = vst.msk [vmem:[#allocation2 + $0x10] sm:$0xff] %vm325_vm0, %v2283_v17  ;;  %329 = vst.msk [vmem:[#allocation2 + $0x18] sm:$0xff] %vm325_vm0, %v2283_v17  ;;  %v545_v19 = vshrl.u32 %v544_v18, 7  ;;  %s287_s29 = sand.u32 1, %s2264_s19   ;;  %s2285_s17 = smov [#allocation4]  }
  0x19   : > { %s3569_s7 = smov (!%p314_p11, %s1890_s7), 31  ;;  %330 = vst.msk [vmem:[#allocation2 + $0x20] sm:$0xff] %vm325_vm0, %v2283_v17  ;;  %331 = vst.msk [vmem:[#allocation2 + $0x28] sm:$0xff] %vm325_vm0, %v2283_v17  ;;  %s3571_s12 = smov (!%p292_p12, %s1887_s12), 7 }
  0x1a   : > { %s1891_s8 = sshll.u32 %s3569_s7, 3  ;;  %332 = vst.msk [vmem:[#allocation2 + $0x30] sm:$0xff] %vm325_vm0, %v2283_v17  ;;  %333 = vst.msk [vmem:[#allocation2 + $0x38] sm:$0xff] %vm325_vm0, %v2283_v17  ;;  %s1914_s13 = sshll.u32 %s3571_s12, 4  ;;  %v546_v22 = vsub.s32 0, %v545_v19  ;;  %v550_v25 = vsub.s32 1, %v545_v19 }
  0x1b   : > { %s317_s11 = scalar_lea.vmem %s3398_s3, %s1891_s8  ;;  %334 = vst.msk [vmem:[#allocation2 + $0x40] sm:$0xff] %vm325_vm0, %v2283_v17  ;;  %335 = vst.msk [vmem:[#allocation2 + $0x48] sm:$0xff] %vm325_vm0, %v2283_v17  ;;  %s2397_s16 = scalar_lea.vmem %s3395_s0, %s1914_s13 }
  0x1c   : > { %v454_v1 = vld [vmem:[%s317_s11 + $0x40] sm:$0xff]  ;;  %v455_v3 = vld [vmem:[%s317_s11 + $0x48] sm:$0xff]  ;;  %v449_v5 = vld [vmem:[%s317_s11 + $0x18] sm:$0xff]  ;;  %336 = vst.msk [vmem:[#allocation2 + $0x50] sm:$0xff] %vm325_vm0, %v2283_v17  ;;  %v2406_v30 = vrot.slane %v462_v24, %v546_v22  ;;  %v2408_v35 = vrot.slane %v462_v24, %v550_v25  ;;  %s1886_s7 = sshll.u32 %s287_s29, 7  ;;  %s2206_s24 = sshll.u32 %s2285_s17, 4  ;;  %s2207_s24 = int_to_ptr.vmem [resolvable:$false] %s2206_s24 }
  0x1d   : > { %v446_v2 = vld [vmem:[%s317_s11] sm:$0xff]  ;;  %505 = vperm.xlu1 %2057, %v454_v1   ;;  %v447_v4 = vld [vmem:[%s317_s11 + $0x8] sm:$0xff]  ;;  %v448_v6 = vld [vmem:[%s317_s11 + $0x10] sm:$0xff]  ;;  %337 = vst.msk [vmem:[#allocation2 + $0x58] sm:$0xff] %vm325_vm0, %v2283_v17  ;;  %s3286_s10 = scalar_lea.vmem [#allocation4], %s1886_s7  ;;  %s2208_s25 = scalar_lea.vmem %s2207_s24, 4096 }
  0x1e   : > { %465 = vperm.xlu0 %2056, %v446_v2   ;;  %v457_v7 = vld [vmem:[%s317_s11 + $0x58] sm:$0xff]  ;;  %v456_v8 = vld [vmem:[%s317_s11 + $0x50] sm:$0xff]  ;;  %v451_v9 = vld [vmem:[%s317_s11 + $0x28] sm:$0xff]  ;;  %338 = vst.msk [vmem:[#allocation2 + $0x60] sm:$0xff] %vm325_vm0, %v2283_v17  ;;  %s1764_s12 = sshll.u32 %s3286_s10, 4  ;;  %s3343_s12 = int_to_ptr.vmem [resolvable:$true] %s1764_s12 }
  0x1f   : > { %v450_v10 = vld [vmem:[%s317_s11 + $0x20] sm:$0xff]  ;;  %v459_v11 = vld [vmem:[%s317_s11 + $0x68] sm:$0xff]  ;;  %v453_v13 = vld [vmem:[%s317_s11 + $0x38] sm:$0xff]  ;;  %339 = vst.msk [vmem:[#allocation2 + $0x68] sm:$0xff] %vm325_vm0, %v2283_v17  ;;  %p2209_p2 = scmp.lt.s32.totalorder %s3343_s12, %s2207_s24 }
  0x20   : > { %v458_v12 = vld [vmem:[%s317_s11 + $0x60] sm:$0xff]  ;;  %v452_v14 = vld [vmem:[%s317_s11 + $0x30] sm:$0xff]  ;;  %v461_v15 = vld [vmem:[%s317_s11 + $0x78] sm:$0xff]  ;;  %340 = vst.msk [vmem:[#allocation2 + $0x70] sm:$0xff] %vm325_vm0, %v2283_v17 }
  0x21   : > { %510 = vperm.xlu1 %2057, %v455_v3   ;;  %v460_v16 = vld [vmem:[%s317_s11 + $0x70] sm:$0xff]  ;;  %341 = vst.msk [vmem:[#allocation2 + $0x78] sm:$0xff] %vm325_vm0, %v2283_v17  ;;  %v374_v20 = vld [vmem:[%s2397_s16] sm:$0xff]  ;;  %v375_v21 = vld [vmem:[%s2397_s16 + $0x8] sm:$0xff]  ;;  %s1915_s11 = sshll.u32 %s2272_s21, 11  ;;  %s3349_s21 = scalar_lea.sflag [#allocation5], %s287_s29 }
  0x22   : > { %470 = vperm.xlu0 %2056, %v447_v4   ;;  %v378_v23 = vld [vmem:[%s2397_s16 + $0x20] sm:$0xff]  ;;  %v382_v26 = vunpack.c.0.s8 %v374_v20  ;;  %v383_v27 = vunpack.c.0.s8 %v375_v21  ;;  %v379_v28 = vld [vmem:[%s2397_s16 + $0x28] sm:$0xff]  ;;  %v384_v31 = vunpack.c.1.s8 %v374_v20  ;;  %v385_v32 = vunpack.c.1.s8 %v375_v21  ;;  %v376_v43 = vld [vmem:[%s2397_s16 + $0x10] sm:$0xff]  ;;  %s3341_s15 = scalar_lea.hbm %s3400_s5, %s1915_s11 }
  0x23   : > { %v398_v29 = vunpack.c.0.s8 %v378_v23  ;;  %v399_v33 = vunpack.c.0.s8 %v379_v28  ;;  %v400_v34 = vunpack.c.1.s8 %v378_v23  ;;  %v401_v38 = vunpack.c.1.s8 %v379_v28  ;;  %v2418_v44 = vld [vmem:[%s2397_s16 + $0x18] sm:$0xff]  ;;  %v2432_v57 = vld [vmem:[%s2397_s16 + $0x30] sm:$0xff] }
  0x24   : > { %v2410_v36 = vcvt.s32.f32 %v382_v26  ;;  %v2412_v37 = vcvt.s32.f32 %v383_v27  ;;  %v386_v40 = vunpack.c.2.s8 %v374_v20  ;;  %v387_v41 = vunpack.c.2.s8 %v375_v21  ;;  %v2435_v58 = vld [vmem:[%s2397_s16 + $0x38] sm:$0xff]  ;;  %s2202_s16 = scalar_lea.vmem %s3343_s12, 2048 }
  0x25   : > { %480 = vperm.xlu1 %2057, %v449_v5   ;;  %v2414_v39 = vcvt.s32.f32 %v398_v29  ;;  %v388_v42 = vunpack.c.3.s8 %v374_v20  ;;  %v402_v45 = vunpack.c.2.s8 %v378_v23  ;;  %v403_v46 = vunpack.c.2.s8 %v379_v28  ;;  %p2203_p13 = scmp.ne.s32.totalorder %s3343_s12, %s2202_s16  ;;  %p2210_p3 = scmp.lt.s32.totalorder %s2208_s25, %s2202_s16 }
  0x26   : > { %475 = vperm.xlu0 %2056, %v448_v6   ;;  %3449 = vst [vmem:[#allocation7_spill] sm:$0xff] %v2410_v36  ;;  %3450 = vst [vmem:[#allocation8_spill] sm:$0xff] %v2412_v37  ;;  %v389_v47 = vunpack.c.3.s8 %v375_v21  ;;  %v404_v48 = vunpack.c.3.s8 %v378_v23  ;;  %v2420_v49 = vcvt.s32.f32 %v384_v31  ;;  %v2422_v50 = vcvt.s32.f32 %v385_v32 }
  0x27   : > { %3451 = vst [vmem:[#allocation9_spill] sm:$0xff] %v2414_v39  ;;  %v2424_v51 = vcvt.s32.f32 %v399_v33  ;;  %v2426_v52 = vcvt.s32.f32 %v400_v34  ;;  %v2428_v53 = vcvt.s32.f32 %v401_v38  ;;  %v390_v54 = vunpack.c.0.s8 %v376_v43  ;;  %p2204_p0 = pnand %p2203_p13, %p2358_p4  ;;  %p2211_p5 = por %p2210_p3, %p2209_p2 }
  0x28   : > { %3452 = vst [vmem:[#allocation10_spill] sm:$0xff] %v2420_v49  ;;  %3453 = vst [vmem:[#allocation11_spill] sm:$0xff] %v2422_v50  ;;  %v391_v55 = vunpack.c.0.s8 %v2418_v44  ;;  %v405_v56 = vunpack.c.3.s8 %v379_v28  ;;  %v2437_v59 = vcvt.s32.f32 %v386_v40  ;;  %v2439_v60 = vcvt.s32.f32 %v387_v41 }
  0x29   : > { %520 = vperm.xlu1 %2057, %v457_v7   ;;  %3454 = vst [vmem:[#allocation12_spill] sm:$0xff] %v2424_v51  ;;  %3455 = vst [vmem:[#allocation13_spill] sm:$0xff] %v2426_v52  ;;  %v2441_v61 = vcvt.s32.f32 %v388_v42  ;;  %v392_v62 = vunpack.c.1.s8 %v376_v43  ;;  %v2443_v63 = vcvt.s32.f32 %v402_v45  ;;  %v2445_v0 = vcvt.s32.f32 %v403_v46  ;;  %p2205_p1 = pneg %p2204_p0 }
  0x2a   : > { %515 = vperm.xlu0 %2056, %v456_v8   ;;  %3456 = vst [vmem:[#allocation14_spill] sm:$0xff] %v2428_v53  ;;  %3457 = vst [vmem:[#allocation15_spill] sm:$0xff] %v2437_v59  ;;  %v2447_v1 = vcvt.s32.f32 %v389_v47  ;;  %v2449_v2 = vcvt.s32.f32 %v404_v48  ;;  %v406_v3 = vunpack.c.0.s8 %v2432_v57  ;;  %v407_v4 = vunpack.c.0.s8 %v2435_v58 }
  0x2b   : > { %3458 = vst [vmem:[#allocation16_spill] sm:$0xff] %v2439_v60  ;;  %3459 = vst [vmem:[#allocation17_spill] sm:$0xff] %v2441_v61  ;;  %v393_v5 = vunpack.c.1.s8 %v2418_v44  ;;  %v408_v6 = vunpack.c.1.s8 %v2432_v57  ;;  %vm650_vm1 = vcmp.gt.f32.partialorder %v2410_v36, 0.0  ;;  %v2456_v7 = vcvt.s32.f32 %v390_v54  ;;  %p2212_p6 = pnand %p2211_p5, %p2205_p1 }
  0x2c   : > { %3460 = vst [vmem:[#allocation18_spill] sm:$0xff] %v2443_v63  ;;  %3461 = vst [vmem:[#allocation19_spill] sm:$0xff] %v2445_v0  ;;  %v2458_v8 = vcvt.s32.f32 %v391_v55  ;;  %vm651_vm2 = vcmp.gt.f32.partialorder %v2412_v37, 0.0  ;;  %vm666_vm3 = vcmp.gt.f32.partialorder %v2414_v39, 0.0  ;;  %v397_v20 = vunpack.c.3.s8 %v2418_v44 }
  0x2d   : > { %490 = vperm.xlu1 %2057, %v451_v9   ;;  %3462 = vst [vmem:[#allocation20_spill] sm:$0xff] %v2447_v1  ;;  %3463 = vst [vmem:[#allocation21_spill] sm:$0xff] %v2456_v7  ;;  %v2460_v9 = vcvt.s32.f32 %v405_v56  ;;  %vm652_vm4 = vcmp.gt.f32.partialorder %v2420_v49, 0.0  ;;  %v2475_v21 = vcvt.s32.f32 %v406_v3  ;;  %v2477_v22 = vcvt.s32.f32 %v407_v4 }
  0x2e   : > { %485 = vperm.xlu0 %2056, %v450_v10   ;;  %3464 = vst [vmem:[#allocation22_spill] sm:$0xff] %v2458_v8  ;;  %v409_v10 = vunpack.c.1.s8 %v2435_v58  ;;  %v2479_v23 = vcvt.s32.f32 %v393_v5  ;;  %v2481_v24 = vcvt.s32.f32 %v408_v6  ;;  %vm653_vm5 = vcmp.gt.f32.partialorder %v2422_v50, 0.0 }
  0x2f   : > { %vm667_vm6 = vcmp.gt.f32.partialorder %v2424_v51, 0.0  ;;  %v410_v41 = vunpack.c.2.s8 %v2432_v57  ;;  %v411_v42 = vunpack.c.2.s8 %v2435_v58  ;;  %vm654_vm7 = vcmp.gt.f32.partialorder %v2437_v59, 0.0 }
  0x30   : > { %v2487_v28 = vcvt.s32.f32 %v409_v10  ;;  %vm655_vm8 = vcmp.gt.f32.partialorder %v2439_v60, 0.0  ;;  %vm668_vm9 = vcmp.gt.f32.partialorder %v2426_v52, 0.0  ;;  %vm669_vm10 = vcmp.gt.f32.partialorder %v2428_v53, 0.0 }
  0x31   : > { %530 = vperm.xlu1 %2057, %v459_v11   ;;  %vm670_vm11 = vcmp.gt.f32.partialorder %v2443_v63, 0.0  ;;  %vm671_vm12 = vcmp.gt.f32.partialorder %v2445_v0, 0.0  ;;  %vm656_vm13 = vcmp.gt.f32.partialorder %v2441_v61, 0.0  ;;  %vm657_vm14 = vcmp.gt.f32.partialorder %v2447_v1, 0.0 }
  0x32   : > { %525 = vperm.xlu0 %2056, %v458_v12   ;;  %vm658_vm15 = vcmp.gt.f32.partialorder %v2456_v7, 0.0 }
  0x35   : > { %500 = vperm.xlu1 %2057, %v453_v13   ;;  %v2463_v13 = vcvt.s32.f32 %v392_v62 }
  0x36   : > { %495 = vperm.xlu0 %2056, %v452_v14   ;;  %v394_v14 = vunpack.c.2.s8 %v376_v43 }
  0x38   : > { %v2491_v33 = vcvt.s32.f32 %v394_v14 }
  0x39   : > { %540 = vperm.xlu1 %2057, %v461_v15   ;;  %v395_v15 = vunpack.c.2.s8 %v2418_v44 }
  0x3a   : > { %535 = vperm.xlu0 %2056, %v460_v16   ;;  %v396_v16 = vunpack.c.3.s8 %v376_v43  ;;  %v2502_v43 = vcvt.s32.f32 %v397_v20 }
  0x3b   : > { %v2493_v34 = vcvt.s32.f32 %v395_v15  ;;  %v2526_v15 = vcvt.s32.f32 %v410_v41 }
  0x3c   : > { %v2495_v38 = vcvt.s32.f32 %v396_v16 }
  0x9c   : > { %v506_v11 = vpop.permute.xlu1 %505 }
  0x9d   : > { %v466_v12 = vpop.permute.xlu0 %465  ;;  %v2467_v17 = vadd.f32 %v2406_v30, %v506_v11  ;;  %v2484_v25 = vadd.f32 %v2408_v35, %v506_v11 }
  0x9e   : > { %v554_v18 = vadd.f32 %v2406_v30, %v466_v12  ;;  %v555_v19 = vadd.f32 %v2408_v35, %v466_v12 }
  0x9f   : > { %v602_v26 = vmul.f32 0.2, %v2467_v17  ;;  %v603_v48 = vmul.f32 0.2, %v2484_v25 }
  0xa0   : > { %v586_v27 = vmul.f32 0.2, %v554_v18  ;;  %v587_v29 = vmul.f32 0.2, %v555_v19  ;;  %v511_v31 = vpop.permute.xlu1 %510 }
  0xa1   : > { %v471_v32 = vpop.permute.xlu0 %470  ;;  %v2498_v40 = vadd.f32 %v2406_v30, %v511_v31  ;;  %v2505_v45 = vadd.f32 %v2408_v35, %v511_v31  ;;  %v634_v54 = vmax.f32 %v2467_v17, %v602_v26  ;;  %v635_v20 = vmax.f32 %v2484_v25, %v603_v48 }
  0xa2   : > { %v618_v44 = vmax.f32 %v554_v18, %v586_v27  ;;  %v556_v46 = vadd.f32 %v2406_v30, %v471_v32  ;;  %v557_v47 = vadd.f32 %v2408_v35, %v471_v32  ;;  %v619_v62 = vmax.f32 %v555_v19, %v587_v29 }
  0xa3   : > { %v2515_v3 = vmul.f32 0.2, %v2498_v40  ;;  %v2518_v11 = vmul.f32 0.2, %v2505_v45  ;;  %v2533_v19 = vcvt.s32.f32 %v411_v42  ;;  %v2548_v25 = vsel %vm666_vm3, %v634_v54, -1e+30 }
  0xa4   : > { %v588_v4 = vmul.f32 0.2, %v556_v46  ;;  %v589_v5 = vmul.f32 0.2, %v557_v47  ;;  %v481_v6 = vpop.permute.xlu1 %480  ;;  %v2531_v18 = vsel %vm650_vm1, %v618_v44, -1e+30 }
  0xa5   : > { %v476_v10 = vpop.permute.xlu0 %475  ;;  %v2521_v12 = vadd.f32 %v2406_v30, %v481_v6  ;;  %v2537_v27 = vadd.f32 %v2408_v35, %v481_v6  ;;  %v636_v31 = vmax.f32 %v2498_v40, %v2515_v3  ;;  %v2544_v41 = vsel %vm651_vm2, %v619_v62, -1e+30 }
  0xa6   : > { %v558_v14 = vadd.f32 %v2406_v30, %v476_v10  ;;  %v620_v16 = vmax.f32 %v556_v46, %v588_v4  ;;  %v559_v17 = vadd.f32 %v2408_v35, %v476_v10  ;;  %v621_v26 = vmax.f32 %v557_v47, %v589_v5 }
  0xa7   : > { %v637_v46 = vmax.f32 %v2505_v45, %v2518_v11  ;;  %v2553_v47 = vmul.f32 0.2, %v2521_v12  ;;  %v730_v40 = vmax.f32 %v2531_v18, %v2544_v41  ;;  %v2571_v4 = vmul.f32 0.2, %v2537_v27 }
  0xa8   : > { %v590_v29 = vmul.f32 0.2, %v558_v14  ;;  %v591_v32 = vmul.f32 0.2, %v559_v17  ;;  %v521_v44 = vpop.permute.xlu1 %520  ;;  %v2559_v48 = vsel %vm652_vm4, %v620_v16, -1e+30 }
  0xa9   : > { %v516_v42 = vpop.permute.xlu0 %515  ;;  %v2563_v3 = vadd.f32 %v2406_v30, %v521_v44  ;;  %v2566_v54 = vadd.f32 %v2408_v35, %v521_v44  ;;  %731 = vmax.xlane.f32.xlu0 %v730_v40  ;;  %v2576_v6 = vsel %vm653_vm5, %v621_v26, -1e+30  ;;  %v2580_v10 = vsel %vm667_vm6, %v635_v20, -1e+30 }
  0xaa   : > { %v622_v62 = vmax.f32 %v558_v14, %v590_v29  ;;  %v574_v45 = vadd.f32 %v2406_v30, %v516_v42  ;;  %v575_v5 = vadd.f32 %v2408_v35, %v516_v42  ;;  %v623_v11 = vmax.f32 %v559_v17, %v591_v32 }
  0xab   : > { %v2584_v14 = vmul.f32 0.2, %v2563_v3  ;;  %v733_v29 = vmax.f32 %v2559_v48, %v2576_v6  ;;  %v2590_v26 = vmul.f32 0.2, %v2566_v54  ;;  %v754_v20 = vmax.f32 %v2548_v25, %v2580_v10 }
  0xac   : > { %v606_v16 = vmul.f32 0.2, %v574_v45  ;;  %v491_v44 = vpop.permute.xlu1 %490  ;;  %v607_v40 = vmul.f32 0.2, %v575_v5  ;;  %v624_v32 = vmax.f32 %v2521_v12, %v2553_v47  ;;  %v2607_v39 = vsel %vm654_vm7, %v622_v62, -1e+30 }
  0xad   : > { %v486_v42 = vpop.permute.xlu0 %485  ;;  %v2595_v17 = vadd.f32 %v2406_v30, %v491_v44  ;;  %734 = vmax.xlane.f32.xlu1 %v733_v29  ;;  %v2600_v56 = vadd.f32 %v2408_v35, %v491_v44  ;;  %vm659_vm1 = vcmp.gt.f32.partialorder %v2458_v8, 0.0  ;;  %v625_v50 = vmax.f32 %v2537_v27, %v2571_v4  ;;  %755 = vmax.xlane.f32.xlu0 %v754_v20 }
  0xae   : > { %v2603_v55 = vadd.f32 %v2406_v30, %v486_v42  ;;  %v563_v29 = vadd.f32 %v2408_v35, %v486_v42  ;;  %v638_v44 = vmax.f32 %v574_v45, %v606_v16  ;;  %v2622_v59 = vsel %vm655_vm8, %v623_v11, -1e+30 }
  0xaf   : > { %v2616_v47 = vmul.f32 0.2, %v2595_v17  ;;  %v2626_v51 = vsel %vm668_vm9, %v636_v31, -1e+30  ;;  %vm672_vm2 = vcmp.gt.f32.partialorder %v2449_v2, 0.0  ;;  %vm673_vm3 = vcmp.gt.f32.partialorder %v2460_v9, 0.0 }
  0xb0   : > { %v594_v62 = vmul.f32 0.2, %v2603_v55  ;;  %v531_v27 = vpop.permute.xlu1 %530  ;;  %v641_v42 = vmax.f32 %v2566_v54, %v2590_v26  ;;  %v639_v45 = vmax.f32 %v575_v5, %v607_v40  ;;  %v595_v16 = vmul.f32 0.2, %v563_v29 }
  0xb1   : > { %v526_v4 = vpop.permute.xlu0 %525  ;;  %v736_v20 = vmax.f32 %v2607_v39, %v2622_v59  ;;  %v2635_v11 = vmul.f32 0.2, %v2600_v56  ;;  %v2639_v31 = vsel %vm669_vm10, %v637_v46, -1e+30  ;;  %v2642_v12 = vadd.f32 %v2406_v30, %v531_v27 }
  0xb2   : > { %v2645_v52 = vadd.f32 %v2408_v35, %v531_v27  ;;  %vm674_vm4 = vcmp.gt.f32.partialorder %v2475_v21, 0.0  ;;  %v757_v5 = vmax.f32 %v2626_v51, %v2639_v31  ;;  %v578_v26 = vadd.f32 %v2406_v30, %v526_v4 }
  0xb3   : > { %737 = vmax.xlane.f32.xlu1 %v736_v20  ;;  %v579_v46 = vadd.f32 %v2408_v35, %v526_v4  ;;  %vm675_vm5 = vcmp.gt.f32.partialorder %v2477_v22, 0.0  ;;  %vm660_vm6 = vcmp.gt.f32.partialorder %v2463_v13, 0.0  ;;  %vm661_vm7 = vcmp.gt.f32.partialorder %v2479_v23, 0.0 }
  0xb4   : > { %v626_v40 = vmax.f32 %v2603_v55, %v594_v62  ;;  %v627_v27 = vmax.f32 %v563_v29, %v595_v16  ;;  %v2659_v53 = vmul.f32 0.2, %v2642_v12  ;;  %v2663_v20 = vsel %vm670_vm11, %v638_v44, -1e+30  ;;  %v501_v54 = vpop.permute.xlu1 %500  ;;  %758 = vmax.xlane.f32.xlu0 %v757_v5 }
  0xb5   : > { %v496_v60 = vpop.permute.xlu0 %495  ;;  %v610_v4 = vmul.f32 0.2, %v578_v26  ;;  %v611_v49 = vmul.f32 0.2, %v579_v46  ;;  %v2667_v37 = vsel %vm671_vm12, %v639_v45, -1e+30  ;;  %v2670_v36 = vadd.f32 %v2406_v30, %v501_v54 }
  0xb6   : > { %vm662_vm8 = vcmp.gt.f32.partialorder %v2491_v33, 0.0  ;;  %vm663_vm9 = vcmp.gt.f32.partialorder %v2493_v34, 0.0  ;;  %vm676_vm10 = vcmp.gt.f32.partialorder %v2481_v24, 0.0  ;;  %v629_v55 = vmax.f32 %v2600_v56, %v2635_v11 }
  0xb7   : > { %v613_v29 = vmul.f32 0.2, %v2645_v52  ;;  %v760_v44 = vmax.f32 %v2663_v20, %v2667_v37  ;;  %v2682_v62 = vsel %vm656_vm13, %v624_v32, -1e+30  ;;  %vm677_vm11 = vcmp.gt.f32.partialorder %v2487_v28, 0.0 }
  0xb8   : > { %v644_v45 = vmax.f32 %v2642_v12, %v2659_v53  ;;  %v642_v16 = vmax.f32 %v578_v26, %v610_v4  ;;  %v2689_v5 = vsel %vm657_vm14, %v625_v50, -1e+30  ;;  %v2692_v56 = vadd.f32 %v2408_v35, %v501_v54  ;;  %v541_v61 = vpop.permute.xlu1 %540 }
  0xb9   : > { %761 = vmax.xlane.f32.xlu1 %v760_v44  ;;  %v739_v11 = vmax.f32 %v2682_v62, %v2689_v5  ;;  %v600_v32 = vmul.f32 0.2, %v2670_v36  ;;  %v566_v63 = vadd.f32 %v2406_v30, %v496_v60  ;;  %v567_v0 = vadd.f32 %v2408_v35, %v496_v60  ;;  %v536_v1 = vpop.permute.xlu0 %535 }
  0xba   : > { %vm678_vm12 = vcmp.gt.f32.partialorder %v2526_v15, 0.0  ;;  %vm679_vm13 = vcmp.gt.f32.partialorder %v2533_v19, 0.0  ;;  %v643_v50 = vmax.f32 %v579_v46, %v611_v49  ;;  %v2703_v53 = vsel %vm658_vm15, %v626_v40, -1e+30 }
  0xbb   : > { %v2707_v12 = vsel %vm659_vm1, %v627_v27, -1e+30  ;;  %v584_v54 = vadd.f32 %v2406_v30, %v541_v61  ;;  %740 = vmax.xlane.f32.xlu0 %v739_v11  ;;  %v601_v26 = vmul.f32 0.2, %v2692_v56  ;;  %v598_v60 = vmul.f32 0.2, %v566_v63 }
  0xbc   : > { %3465 = vst [vmem:[#allocation23_spill] sm:$0xff] %v2707_v12  ;;  %v599_v4 = vmul.f32 0.2, %v567_v0  ;;  %v742_v44 = vmax.f32 %v2703_v53, %v2707_v12  ;;  %v645_v49 = vmax.f32 %v2645_v52, %v613_v29  ;;  %v3466_v46 = vmax.f32 %v2563_v3, %v2584_v14 }
  0xbd   : > { %v2723_v27 = vsel %vm673_vm3, %v641_v42, -1e+30  ;;  %v585_v11 = vadd.f32 %v2408_v35, %v541_v61  ;;  %v632_v8 = vmax.f32 %v2670_v36, %v600_v32  ;;  %v630_v7 = vmax.f32 %v566_v63, %v598_v60 }
  0xbe   : > { %v2719_v40 = vsel %vm672_vm2, %v3466_v46, -1e+30  ;;  %v631_v12 = vmax.f32 %v567_v0, %v599_v4  ;;  %743 = vmax.xlane.f32.xlu1 %v742_v44  ;;  %v616_v29 = vmul.f32 0.2, %v584_v54  ;;  %v582_v3 = vadd.f32 %v2406_v30, %v536_v1 }
  0xbf   : > { %v763_v52 = vmax.f32 %v2719_v40, %v2723_v27  ;;  %v583_v14 = vadd.f32 %v2408_v35, %v536_v1  ;;  %v2733_v46 = vsel %vm674_vm4, %v642_v16, -1e+30  ;;  %v633_v42 = vmax.f32 %v2692_v56, %v601_v26 }
  0xc0   : > { %v2738_v36 = vsel %vm675_vm5, %v643_v50, -1e+30  ;;  %v3467_v61 = vmax.f32 %v2595_v17, %v2616_v47  ;;  %v2749_v30 = vsel %vm661_vm7, %v629_v55, -1e+30  ;;  %v617_v35 = vmul.f32 0.2, %v585_v11 }
  0xc1   : > { %764 = vmax.xlane.f32.xlu0 %v763_v52  ;;  %v614_v0 = vmul.f32 0.2, %v582_v3  ;;  %v615_v1 = vmul.f32 0.2, %v583_v14  ;;  %v766_v16 = vmax.f32 %v2733_v46, %v2738_v36  ;;  %v2757_v17 = vsel %vm662_vm8, %v630_v7, -1e+30 }
  0xc2   : > { %v2745_v63 = vsel %vm660_vm6, %v3467_v61, -1e+30  ;;  %v2761_v47 = vsel %vm663_vm9, %v631_v12, -1e+30  ;;  %v2765_v55 = vsel %vm676_vm10, %v644_v45, -1e+30  ;;  %v3468_v7 = vunpack.c.3.s8 %v2432_v57 }
  0xc3   : > { %v745_v56 = vmax.f32 %v2745_v63, %v2749_v30  ;;  %v646_v32 = vmax.f32 %v582_v3, %v614_v0  ;;  %v647_v50 = vmax.f32 %v583_v14, %v615_v1  ;;  %767 = vmax.xlane.f32.xlu1 %v766_v16  ;;  %v748_v26 = vmax.f32 %v2757_v17, %v2761_v47  ;;  %v2059_v0 = vld [vmem:[%s3396_s1] sm:$0xff]   ;;  %v2060_v1 = vld [vmem:[%s3396_s1 + $0x48] sm:$0xff]  }
  0xc4   : > { %v2771_v60 = vsel %vm677_vm11, %v645_v49, -1e+30  ;;  %vm664_vm14 = vcmp.gt.f32.partialorder %v2495_v38, 0.0  ;;  %vm665_vm15 = vcmp.gt.f32.partialorder %v2502_v43, 0.0  ;;  %v2777_v12 = vcvt.s32.f32 %v3468_v7  ;;  %v2061_v16 = vld [vmem:[%s3396_s1 + $0x8] sm:$0xff]   ;;  %v2844_v7 = vld [vmem:[#allocation2 + $0x40] sm:$0xff] }
  0xc5   : > { %746 = vmax.xlane.f32.xlu0 %v745_v56  ;;  %v3469_v45 = vunpack.c.3.s8 %v2435_v58  ;;  %v2785_v44 = vsel %vm678_vm12, %v646_v32, -1e+30  ;;  %v2789_v49 = vsel %vm679_vm13, %v647_v50, -1e+30  ;;  %v648_v52 = vmax.f32 %v584_v54, %v616_v29  ;;  %v2837_v56 = vld [vmem:[#allocation2] sm:$0xff]  ;;  %3471 = vst [vmem:[#allocation25_spill] sm:$0xff] %v2844_v7 }
  0xc6   : > { %v769_v3 = vmax.f32 %v2765_v55, %v2771_v60  ;;  %v649_v14 = vmax.f32 %v585_v11, %v617_v35  ;;  %v772_v57 = vmax.f32 %v2785_v44, %v2789_v49  ;;  %v2795_v58 = vsel %vm664_vm14, %v632_v8, -1e+30  ;;  %v2058_v35 = vld [vmem:[%s3396_s1 + $0x40] sm:$0xff]  }
  0xc7   : > { %v2781_v4 = vcvt.s32.f32 %v3469_v45  ;;  %749 = vmax.xlane.f32.xlu1 %v748_v26  ;;  %v2797_v61 = vsel %vm665_vm15, %v633_v42, -1e+30  ;;  %vm680_vm1 = vcmp.gt.f32.partialorder %v2777_v12, 0.0  ;;  %v2284_v42 = vmov 0.0   ;;  %1916 = vmatprep.subr.bf16.mxu0 %v2058_v35  ;;  %v2842_v26 = vld [vmem:[#allocation2 + $0x8] sm:$0xff]  ;;  %v2065_v45 = vld [vmem:[%s3396_s1 + $0x18] sm:$0xff]  }
  0xc8   : > { %v751_v54 = vmax.f32 %v2795_v58, %v2797_v61  ;;  %v2803_v29 = vsel %vm680_vm1, %v648_v52, -1e+30  ;;  %342 = vst.msk [vmem:[#allocation3] sm:$0xff] %vm325_vm0, %v2284_v42  ;;  %343 = vst.msk [vmem:[#allocation3 + $0x8] sm:$0xff] %vm325_vm0, %v2284_v42  ;;  %1980 = vmatprep.subr.bf16.mxu1 %v2058_v35  ;;  %1917 = vmatpush3.bf16.msra.mxu0 %v2059_v0 }
  0xc9   : > { %770 = vmax.xlane.f32.xlu0 %v769_v3  ;;  %vm681_vm2 = vcmp.gt.f32.partialorder %v2781_v4, 0.0  ;;  %344 = vst.msk [vmem:[#allocation3 + $0x10] sm:$0xff] %vm325_vm0, %v2284_v42  ;;  %345 = vst.msk [vmem:[#allocation3 + $0x18] sm:$0xff] %vm325_vm0, %v2284_v42  ;;  %1988 = vmatpush3.bf16.msra.mxu1 %v2059_v0  ;;  %v2869_v0 = vld [vmem:[#allocation2 + $0x48] sm:$0xff] }
  0xca   : > { %v2805_v11 = vsel %vm681_vm2, %v649_v14, -1e+30  ;;  %346 = vst.msk [vmem:[#allocation3 + $0x20] sm:$0xff] %vm325_vm0, %v2284_v42  ;;  %347 = vst.msk [vmem:[#allocation3 + $0x28] sm:$0xff] %vm325_vm0, %v2284_v42  ;;  %1918 = vmatprep.subr.bf16.mxu0 %v2060_v1  ;;  %1981 = vmatprep.subr.bf16.mxu1 %v2060_v1  ;;  %v2062_v1 = vld [vmem:[%s3396_s1 + $0x50] sm:$0xff]  }
  0xcb   : > { %773 = vmax.xlane.f32.xlu1 %v772_v57  ;;  %v775_v8 = vmax.f32 %v2803_v29, %v2805_v11  ;;  %348 = vst.msk [vmem:[#allocation3 + $0x30] sm:$0xff] %vm325_vm0, %v2284_v42  ;;  %349 = vst.msk [vmem:[#allocation3 + $0x38] sm:$0xff] %vm325_vm0, %v2284_v42 }
  0xcc   : > { %350 = vst.msk [vmem:[#allocation3 + $0x40] sm:$0xff] %vm325_vm0, %v2284_v42  ;;  %351 = vst.msk [vmem:[#allocation3 + $0x48] sm:$0xff] %vm325_vm0, %v2284_v42  ;;  %1919 = vmatpush3.bf16.msra.mxu0 %v2061_v16 }
  0xcd   : > { %752 = vmax.xlane.f32.xlu0 %v751_v54  ;;  %352 = vst.msk [vmem:[#allocation3 + $0x50] sm:$0xff] %vm325_vm0, %v2284_v42  ;;  %353 = vst.msk [vmem:[#allocation3 + $0x58] sm:$0xff] %vm325_vm0, %v2284_v42  ;;  %1989 = vmatpush3.bf16.msra.mxu1 %v2061_v16  ;;  %v2063_v16 = vld [vmem:[%s3396_s1 + $0x10] sm:$0xff]  }
  0xce   : > { %354 = vst.msk [vmem:[#allocation3 + $0x60] sm:$0xff] %vm325_vm0, %v2284_v42  ;;  %355 = vst.msk [vmem:[#allocation3 + $0x68] sm:$0xff] %vm325_vm0, %v2284_v42  ;;  %1920 = vmatprep.subr.bf16.mxu0 %v2062_v1  ;;  %1982 = vmatprep.subr.bf16.mxu1 %v2062_v1  ;;  %v2888_v54 = vld [vmem:[#allocation2 + $0x50] sm:$0xff]  ;;  %v2067_v1 = vld [vmem:[%s3396_s1 + $0x20] sm:$0xff]  }
  0xcf   : > { %356 = vst.msk [vmem:[#allocation3 + $0x70] sm:$0xff] %vm325_vm0, %v2284_v42  ;;  %357 = vst.msk [vmem:[#allocation3 + $0x78] sm:$0xff] %vm325_vm0, %v2284_v42 }
  0xd0   : > { %3470 = vst [vmem:[#allocation24_spill] sm:$0xff] %v2842_v26  ;;  %3474 = vst [vmem:[#allocation28_spill] sm:$0xff] %v2869_v0  ;;  %1921 = vmatpush3.bf16.msra.mxu0 %v2063_v16 }
  0xd1   : > { %776 = vmax.xlane.f32.xlu0 %v775_v8  ;;  %v2862_v8 = vld [vmem:[#allocation2 + $0x10] sm:$0xff]  ;;  %3477 = vst [vmem:[#allocation31_spill] sm:$0xff] %v2888_v54  ;;  %1990 = vmatpush3.bf16.msra.mxu1 %v2063_v16 }
 0x136   : > { %v732_v32 = vpop.xlane.xlu0 %731 }
 0x137   : > { %v2840_v50 = vmax.f32 %v2837_v56, %v732_v32 }
 0x139   : > { %1548 = vst.msk [vmem:[#allocation2] sm:$0xff] %vm325_vm0, %v2840_v50  ;;  %844 = vperm.xlu1 %2057, %v2840_v50  }
 0x13a   : > { %v735_v52 = vpop.xlane.xlu1 %734  ;;  %v756_v14 = vpop.xlane.xlu0 %755 }
 0x13b   : > { %v2852_v3 = vmax.f32 %v2842_v26, %v735_v52  ;;  %v2855_v57 = vmax.f32 %v2844_v7, %v756_v14  ;;  %v2898_v14 = vld [vmem:[#allocation2 + $0x18] sm:$0xff]  ;;  %v2906_v7 = vld [vmem:[#allocation2 + $0x20] sm:$0xff] }
 0x13c   : > { %3478 = vst [vmem:[#allocation32_spill] sm:$0xff] %v2898_v14  ;;  %3480 = vst [vmem:[#allocation34_spill] sm:$0xff] %v2906_v7 }
 0x13d   : > { %3472 = vst [vmem:[#allocation26_spill] sm:$0xff] %v2852_v3  ;;  %3473 = vst [vmem:[#allocation27_spill] sm:$0xff] %v2855_v57  ;;  %849 = vperm.xlu0 %2056, %v2852_v3   ;;  %884 = vperm.xlu1 %2057, %v2855_v57  }
 0x13e   : > { %1549 = vst.msk [vmem:[#allocation2 + $0x8] sm:$0xff] %vm325_vm0, %v2852_v3  ;;  %1556 = vst.msk [vmem:[#allocation2 + $0x40] sm:$0xff] %vm325_vm0, %v2855_v57  ;;  %v2961_v3 = vld [vmem:[#allocation2 + $0x30] sm:$0xff] }
 0x13f   : > { %3489 = vst [vmem:[#allocation43_spill] sm:$0xff] %v2961_v3 }
 0x140   : > { %v738_v35 = vpop.xlane.xlu1 %737 }
 0x141   : > { %v2878_v32 = vmax.f32 %v2862_v8, %v738_v35  ;;  %v759_v52 = vpop.xlane.xlu0 %758  ;;  %v2064_v35 = vld [vmem:[%s3396_s1 + $0x58] sm:$0xff]  }
 0x142   : > { %v2885_v42 = vmax.f32 %v2869_v0, %v759_v52  ;;  %1922 = vmatprep.subr.bf16.mxu0 %v2064_v35  ;;  %1983 = vmatprep.subr.bf16.mxu1 %v2064_v35  ;;  %v2919_v0 = vld [vmem:[#allocation2 + $0x58] sm:$0xff] }
 0x143   : > { %3475 = vst [vmem:[#allocation29_spill] sm:$0xff] %v2878_v32  ;;  %1550 = vst.msk [vmem:[#allocation2 + $0x10] sm:$0xff] %vm325_vm0, %v2878_v32  ;;  %854 = vperm.xlu0 %2056, %v2878_v32   ;;  %1923 = vmatpush3.bf16.msra.mxu0 %v2065_v45 }
 0x144   : > { %3476 = vst [vmem:[#allocation30_spill] sm:$0xff] %v2885_v42  ;;  %1557 = vst.msk [vmem:[#allocation2 + $0x48] sm:$0xff] %vm325_vm0, %v2885_v42  ;;  %889 = vperm.xlu1 %2057, %v2885_v42   ;;  %1991 = vmatpush3.bf16.msra.mxu1 %v2065_v45 }
 0x145   : > { %3482 = vst [vmem:[#allocation36_spill] sm:$0xff] %v2919_v0 }
 0x146   : > { %v762_v52 = vpop.xlane.xlu1 %761 }
 0x147   : > { %v2904_v57 = vmax.f32 %v2888_v54, %v762_v52  ;;  %v2066_v52 = vld [vmem:[%s3396_s1 + $0x60] sm:$0xff]  }
 0x148   : > { %v741_v16 = vpop.xlane.xlu0 %740  ;;  %1924 = vmatprep.subr.bf16.mxu0 %v2066_v52  ;;  %1984 = vmatprep.subr.bf16.mxu1 %v2066_v52  ;;  %v2069_v52 = vld [vmem:[%s3396_s1 + $0x28] sm:$0xff]  }
 0x149   : > { %3479 = vst [vmem:[#allocation33_spill] sm:$0xff] %v2904_v57  ;;  %1558 = vst.msk [vmem:[#allocation2 + $0x50] sm:$0xff] %vm325_vm0, %v2904_v57  ;;  %v2913_v42 = vmax.f32 %v2898_v14, %v741_v16  ;;  %894 = vperm.xlu0 %2056, %v2904_v57   ;;  %1925 = vmatpush3.bf16.msra.mxu0 %v2067_v1  ;;  %v2940_v14 = vld [vmem:[#allocation2 + $0x60] sm:$0xff]  ;;  %v2070_v57 = vld [vmem:[%s3396_s1 + $0x70] sm:$0xff]  }
 0x14a   : > { %3485 = vst [vmem:[#allocation39_spill] sm:$0xff] %v2940_v14  ;;  %1992 = vmatpush3.bf16.msra.mxu1 %v2067_v1 }
 0x14b   : > { %3481 = vst [vmem:[#allocation35_spill] sm:$0xff] %v2913_v42  ;;  %v744_v35 = vpop.xlane.xlu1 %743  ;;  %1551 = vst.msk [vmem:[#allocation2 + $0x18] sm:$0xff] %vm325_vm0, %v2913_v42  ;;  %859 = vperm.xlu1 %2057, %v2913_v42   ;;  %v2945_v42 = vld [vmem:[#allocation2 + $0x28] sm:$0xff] }
 0x14c   : > { %v2930_v16 = vmax.f32 %v2906_v7, %v744_v35  ;;  %v2068_v35 = vld [vmem:[%s3396_s1 + $0x68] sm:$0xff]   ;;  %3486 = vst [vmem:[#allocation40_spill] sm:$0xff] %v2945_v42 }
 0x14d   : > { %1926 = vmatprep.subr.bf16.mxu0 %v2068_v35  ;;  %1985 = vmatprep.subr.bf16.mxu1 %v2068_v35  ;;  %v2071_v35 = vld [vmem:[%s3396_s1 + $0x30] sm:$0xff]  }
 0x14e   : > { %3483 = vst [vmem:[#allocation37_spill] sm:$0xff] %v2930_v16  ;;  %v765_v45 = vpop.xlane.xlu0 %764  ;;  %1552 = vst.msk [vmem:[#allocation2 + $0x20] sm:$0xff] %vm325_vm0, %v2930_v16  ;;  %864 = vperm.xlu0 %2056, %v2930_v16   ;;  %1927 = vmatpush3.bf16.msra.mxu0 %v2069_v52 }
 0x14f   : > { %v2937_v54 = vmax.f32 %v2919_v0, %v765_v45  ;;  %1993 = vmatpush3.bf16.msra.mxu1 %v2069_v52  ;;  %1928 = vmatprep.subr.bf16.mxu0 %v2070_v57  ;;  %v2987_v0 = vld [vmem:[#allocation2 + $0x70] sm:$0xff] }
 0x150   : > { %v768_v45 = vpop.xlane.xlu1 %767  ;;  %1986 = vmatprep.subr.bf16.mxu1 %v2070_v57  ;;  %3493 = vst [vmem:[#allocation47_spill] sm:$0xff] %v2987_v0  ;;  %v2073_v57 = vld [vmem:[%s3396_s1 + $0x38] sm:$0xff]  }
 0x151   : > { %3484 = vst [vmem:[#allocation38_spill] sm:$0xff] %v2937_v54  ;;  %1559 = vst.msk [vmem:[#allocation2 + $0x58] sm:$0xff] %vm325_vm0, %v2937_v54  ;;  %899 = vperm.xlu1 %2057, %v2937_v54   ;;  %v2956_v16 = vmax.f32 %v2940_v14, %v768_v45  ;;  %v2971_v45 = vld [vmem:[#allocation2 + $0x68] sm:$0xff] }
 0x152   : > { %v747_v1 = vpop.xlane.xlu0 %746  ;;  %3490 = vst [vmem:[#allocation44_spill] sm:$0xff] %v2971_v45  ;;  %1929 = vmatpush3.bf16.msra.mxu0 %v2071_v35 }
 0x153   : > { %3487 = vst [vmem:[#allocation41_spill] sm:$0xff] %v2956_v16  ;;  %v2959_v7 = vmax.f32 %v2945_v42, %v747_v1  ;;  %1560 = vst.msk [vmem:[#allocation2 + $0x60] sm:$0xff] %vm325_vm0, %v2956_v16  ;;  %904 = vperm.xlu0 %2056, %v2956_v16   ;;  %v2072_v1 = vld [vmem:[%s3396_s1 + $0x78] sm:$0xff]   ;;  %1994 = vmatpush3.bf16.msra.mxu1 %v2071_v35 }
 0x154   : > { %v750_v52 = vpop.xlane.xlu1 %749  ;;  %1930 = vmatprep.subr.bf16.mxu0 %v2072_v1  ;;  %1987 = vmatprep.subr.bf16.mxu1 %v2072_v1 }
 0x155   : > { %3488 = vst [vmem:[#allocation42_spill] sm:$0xff] %v2959_v7  ;;  %1553 = vst.msk [vmem:[#allocation2 + $0x28] sm:$0xff] %vm325_vm0, %v2959_v7  ;;  %869 = vperm.xlu1 %2057, %v2959_v7   ;;  %v2982_v54 = vmax.f32 %v2961_v3, %v750_v52  ;;  %v2997_v52 = vld [vmem:[#allocation2 + $0x38] sm:$0xff] }
 0x156   : > { %v771_v16 = vpop.xlane.xlu0 %770  ;;  %3494 = vst [vmem:[#allocation48_spill] sm:$0xff] %v2997_v52  ;;  %1931 = vmatpush3.bf16.msra.mxu0 %v2073_v57 }
 0x157   : > { %3491 = vst [vmem:[#allocation45_spill] sm:$0xff] %v2982_v54  ;;  %v2985_v14 = vmax.f32 %v2971_v45, %v771_v16  ;;  %1554 = vst.msk [vmem:[#allocation2 + $0x30] sm:$0xff] %vm325_vm0, %v2982_v54  ;;  %874 = vperm.xlu0 %2056, %v2982_v54   ;;  %1995 = vmatpush3.bf16.msra.mxu1 %v2073_v57 }
 0x158   : > { %v774_v35 = vpop.xlane.xlu1 %773 }
 0x159   : > { %3492 = vst [vmem:[#allocation46_spill] sm:$0xff] %v2985_v14  ;;  %1561 = vst.msk [vmem:[#allocation2 + $0x68] sm:$0xff] %vm325_vm0, %v2985_v14  ;;  %909 = vperm.xlu1 %2057, %v2985_v14   ;;  %v3008_v7 = vmax.f32 %v2987_v0, %v774_v35  ;;  %v3018_v14 = vld [vmem:[#allocation2 + $0x78] sm:$0xff] }
 0x15a   : > { %v753_v54 = vpop.xlane.xlu0 %752  ;;  %3497 = vst [vmem:[#allocation51_spill] sm:$0xff] %v3018_v14 }
 0x15b   : > { %3495 = vst [vmem:[#allocation49_spill] sm:$0xff] %v3008_v7  ;;  %v3011_v3 = vmax.f32 %v2997_v52, %v753_v54  ;;  %1562 = vst.msk [vmem:[#allocation2 + $0x70] sm:$0xff] %vm325_vm0, %v3008_v7  ;;  %914 = vperm.xlu0 %2056, %v3008_v7  }
 0x15d   : > { %3496 = vst [vmem:[#allocation50_spill] sm:$0xff] %v3011_v3  ;;  %1555 = vst.msk [vmem:[#allocation2 + $0x38] sm:$0xff] %vm325_vm0, %v3011_v3  ;;  %879 = vperm.xlu1 %2057, %v3011_v3  }
 0x15e   : > { %v777_v54 = vpop.xlane.xlu0 %776 }
 0x15f   : > { %v3026_v1 = vmax.f32 %v3018_v14, %v777_v54 }
 0x161   : > { %3498 = vst [vmem:[#allocation52_spill] sm:$0xff] %v3026_v1  ;;  %1563 = vst.msk [vmem:[#allocation2 + $0x78] sm:$0xff] %vm325_vm0, %v3026_v1  ;;  %919 = vperm.xlu1 %2057, %v3026_v1  }
 0x1b8   : > { %v845_v16 = vpop.permute.xlu1 %844 }
 0x1b9   : > { %v922_v35 = vsub.f32 %v2531_v18, %v845_v16  ;;  %v923_v7 = vsub.f32 %v2544_v41, %v845_v16 }
 0x1bb   : > { %v954_v0 = vmul.f32 1.442695, %v922_v35  ;;  %v956_v45 = vmul.f32 1.442695, %v923_v7 }
 0x1bc   : > { %v850_v3 = vpop.permute.xlu0 %849  ;;  %v885_v52 = vpop.permute.xlu1 %884 }
 0x1bd   : > { %v924_v54 = vsub.f32 %v2559_v48, %v850_v3  ;;  %v925_v42 = vsub.f32 %v2576_v6, %v850_v3  ;;  %2074 = vpow2.f32 %v954_v0  ;;  %v938_v57 = vsub.f32 %v2548_v25, %v885_v52 }
 0x1be   : > { %v939_v14 = vsub.f32 %v2580_v10, %v885_v52  ;;  %2076 = vpow2.f32 %v956_v45 }
 0x1bf   : > { %v958_v1 = vmul.f32 1.442695, %v924_v54  ;;  %v986_v26 = vmul.f32 1.442695, %v938_v57  ;;  %v960_v18 = vmul.f32 1.442695, %v925_v42 }
 0x1c0   : > { %v988_v32 = vmul.f32 1.442695, %v939_v14  ;;  %v3499_v57 = vld [vmem:[#allocation7_spill] sm:$0xff] }
 0x1c1   : > { %2078 = vpow2.f32 %v958_v1 }
 0x1c2   : > { %v855_v41 = vpop.permute.xlu0 %854  ;;  %2080 = vpow2.f32 %v986_v26 }
 0x1c3   : > { %v926_v7 = vsub.f32 %v2607_v39, %v855_v41  ;;  %v927_v16 = vsub.f32 %v2622_v59, %v855_v41  ;;  %2082 = vpow2.f32 %v988_v32  ;;  %v890_v48 = vpop.permute.xlu1 %889 }
 0x1c4   : > { %2084 = vpow2.f32 %v960_v18  ;;  %v940_v6 = vsub.f32 %v2626_v51, %v890_v48  ;;  %v941_v25 = vsub.f32 %v2639_v31, %v890_v48  ;;  %v3500_v18 = vld [vmem:[#allocation8_spill] sm:$0xff] }
 0x1c5   : > { %v962_v10 = vmul.f32 1.442695, %v926_v7  ;;  %v964_v3 = vmul.f32 1.442695, %v927_v16 }
 0x1c6   : > { %v990_v0 = vmul.f32 1.442695, %v940_v6  ;;  %v992_v45 = vmul.f32 1.442695, %v941_v25 }
 0x1c7   : > { %2086 = vpow2.f32 %v962_v10  ;;  %v2075_v14 = vpop.eup %2074  ;;  %v3502_v10 = vld [vmem:[#allocation10_spill] sm:$0xff] }
 0x1c8   : > { %v895_v42 = vpop.permute.xlu0 %894  ;;  %2088 = vpow2.f32 %v964_v3  ;;  %v2077_v32 = vpop.eup %2076  ;;  %v1018_v54 = vmul.f32 %v2075_v14, %v3499_v57 }
 0x1c9   : > { %v942_v26 = vsub.f32 %v2663_v20, %v895_v42  ;;  %v943_v39 = vsub.f32 %v2667_v37, %v895_v42  ;;  %2090 = vpow2.f32 %v992_v45  ;;  %v1019_v41 = vmul.f32 %v2077_v32, %v3500_v18 }
 0x1ca   : > { %v860_v59 = vpop.permute.xlu1 %859  ;;  %2092 = vpow2.f32 %v990_v0 }
 0x1cb   : > { %v928_v52 = vsub.f32 %v2682_v62, %v860_v59  ;;  %v929_v51 = vsub.f32 %v2689_v5, %v860_v59  ;;  %v994_v31 = vmul.f32 1.442695, %v942_v26  ;;  %v996_v35 = vmul.f32 1.442695, %v943_v39  ;;  %v2079_v7 = vpop.eup %2078  ;;  %v3501_v62 = vld [vmem:[#allocation23_spill] sm:$0xff]  ;;  %v3503_v59 = vld [vmem:[#allocation12_spill] sm:$0xff] }
 0x1cc   : > { %v2081_v48 = vpop.eup %2080  ;;  %v1082_v5 = vadd.f32 %v1019_v41, %v1018_v54  ;;  %v1020_v3 = vmul.f32 %v2079_v7, %v3502_v10  ;;  %v3505_v7 = vld [vmem:[#allocation9_spill] sm:$0xff] }
 0x1cd   : > { %v865_v1 = vpop.permute.xlu0 %864  ;;  %v966_v20 = vmul.f32 1.442695, %v928_v52  ;;  %v968_v16 = vmul.f32 1.442695, %v929_v51  ;;  %2094 = vpow2.f32 %v994_v31  ;;  %v2083_v0 = vpop.eup %2082 }
 0x1ce   : > { %v930_v37 = vsub.f32 %v2703_v53, %v865_v1  ;;  %2096 = vpow2.f32 %v996_v35  ;;  %v931_v25 = vsub.f32 %v3501_v62, %v865_v1  ;;  %v2085_v39 = vpop.eup %2084  ;;  %1083 = vadd.xlane.f32.xlu0 %v1082_v5  ;;  %v1275_v53 = vpack.c.bf16 %v1020_v3, %v1018_v54  ;;  %v3504_v35 = vld [vmem:[#allocation11_spill] sm:$0xff] }
 0x1cf   : > { %2098 = vpow2.f32 %v966_v20  ;;  %v3055_v32 = vmul.f32 %v2083_v0, %v3503_v59  ;;  %v1021_v1 = vmul.f32 %v2085_v39, %v3504_v35  ;;  %v3061_v20 = vmul.f32 %v2081_v48, %v3505_v7  ;;  %v3507_v48 = vld [vmem:[#allocation16_spill] sm:$0xff] }
 0x1d0   : > { %v900_v6 = vpop.permute.xlu1 %899  ;;  %v970_v26 = vmul.f32 1.442695, %v930_v37  ;;  %2100 = vpow2.f32 %v968_v16  ;;  %v972_v14 = vmul.f32 1.442695, %v931_v25 }
 0x1d1   : > { %v944_v45 = vsub.f32 %v2719_v40, %v900_v6  ;;  %v945_v42 = vsub.f32 %v2723_v27, %v900_v6  ;;  %v2087_v57 = vpop.eup %2086  ;;  %v1276_v6 = vpack.c.bf16 %v1021_v1, %v1019_v41  ;;  %v1085_v5 = vadd.f32 %v1021_v1, %v1020_v3  ;;  %v3508_v3 = vld [vmem:[#allocation14_spill] sm:$0xff] }
 0x1d2   : > { %2102 = vpow2.f32 %v970_v26  ;;  %v905_v31 = vpop.permute.xlu0 %904  ;;  %v2089_v54 = vpop.eup %2088 }
 0x1d3   : > { %v998_v52 = vmul.f32 1.442695, %v944_v45  ;;  %v1000_v51 = vmul.f32 1.442695, %v945_v42  ;;  %2104 = vpow2.f32 %v972_v14  ;;  %v946_v27 = vsub.f32 %v2733_v46, %v905_v31  ;;  %v2091_v10 = vpop.eup %2090  ;;  %1451 = vmatprep.mubr.bf16.mxu0 %v1276_v6  ;;  %1086 = vadd.xlane.f32.xlu1 %v1085_v5 }
 0x1d4   : > { %v870_v40 = vpop.permute.xlu1 %869  ;;  %v947_v18 = vsub.f32 %v2738_v36, %v905_v31  ;;  %v3506_v36 = vld [vmem:[#allocation15_spill] sm:$0xff]  ;;  %v1023_v26 = vmul.f32 %v2089_v54, %v3507_v48  ;;  %v2093_v39 = vpop.eup %2092  ;;  %1452 = vmatmul.mubr.bf16.vlgmr.msra.gmra.mrb[0].mxu0 %v1275_v53  ;;  %v3072_v14 = vmul.f32 %v2091_v10, %v3508_v3 }
 0x1d5   : > { %2106 = vpow2.f32 %v998_v52  ;;  %v932_v16 = vsub.f32 %v2745_v63, %v870_v40  ;;  %v933_v37 = vsub.f32 %v2749_v30, %v870_v40  ;;  %v1002_v62 = vmul.f32 1.442695, %v946_v27  ;;  %v3512_v3 = vld [vmem:[#allocation19_spill] sm:$0xff] }
 0x1d6   : > { %2108 = vpow2.f32 %v1000_v51  ;;  %v1004_v25 = vmul.f32 1.442695, %v947_v18  ;;  %v875_v46 = vpop.permute.xlu0 %874  ;;  %v3066_v42 = vmul.f32 %v2087_v57, %v3506_v36  ;;  %v3509_v18 = vld [vmem:[#allocation13_spill] sm:$0xff]  ;;  %v3511_v36 = vld [vmem:[#allocation20_spill] sm:$0xff] }
 0x1d7   : > { %v974_v0 = vmul.f32 1.442695, %v932_v16  ;;  %v976_v45 = vmul.f32 1.442695, %v933_v37  ;;  %2110 = vpow2.f32 %v1002_v62  ;;  %v934_v30 = vsub.f32 %v2757_v17, %v875_v46  ;;  %v2095_v59 = vpop.eup %2094  ;;  %v3510_v37 = vld [vmem:[#allocation17_spill] sm:$0xff] }
 0x1d8   : > { %v910_v63 = vpop.permute.xlu1 %909  ;;  %v935_v41 = vsub.f32 %v2761_v47, %v875_v46  ;;  %v1088_v31 = vadd.f32 %v1023_v26, %v3066_v42  ;;  %v2097_v35 = vpop.eup %2096  ;;  %v1284_v17 = vpack.c.bf16 %v3072_v14, %v3055_v32  ;;  %v3080_v7 = vmul.f32 %v2093_v39, %v3509_v18 }
 0x1d9   : > { %2112 = vpow2.f32 %v974_v0  ;;  %v948_v52 = vsub.f32 %v2765_v55, %v910_v63  ;;  %v949_v51 = vsub.f32 %v2771_v60, %v910_v63  ;;  %v978_v1 = vmul.f32 1.442695, %v934_v30  ;;  %v2099_v47 = vpop.eup %2098 }
 0x1da   : > { %2114 = vpow2.f32 %v976_v45  ;;  %v980_v57 = vmul.f32 1.442695, %v935_v41  ;;  %1089 = vadd.xlane.f32.xlu0 %v1088_v31  ;;  %v915_v27 = vpop.permute.xlu0 %914  ;;  %v2101_v55 = vpop.eup %2100  ;;  %1483 = vmatprep.mubr.bf16.mxu1 %v1284_v17  ;;  %v1024_v6 = vmul.f32 %v2099_v47, %v3510_v37  ;;  %v1283_v10 = vpack.c.bf16 %v3080_v7, %v3061_v20  ;;  %v3514_v47 = vld [vmem:[#allocation22_spill] sm:$0xff] }
 0x1db   : > { %2116 = vpow2.f32 %v1004_v25  ;;  %v1006_v53 = vmul.f32 1.442695, %v948_v52  ;;  %v1008_v40 = vmul.f32 1.442695, %v949_v51  ;;  %v950_v54 = vsub.f32 %v2785_v44, %v915_v27 }
 0x1dc   : > { %2118 = vpow2.f32 %v978_v1  ;;  %v880_v60 = vpop.permute.xlu1 %879  ;;  %v951_v16 = vsub.f32 %v2789_v49, %v915_v27  ;;  %v2103_v62 = vpop.eup %2102  ;;  %v1025_v48 = vmul.f32 %v2101_v55, %v3511_v36  ;;  %1484 = vmatmul.mubr.bf16.vlgmr.msra.gmra.mrb[0].mxu1 %v1283_v10  ;;  %v1277_v63 = vpack.c.bf16 %v1024_v6, %v3066_v42  ;;  %v3513_v42 = vld [vmem:[#allocation21_spill] sm:$0xff]  ;;  %v3515_v27 = vld [vmem:[#allocation18_spill] sm:$0xff] }
 0x1dd   : > { %2120 = vpow2.f32 %v1006_v53  ;;  %v936_v25 = vsub.f32 %v2795_v58, %v880_v60  ;;  %v937_v5 = vsub.f32 %v2797_v61, %v880_v60  ;;  %v2105_v0 = vpop.eup %2104  ;;  %v1010_v45 = vmul.f32 1.442695, %v950_v54 }
 0x1de   : > { %2122 = vpow2.f32 %v1008_v40  ;;  %v1012_v46 = vmul.f32 1.442695, %v951_v16  ;;  %v1278_v61 = vpack.c.bf16 %v1025_v48, %v1023_v26  ;;  %v1091_v41 = vadd.f32 %v1025_v48, %v1024_v6 }
 0x1df   : > { %v2107_v44 = vpop.eup %2106  ;;  %2124 = vpow2.f32 %v980_v57  ;;  %v982_v49 = vmul.f32 1.442695, %v936_v25  ;;  %v984_v39 = vmul.f32 1.442695, %v937_v5  ;;  %v3092_v52 = vmul.f32 %v2097_v35, %v3512_v3 }
 0x1e0   : > { %v2109_v30 = vpop.eup %2108  ;;  %2126 = vpow2.f32 %v1010_v45  ;;  %v920_v58 = vpop.permute.xlu1 %919  ;;  %1459 = vmatprep.mubr.bf16.mxu0 %v1278_v61  ;;  %1092 = vadd.xlane.f32.xlu0 %v1091_v41  ;;  %v1026_v17 = vmul.f32 %v2103_v62, %v3513_v42  ;;  %v1027_v26 = vmul.f32 %v2105_v0, %v3514_v47  ;;  %v1040_v55 = vmul.f32 %v2107_v44, %v2449_v2 }
 0x1e1   : > { %2128 = vpow2.f32 %v982_v49  ;;  %v952_v51 = vsub.f32 %v2803_v29, %v920_v58  ;;  %v953_v31 = vsub.f32 %v2805_v11, %v920_v58  ;;  %v3097_v1 = vmul.f32 %v2109_v30, %v2460_v9  ;;  %v2111_v57 = vpop.eup %2110  ;;  %1460 = vmatmul.mubr.bf16.gmra.mrb[4].mxu0 %v1277_v63 }
 0x1e2   : > { %2130 = vpow2.f32 %v984_v39  ;;  %v1038_v11 = vmul.f32 %v2095_v59, %v3515_v27  ;;  %v1094_v9 = vadd.f32 %v1027_v26, %v1026_v17  ;;  %v1042_v48 = vmul.f32 %v2111_v57, %v2475_v21 }
 0x1e3   : > { %v2113_v53 = vpop.eup %2112  ;;  %v1014_v40 = vmul.f32 1.442695, %v952_v51  ;;  %v1016_v35 = vmul.f32 1.442695, %v953_v31  ;;  %v1286_v29 = vpack.c.bf16 %v3097_v1, %v3092_v52  ;;  %2132 = vpow2.f32 %v1012_v46 }
 0x1e4   : > { %v2115_v18 = vpop.eup %2114  ;;  %v1028_v60 = vmul.f32 %v2113_v53, %v2463_v13  ;;  %1095 = vadd.xlane.f32.xlu1 %v1094_v9  ;;  %v1285_v6 = vpack.c.bf16 %v1040_v55, %v1038_v11  ;;  %v1106_v21 = vadd.f32 %v3055_v32, %v3061_v20  ;;  %v1109_v31 = vadd.f32 %v3072_v14, %v3080_v7  ;;  %v3517_v7 = vld [vmem:[#allocation29_spill] sm:$0xff] }
 0x1e5   : > { %v2117_v54 = vpop.eup %2116  ;;  %2134 = vpow2.f32 %v1014_v40  ;;  %1491 = vmatprep.mubr.bf16.mxu1 %v1286_v29  ;;  %v1029_v16 = vmul.f32 %v2115_v18, %v2479_v23  ;;  %v1112_v42 = vadd.f32 %v3092_v52, %v1038_v11  ;;  %v3516_v20 = vsub.f32 %v2837_v56, %v2840_v50  ;;  %v3523_v29 = vld [vmem:[#allocation35_spill] sm:$0xff]  ;;  %v3525_v18 = vld [vmem:[#allocation34_spill] sm:$0xff]  ;;  %v3526_v9 = vld [vmem:[#allocation37_spill] sm:$0xff] }
 0x1e6   : > { %v2119_v37 = vpop.eup %2118  ;;  %2136 = vpow2.f32 %v1016_v35  ;;  %v1279_v59 = vpack.c.bf16 %v1028_v60, %v1026_v17  ;;  %1492 = vmatmul.mubr.bf16.gmra.mrb[4].mxu1 %v1285_v6  ;;  %v1043_v45 = vmul.f32 %v2117_v54, %v2477_v22  ;;  %v3518_v52 = vsub.f32 %v2862_v8, %v3517_v7  ;;  %v3522_v35 = vld [vmem:[#allocation32_spill] sm:$0xff]  ;;  %v3532_v6 = vld [vmem:[#allocation45_spill] sm:$0xff] }
 0x1e7   : > { %v2121_v62 = vpop.eup %2120  ;;  %v1097_v25 = vadd.f32 %v1029_v16, %v1028_v60  ;;  %v1280_v5 = vpack.c.bf16 %v1029_v16, %v1027_v26  ;;  %v1030_v0 = vmul.f32 %v2119_v37, %v2491_v33  ;;  %v810_v14 = vmul.f32 1.442695, %v3516_v20  ;;  %v3520_v26 = vld [vmem:[#allocation26_spill] sm:$0xff]  ;;  %v3531_v37 = vld [vmem:[#allocation43_spill] sm:$0xff]  ;;  %v3559_v7 = vld [vmem:[#allocation52_spill] sm:$0xff] }
 0x1e8   : > { %v2123_v10 = vpop.eup %2122  ;;  %v1044_v2 = vmul.f32 %v2121_v62, %v2481_v24  ;;  %v814_v47 = vmul.f32 1.442695, %v3518_v52  ;;  %v3524_v27 = vsub.f32 %v3522_v35, %v3523_v29  ;;  %v3527_v56 = vsub.f32 %v3525_v18, %v3526_v9  ;;  %v3529_v60 = vld [vmem:[#allocation42_spill] sm:$0xff]  ;;  %v1050_v18 = vld [vmem:[#allocation3] sm:$0xff] }
 0x1e9   : > { %v2125_v13 = vpop.eup %2124  ;;  %1098 = vadd.xlane.f32.xlu0 %v1097_v25  ;;  %1467 = vmatprep.mubr.bf16.mxu0 %v1280_v5  ;;  %v1045_v23 = vmul.f32 %v2123_v10, %v2487_v28  ;;  %2138 = vpow2.f32 %v810_v14  ;;  %v3533_v62 = vsub.f32 %v3531_v37, %v3532_v6  ;;  %v3534_v5 = vld [vmem:[#allocation48_spill] sm:$0xff]  ;;  %v3558_v14 = vld [vmem:[#allocation51_spill] sm:$0xff] }
 0x1ea   : > { %v2127_v46 = vpop.eup %2126  ;;  %v1031_v36 = vmul.f32 %v2125_v13, %v2493_v34  ;;  %1468 = vmatmul.mubr.bf16.gmra.mrb[8].mxu0 %v1279_v59  ;;  %v1287_v33 = vpack.c.bf16 %v1044_v2, %v1042_v48  ;;  %2140 = vpow2.f32 %v814_v47  ;;  %v816_v11 = vmul.f32 1.442695, %v3524_v27  ;;  %v3535_v59 = vld [vmem:[#allocation50_spill] sm:$0xff]  ;;  %v3537_v13 = vld [vmem:[#allocation25_spill] sm:$0xff] }
 0x1eb   : > { %v2129_v44 = vpop.eup %2128  ;;  %v1288_v49 = vpack.c.bf16 %v1045_v23, %v1043_v45  ;;  %v818_v50 = vmul.f32 1.442695, %v3527_v56  ;;  %v822_v25 = vmul.f32 1.442695, %v3533_v62  ;;  %v3536_v10 = vsub.f32 %v3534_v5, %v3535_v59  ;;  %v1053_v59 = vld [vmem:[#allocation3 + $0x18] sm:$0xff] }
 0x1ec   : > { %v2131_v39 = vpop.eup %2130  ;;  %v1100_v63 = vadd.f32 %v1031_v36, %v1030_v0  ;;  %v1032_v24 = vmul.f32 %v2129_v44, %v2495_v38  ;;  %v3560_v52 = vsub.f32 %v3558_v14, %v3559_v7  ;;  %v1062_v7 = vld [vmem:[#allocation3 + $0x60] sm:$0xff] }
 0x1ed   : > { %1499 = vmatprep.mubr.bf16.mxu1 %v1288_v49  ;;  %v1033_v30 = vmul.f32 %v2131_v39, %v2502_v43  ;;  %v2133_v58 = vpop.eup %2132  ;;  %v1046_v43 = vmul.f32 %v2127_v46, %v2526_v15 }
 0x1ee   : > { %1101 = vadd.xlane.f32.xlu1 %v1100_v63  ;;  %v1281_v41 = vpack.c.bf16 %v1032_v24, %v1030_v0  ;;  %1500 = vmatmul.mubr.bf16.gmra.mrb[8].mxu1 %v1287_v33  ;;  %v1047_v38 = vmul.f32 %v2133_v58, %v2533_v19  ;;  %v1118_v19 = vadd.f32 %v1043_v45, %v1042_v48  ;;  %v824_v0 = vmul.f32 1.442695, %v3536_v10  ;;  %v3538_v45 = vld [vmem:[#allocation27_spill] sm:$0xff]  ;;  %v3541_v48 = vld [vmem:[#allocation30_spill] sm:$0xff] }
 0x1ef   : > { %v2135_v22 = vpop.eup %2134  ;;  %v1103_v28 = vadd.f32 %v1033_v30, %v1032_v24  ;;  %v1282_v61 = vpack.c.bf16 %v1033_v30, %v1031_v36  ;;  %v3540_v36 = vld [vmem:[#allocation28_spill] sm:$0xff]  ;;  %v3543_v33 = vld [vmem:[#allocation31_spill] sm:$0xff]  ;;  %v3544_v24 = vld [vmem:[#allocation33_spill] sm:$0xff]  ;;  %v840_v47 = vmul.f32 1.442695, %v3560_v52 }
 0x1f0   : > { %v2137_v34 = vpop.eup %2136  ;;  %v1048_v3 = vmul.f32 %v2135_v22, %v2777_v12  ;;  %v1115_v12 = vadd.f32 %v3097_v1, %v1040_v55  ;;  %v1124_v32 = vadd.f32 %v1047_v38, %v1046_v43  ;;  %v3519_v1 = vld [vmem:[#allocation24_spill] sm:$0xff]  ;;  %v3542_v44 = vsub.f32 %v3540_v36, %v3541_v48 }
 0x1f1   : > { %1104 = vadd.xlane.f32.xlu0 %v1103_v28  ;;  %1475 = vmatprep.mubr.bf16.mxu0 %v1282_v61  ;;  %v1049_v51 = vmul.f32 %v2137_v34, %v2781_v4  ;;  %v1121_v4 = vadd.f32 %v1045_v23, %v1044_v2  ;;  %v3521_v53 = vsub.f32 %v3519_v1, %v3520_v26  ;;  %v3528_v55 = vld [vmem:[#allocation40_spill] sm:$0xff]  ;;  %v3547_v28 = vld [vmem:[#allocation38_spill] sm:$0xff] }
 0x1f2   : > { %1107 = vadd.xlane.f32.xlu1 %v1106_v21  ;;  %1476 = vmatmul.mubr.bf16.gmra.mrb[12].mxu0 %v1281_v41  ;;  %v1289_v17 = vpack.c.bf16 %v1048_v3, %v1046_v43  ;;  %v3530_v54 = vsub.f32 %v3528_v55, %v3529_v60  ;;  %v3539_v23 = vsub.f32 %v3537_v13, %v3538_v45  ;;  %v828_v49 = vmul.f32 1.442695, %v3542_v44  ;;  %v3546_v22 = vld [vmem:[#allocation36_spill] sm:$0xff] }
 0x1f3   : > { %v1290_v57 = vpack.c.bf16 %v1049_v51, %v1047_v38  ;;  %v1127_v15 = vadd.f32 %v1049_v51, %v1048_v3  ;;  %v812_v40 = vmul.f32 1.442695, %v3521_v53  ;;  %v2139_v16 = vpop.eup %2138  ;;  %v3545_v30 = vsub.f32 %v3543_v33, %v3544_v24  ;;  %v3549_v3 = vld [vmem:[#allocation39_spill] sm:$0xff]  ;;  %v3550_v38 = vld [vmem:[#allocation41_spill] sm:$0xff]  ;;  %v1051_v55 = vld [vmem:[#allocation3 + $0x8] sm:$0xff] }
 0x1f4   : > { %v820_v8 = vmul.f32 1.442695, %v3530_v54  ;;  %v2141_v2 = vpop.eup %2140  ;;  %v826_v46 = vmul.f32 1.442695, %v3539_v23  ;;  %v3548_v61 = vsub.f32 %v3546_v22, %v3547_v28  ;;  %v3551_v51 = vsub.f32 %v3549_v3, %v3550_v38  ;;  %v1052_v54 = vld [vmem:[#allocation3 + $0x10] sm:$0xff]  ;;  %v1057_v22 = vld [vmem:[#allocation3 + $0x38] sm:$0xff] }
 0x1f5   : > { %1110 = vadd.xlane.f32.xlu0 %v1109_v31  ;;  %1507 = vmatprep.mubr.bf16.mxu1 %v1290_v57  ;;  %2142 = vpow2.f32 %v812_v40  ;;  %v830_v58 = vmul.f32 1.442695, %v3545_v30  ;;  %v3552_v31 = vld [vmem:[#allocation44_spill] sm:$0xff]  ;;  %v3553_v57 = vld [vmem:[#allocation46_spill] sm:$0xff]  ;;  %v1066_v9 = vmul.f32 %v2139_v16, %v1050_v18  ;;  %v1068_v6 = vmul.f32 %v2141_v2, %v1052_v54  ;;  %v1056_v33 = vld [vmem:[#allocation3 + $0x30] sm:$0xff] }
 0x1f6   : > { %1113 = vadd.xlane.f32.xlu1 %v1112_v42  ;;  %1508 = vmatmul.mubr.bf16.gmra.mrb[12].mxu1 %v1289_v17  ;;  %2144 = vpow2.f32 %v816_v11  ;;  %v832_v41 = vmul.f32 1.442695, %v3548_v61  ;;  %v834_v43 = vmul.f32 1.442695, %v3551_v51  ;;  %v3554_v42 = vsub.f32 %v3552_v31, %v3553_v57  ;;  %v1058_v61 = vld [vmem:[#allocation3 + $0x40] sm:$0xff] }
 0x1f7   : > { %2146 = vpow2.f32 %v818_v50 }
 0x1f8   : > { %2148 = vpow2.f32 %v820_v8  ;;  %v836_v17 = vmul.f32 1.442695, %v3554_v42  ;;  %v1060_v42 = vld [vmem:[#allocation3 + $0x50] sm:$0xff] }
 0x1f9   : > { %1116 = vadd.xlane.f32.xlu0 %v1115_v12  ;;  %2150 = vpow2.f32 %v822_v25 }
 0x1fa   : > { %1119 = vadd.xlane.f32.xlu1 %v1118_v19  ;;  %2152 = vpow2.f32 %v824_v0  ;;  %v1054_v0 = vld [vmem:[#allocation3 + $0x20] sm:$0xff] }
 0x1fb   : > { %2154 = vpow2.f32 %v826_v46  ;;  %v1055_v46 = vld [vmem:[#allocation3 + $0x28] sm:$0xff] }
 0x1fc   : > { %2156 = vpow2.f32 %v828_v49 }
 0x1fd   : > { %1122 = vadd.xlane.f32.xlu0 %v1121_v4  ;;  %2158 = vpow2.f32 %v830_v58  ;;  %v3555_v4 = vld [vmem:[#allocation47_spill] sm:$0xff] }
 0x1fe   : > { %1125 = vadd.xlane.f32.xlu1 %v1124_v32  ;;  %2160 = vpow2.f32 %v832_v41  ;;  %v3556_v32 = vld [vmem:[#allocation49_spill] sm:$0xff] }
 0x1ff   : > { %v2143_v39 = vpop.eup %2142  ;;  %2162 = vpow2.f32 %v834_v43  ;;  %v1059_v43 = vld [vmem:[#allocation3 + $0x48] sm:$0xff] }
 0x200   : > { %v2145_v63 = vpop.eup %2144  ;;  %2164 = vpow2.f32 %v836_v17  ;;  %v1067_v60 = vmul.f32 %v2143_v39, %v1051_v55  ;;  %v1064_v55 = vld [vmem:[#allocation3 + $0x70] sm:$0xff] }
 0x201   : > { %1128 = vadd.xlane.f32.xlu0 %v1127_v15  ;;  %v2147_v34 = vpop.eup %2146  ;;  %v3557_v15 = vsub.f32 %v3555_v4, %v3556_v32 }
 0x202   : > { %v3161_v21 = vpop.eup %2148  ;;  %v1070_v23 = vmul.f32 %v2147_v34, %v1054_v0 }
 0x203   : > { %v3170_v12 = vpop.eup %2150  ;;  %v838_v20 = vmul.f32 1.442695, %v3557_v15  ;;  %v1071_v49 = vmul.f32 %v3161_v21, %v1055_v46  ;;  %v1061_v15 = vld [vmem:[#allocation3 + $0x58] sm:$0xff] }
 0x204   : > { %v3172_v19 = vpop.eup %2152  ;;  %v1072_v58 = vmul.f32 %v3170_v12, %v1056_v33 }
 0x205   : > { %v3182_v1 = vpop.eup %2154  ;;  %2166 = vpow2.f32 %v838_v20 }
 0x206   : > { %v3184_v26 = vpop.eup %2156  ;;  %2168 = vpow2.f32 %v840_v47  ;;  %v1074_v38 = vmul.f32 %v3182_v1, %v1058_v61 }
 0x207   : > { %v3188_v53 = vpop.eup %2158  ;;  %v1075_v4 = vmul.f32 %v3184_v26, %v1059_v43 }
 0x208   : > { %v3190_v40 = vpop.eup %2160 }
 0x209   : > { %v3194_v35 = vpop.eup %2162 }
 0x20a   : > { %v3196_v29 = vpop.eup %2164 }
 0x20f   : > { %1181 = vperm.xlu1 %2057, %v2139_v16   ;;  %v3200_v27 = vpop.eup %2166  ;;  %v1069_v16 = vmul.f32 %v2145_v63, %v1053_v59 }
 0x210   : > { %v3202_v11 = vpop.eup %2168 }
 0x213   : > { %1191 = vperm.xlu1 %2057, %v2141_v2  }
 0x217   : > { %1196 = vperm.xlu1 %2057, %v2145_v63   ;;  %1186 = vperm.xlu0 %2056, %v2143_v39  }
 0x21b   : > { %1206 = vperm.xlu1 %2057, %v3161_v21   ;;  %1201 = vperm.xlu0 %2056, %v2147_v34   ;;  %v1073_v21 = vmul.f32 %v3172_v19, %v1057_v22 }
 0x21f   : > { %1216 = vperm.xlu1 %2057, %v3172_v19   ;;  %1211 = vperm.xlu0 %2056, %v3170_v12   ;;  %v1076_v19 = vmul.f32 %v3188_v53, %v1060_v42 }
 0x223   : > { %1226 = vperm.xlu1 %2057, %v3184_v26   ;;  %1221 = vperm.xlu0 %2056, %v3182_v1   ;;  %v1077_v1 = vmul.f32 %v3190_v40, %v1061_v15  ;;  %v1078_v26 = vmul.f32 %v3194_v35, %v1062_v7 }
 0x227   : > { %1236 = vperm.xlu1 %2057, %v3190_v40   ;;  %1231 = vperm.xlu0 %2056, %v3188_v53  }
 0x22b   : > { %1246 = vperm.xlu1 %2057, %v3196_v29   ;;  %1241 = vperm.xlu0 %2056, %v3194_v35   ;;  %v1080_v35 = vmul.f32 %v3200_v27, %v1064_v55 }
 0x22f   : > { %1256 = vperm.xlu1 %2057, %v3202_v11   ;;  %1251 = vperm.xlu0 %2056, %v3200_v27  }
 0x25b   : > { %v1084_v56 = vpop.xlane.xlu0 %1083 }
 0x25c   : > { %v1130_v50 = vadd.f32 %v1084_v56, %v1066_v9  ;;  %v1063_v56 = vld [vmem:[#allocation3 + $0x68] sm:$0xff] }
 0x25e   : > { %1147 = vst.msk [vmem:[#allocation3] sm:$0xff] %vm325_vm0, %v1130_v50 }
 0x260   : > { %v1087_v8 = vpop.xlane.xlu1 %1086 }
 0x261   : > { %v1131_v37 = vadd.f32 %v1087_v8, %v1067_v60 }
 0x263   : > { %1148 = vst.msk [vmem:[#allocation3 + $0x8] sm:$0xff] %vm325_vm0, %v1131_v37  ;;  %v1079_v37 = vmul.f32 %v3196_v29, %v1063_v56 }
 0x265   : > { %v1583_v5 = vld [vmem:[#allocation3] sm:$0xff] }
 0x266   : > { %2170 = vrcp.f32 %v1583_v5 }
 0x267   : > { %v1090_v62 = vpop.xlane.xlu0 %1089 }
 0x268   : > { %v1132_v25 = vadd.f32 %v1090_v62, %v1068_v6  ;;  %v1065_v62 = vld [vmem:[#allocation3 + $0x78] sm:$0xff] }
 0x269   : > { %v1081_v0 = vmul.f32 %v3202_v11, %v1065_v62 }
 0x26a   : > { %1149 = vst.msk [vmem:[#allocation3 + $0x10] sm:$0xff] %vm325_vm0, %v1132_v25  ;;  %v1584_v13 = vld [vmem:[#allocation3 + $0x8] sm:$0xff] }
 0x26b   : > { %2172 = vrcp.f32 %v1584_v13 }
 0x26d   : > { %v1093_v10 = vpop.xlane.xlu0 %1092 }
 0x26e   : > { %v1133_v45 = vadd.f32 %v1093_v10, %v1069_v16 }
 0x270   : > { %1150 = vst.msk [vmem:[#allocation3 + $0x18] sm:$0xff] %vm325_vm0, %v1133_v45  ;;  %v2171_v48 = vpop.eup %2170 }
 0x271   : > { %v1585_v2 = vld [vmem:[#allocation3 + $0x10] sm:$0xff]  ;;  %v1096_v36 = vpop.xlane.xlu1 %1095  ;;  %1617 = vperm.xlu0 %2056, %v2171_v48  }
 0x272   : > { %2174 = vrcp.f32 %v1585_v2  ;;  %v1134_v44 = vadd.f32 %v1096_v36, %v1070_v23 }
 0x274   : > { %1151 = vst.msk [vmem:[#allocation3 + $0x20] sm:$0xff] %vm325_vm0, %v1134_v44 }
 0x275   : > { %v2173_v30 = vpop.eup %2172 }
 0x276   : > { %v1099_v39 = vpop.xlane.xlu0 %1098  ;;  %1622 = vperm.xlu1 %2057, %v2173_v30  }
 0x277   : > { %v1135_v63 = vadd.f32 %v1099_v39, %v1071_v49  ;;  %v1586_v24 = vld [vmem:[#allocation3 + $0x18] sm:$0xff] }
 0x278   : > { %2176 = vrcp.f32 %v1586_v24 }
 0x279   : > { %1152 = vst.msk [vmem:[#allocation3 + $0x28] sm:$0xff] %vm325_vm0, %v1135_v63 }
 0x27b   : > { %v1102_v28 = vpop.xlane.xlu1 %1101  ;;  %v1587_v3 = vld [vmem:[#allocation3 + $0x20] sm:$0xff] }
 0x27c   : > { %v1136_v41 = vadd.f32 %v1102_v28, %v1072_v58  ;;  %v2175_v34 = vpop.eup %2174  ;;  %2178 = vrcp.f32 %v1587_v3 }
 0x27d   : > { %1627 = vperm.xlu0 %2056, %v2175_v34  }
 0x27e   : > { %1153 = vst.msk [vmem:[#allocation3 + $0x30] sm:$0xff] %vm325_vm0, %v1136_v41  ;;  %v1105_v51 = vpop.xlane.xlu0 %1104 }
 0x27f   : > { %v1108_v31 = vpop.xlane.xlu1 %1107  ;;  %v1137_v57 = vadd.f32 %v1105_v51, %v1073_v21 }
 0x280   : > { %v1138_v17 = vadd.f32 %v1108_v31, %v1074_v38  ;;  %v1588_v12 = vld [vmem:[#allocation3 + $0x28] sm:$0xff] }
 0x281   : > { %1154 = vst.msk [vmem:[#allocation3 + $0x38] sm:$0xff] %vm325_vm0, %v1137_v57  ;;  %2180 = vrcp.f32 %v1588_v12 }
 0x282   : > { %1155 = vst.msk [vmem:[#allocation3 + $0x40] sm:$0xff] %vm325_vm0, %v1138_v17  ;;  %v1111_v32 = vpop.xlane.xlu0 %1110  ;;  %v2177_v52 = vpop.eup %2176 }
 0x283   : > { %v1114_v20 = vpop.xlane.xlu1 %1113  ;;  %v1139_v14 = vadd.f32 %v1111_v32, %v1075_v4  ;;  %1632 = vperm.xlu1 %2057, %v2177_v52  }
 0x284   : > { %v1140_v47 = vadd.f32 %v1114_v20, %v1076_v19 }
 0x285   : > { %1156 = vst.msk [vmem:[#allocation3 + $0x48] sm:$0xff] %vm325_vm0, %v1139_v14  ;;  %v1589_v18 = vld [vmem:[#allocation3 + $0x30] sm:$0xff] }
 0x286   : > { %1157 = vst.msk [vmem:[#allocation3 + $0x50] sm:$0xff] %vm325_vm0, %v1140_v47  ;;  %v1117_v9 = vpop.xlane.xlu0 %1116  ;;  %2182 = vrcp.f32 %v1589_v18  ;;  %v2179_v60 = vpop.eup %2178 }
 0x287   : > { %v1120_v53 = vpop.xlane.xlu1 %1119  ;;  %v1141_v50 = vadd.f32 %v1117_v9, %v1077_v1  ;;  %1637 = vperm.xlu0 %2056, %v2179_v60  }
 0x288   : > { %v1142_v54 = vadd.f32 %v1120_v53, %v1078_v26  ;;  %v1590_v8 = vld [vmem:[#allocation3 + $0x38] sm:$0xff] }
 0x289   : > { %1158 = vst.msk [vmem:[#allocation3 + $0x58] sm:$0xff] %vm325_vm0, %v1141_v50  ;;  %v1591_v40 = vld [vmem:[#allocation3 + $0x40] sm:$0xff]  ;;  %2184 = vrcp.f32 %v1590_v8 }
 0x28a   : > { %1159 = vst.msk [vmem:[#allocation3 + $0x60] sm:$0xff] %vm325_vm0, %v1142_v54  ;;  %v1123_v6 = vpop.xlane.xlu0 %1122  ;;  %2186 = vrcp.f32 %v1591_v40 }
 0x28b   : > { %v2181_v25 = vpop.eup %2180  ;;  %v1126_v5 = vpop.xlane.xlu1 %1125  ;;  %v1143_v59 = vadd.f32 %v1123_v6, %v1079_v37 }
 0x28c   : > { %v1144_v16 = vadd.f32 %v1126_v5, %v1080_v35  ;;  %1642 = vperm.xlu1 %2057, %v2181_v25   ;;  %v1592_v10 = vld [vmem:[#allocation3 + $0x48] sm:$0xff] }
 0x28d   : > { %1160 = vst.msk [vmem:[#allocation3 + $0x68] sm:$0xff] %vm325_vm0, %v1143_v59  ;;  %v1593_v29 = vld [vmem:[#allocation3 + $0x50] sm:$0xff]  ;;  %2188 = vrcp.f32 %v1592_v10 }
 0x28e   : > { %1161 = vst.msk [vmem:[#allocation3 + $0x70] sm:$0xff] %vm325_vm0, %v1144_v16  ;;  %v1129_v13 = vpop.xlane.xlu0 %1128  ;;  %2190 = vrcp.f32 %v1593_v29 }
 0x28f   : > { %v1145_v27 = vadd.f32 %v1129_v13, %v1081_v0  ;;  %v1182_v60 = vpop.permute.xlu1 %1181 }
 0x290   : > { %v2183_v45 = vpop.eup %2182  ;;  %v1594_v23 = vld [vmem:[#allocation3 + $0x58] sm:$0xff] }
 0x291   : > { %1162 = vst.msk [vmem:[#allocation3 + $0x78] sm:$0xff] %vm325_vm0, %v1145_v27  ;;  %1647 = vperm.xlu0 %2056, %v2183_v45   ;;  %v1595_v46 = vld [vmem:[#allocation3 + $0x60] sm:$0xff]  ;;  %2192 = vrcp.f32 %v1594_v23 }
 0x292   : > { %2194 = vrcp.f32 %v1595_v46 }
 0x293   : > { %v2185_v2 = vpop.eup %2184  ;;  %v1192_v16 = vpop.permute.xlu1 %1191 }
 0x294   : > { %v2187_v36 = vpop.eup %2186  ;;  %1652 = vperm.xlu1 %2057, %v2185_v2   ;;  %v1596_v48 = vld [vmem:[#allocation3 + $0x68] sm:$0xff] }
 0x295   : > { %1657 = vperm.xlu0 %2056, %v2187_v36   ;;  %v1597_v11 = vld [vmem:[#allocation3 + $0x70] sm:$0xff]  ;;  %2196 = vrcp.f32 %v1596_v48 }
 0x296   : > { %2198 = vrcp.f32 %v1597_v11  ;;  %v1187_v0 = vpop.permute.xlu0 %1186 }
 0x297   : > { %v2189_v44 = vpop.eup %2188  ;;  %v1197_v46 = vpop.permute.xlu1 %1196 }
 0x298   : > { %v2191_v49 = vpop.eup %2190  ;;  %1662 = vperm.xlu1 %2057, %v2189_v44   ;;  %v1598_v39 = vld [vmem:[#allocation3 + $0x78] sm:$0xff] }
 0x299   : > { %1667 = vperm.xlu0 %2056, %v2191_v49   ;;  %2200 = vrcp.f32 %v1598_v39 }
 0x29a   : > { %v1202_v2 = vpop.permute.xlu0 %1201 }
 0x29b   : > { %v2193_v63 = vpop.eup %2192  ;;  %v1207_v36 = vpop.permute.xlu1 %1206 }
 0x29c   : > { %v2195_v33 = vpop.eup %2194  ;;  %1672 = vperm.xlu1 %2057, %v2193_v63  }
 0x29d   : > { %1677 = vperm.xlu0 %2056, %v2195_v33  }
 0x29e   : > { %v1212_v48 = vpop.permute.xlu0 %1211 }
 0x29f   : > { %v2197_v24 = vpop.eup %2196  ;;  %v1217_v11 = vpop.permute.xlu1 %1216 }
 0x2a0   : > { %v2199_v30 = vpop.eup %2198  ;;  %1682 = vperm.xlu1 %2057, %v2197_v24  }
 0x2a1   : > { %1687 = vperm.xlu0 %2056, %v2199_v30  }
 0x2a2   : > { %v1222_v44 = vpop.permute.xlu0 %1221 }
 0x2a3   : > { %v2201_v58 = vpop.eup %2200  ;;  %v1227_v49 = vpop.permute.xlu1 %1226 }
 0x2a4   : > { %1692 = vperm.xlu1 %2057, %v2201_v58   ;;  %v1259_v58 = vmul.f32 0.0, %v1182_v60 }
 0x2a6   : > { %v1232_v39 = vpop.permute.xlu0 %1231 }
 0x2a7   : > { %v1932_v22 = vpop.f32.mrb[0].mxu0  ;;  %v3265_v63 = vpop.permute.xlu1 %1236 }
 0x2a8   : > { %v1933_v28 = vpop.f32.mrb[1].mxu0 }
 0x2a9   : > { %v3233_v61 = vadd.f32 %v1933_v28, %v1932_v22  ;;  %v1935_v41 = vpop.f32.mrb[2].mxu0  ;;  %v3280_v28 = vld [vmem:[%s3399_s4] ss:$0 sm:$0xff] }
 0x2aa   : > { %v1936_v34 = vpop.f32.mrb[3].mxu0  ;;  %v3267_v33 = vpop.permute.xlu0 %1241 }
 0x2ab   : > { %v3235_v21 = vadd.f32 %v1936_v34, %v1935_v41  ;;  %v3270_v24 = vpop.permute.xlu1 %1246  ;;  %v1516_v22 = vadd.f32 %v3233_v61, %v1259_v58  ;;  %v1261_v61 = vmul.f32 0.0, %v1192_v16 }
 0x2ae   : > { %v3272_v30 = vpop.permute.xlu0 %1251 }
 0x2af   : > { %v1956_v3 = vpop.f32.mrb[0].mxu1 }
 0x2b0   : > { %v1957_v38 = vpop.f32.mrb[1].mxu1 }
 0x2b1   : > { %v3237_v51 = vadd.f32 %v1957_v38, %v1956_v3  ;;  %v1959_v43 = vpop.f32.mrb[2].mxu1  ;;  %v3282_v3 = vpop.permute.xlu1 %1256  ;;  %v1260_v38 = vmul.f32 0.0, %v1187_v0 }
 0x2b2   : > { %v1960_v31 = vpop.f32.mrb[3].mxu1 }
 0x2b3   : > { %v3239_v57 = vadd.f32 %v1960_v31, %v1959_v43  ;;  %v1517_v31 = vadd.f32 %v3235_v21, %v1260_v38  ;;  %v1262_v21 = vmul.f32 0.0, %v1197_v46  ;;  %v1268_v46 = vmul.f32 0.0, %v1227_v49 }
 0x2b4   : > { %v1938_v42 = vpop.f32.mrb[4].mxu0 }
 0x2b5   : > { %v1939_v17 = vpop.f32.mrb[5].mxu0 }
 0x2b6   : > { %v3241_v12 = vadd.f32 %v1939_v17, %v1938_v42  ;;  %v1941_v4 = vpop.f32.mrb[6].mxu0 }
 0x2b7   : > { %v1942_v19 = vpop.f32.mrb[7].mxu0 }
 0x2b8   : > { %v3243_v32 = vadd.f32 %v1942_v19, %v1941_v4  ;;  %v1518_v4 = vadd.f32 %v3241_v12, %v1261_v61 }
 0x2b9   : > { %v1962_v15 = vpop.f32.mrb[4].mxu1 }
 0x2ba   : > { %v1963_v20 = vpop.f32.mrb[5].mxu1 }
 0x2bb   : > { %v3245_v14 = vadd.f32 %v1963_v20, %v1962_v15  ;;  %v1965_v7 = vpop.f32.mrb[6].mxu1 }
 0x2bc   : > { %v1966_v52 = vpop.f32.mrb[7].mxu1 }
 0x2bd   : > { %v1944_v47 = vpop.f32.mrb[8].mxu0  ;;  %v3247_v1 = vadd.f32 %v1966_v52, %v1965_v7  ;;  %v1519_v52 = vadd.f32 %v3243_v32, %v1262_v21 }
 0x2be   : > { %v1945_v18 = vpop.f32.mrb[9].mxu0 }
 0x2bf   : > { %v3249_v26 = vadd.f32 %v1945_v18, %v1944_v47  ;;  %v1947_v9 = vpop.f32.mrb[10].mxu0  ;;  %v1263_v18 = vmul.f32 0.0, %v1202_v2 }
 0x2c0   : > { %v1948_v56 = vpop.f32.mrb[11].mxu0 }
 0x2c1   : > { %v3251_v53 = vadd.f32 %v1948_v56, %v1947_v9  ;;  %v1968_v50 = vpop.f32.mrb[8].mxu1  ;;  %v1520_v56 = vadd.f32 %v3249_v26, %v1263_v18  ;;  %v1266_v26 = vmul.f32 0.0, %v1217_v11  ;;  %v1525_v11 = vadd.f32 %v3239_v57, %v1268_v46 }
 0x2c2   : > { %v1969_v55 = vpop.f32.mrb[9].mxu1 }
 0x2c3   : > { %v3253_v54 = vadd.f32 %v1969_v55, %v1968_v50  ;;  %v1971_v8 = vpop.f32.mrb[10].mxu1  ;;  %v1264_v50 = vmul.f32 0.0, %v1207_v36 }
 0x2c4   : > { %v1972_v37 = vpop.f32.mrb[11].mxu1 }
 0x2c5   : > { %v1950_v40 = vpop.f32.mrb[12].mxu0  ;;  %v3255_v35 = vadd.f32 %v1972_v37, %v1971_v8  ;;  %v1521_v8 = vadd.f32 %v3251_v53, %v1264_v50 }
 0x2c6   : > { %v1951_v6 = vpop.f32.mrb[13].mxu0 }
 0x2c7   : > { %v3257_v62 = vadd.f32 %v1951_v6, %v1950_v40  ;;  %v1953_v25 = vpop.f32.mrb[14].mxu0 }
 0x2c8   : > { %v1954_v5 = vpop.f32.mrb[15].mxu0 }
 0x2c9   : > { %v3259_v59 = vadd.f32 %v1954_v5, %v1953_v25  ;;  %v1974_v10 = vpop.f32.mrb[12].mxu1  ;;  %v1265_v25 = vmul.f32 0.0, %v1212_v48  ;;  %v1269_v48 = vmul.f32 0.0, %v1232_v39  ;;  %v1271_v39 = vmul.f32 0.0, %v3267_v33 }
 0x2ca   : > { %v1975_v29 = vpop.f32.mrb[13].mxu1  ;;  %v1273_v33 = vmul.f32 0.0, %v3272_v30 }
 0x2cb   : > { %v3261_v13 = vadd.f32 %v1975_v29, %v1974_v10  ;;  %v1977_v27 = vpop.f32.mrb[14].mxu1  ;;  %v1522_v5 = vadd.f32 %v3257_v62, %v1265_v25  ;;  %v1267_v10 = vmul.f32 0.0, %v1222_v44  ;;  %v1523_v29 = vadd.f32 %v3259_v59, %v1266_v26 }
 0x2cc   : > { %v1978_v45 = vpop.f32.mrb[15].mxu1  ;;  %v1526_v58 = vadd.f32 %v3245_v14, %v1269_v48  ;;  %v1528_v14 = vadd.f32 %v3253_v54, %v1271_v39 }
 0x2cd   : > { %v3263_v23 = vadd.f32 %v1978_v45, %v1977_v27  ;;  %v1524_v53 = vadd.f32 %v3237_v51, %v1267_v10 }
 0x2f0   : > { %v1618_v41 = vpop.permute.xlu0 %1617 }
 0x2f1   : > { %v1695_v34 = vmul.f32 %v1618_v41, %v1516_v22  ;;  %v1270_v22 = vmul.f32 0.0, %v3265_v63  ;;  %v1272_v63 = vmul.f32 0.0, %v3270_v24 }
 0x2f3   : > { %v1718_v43 = vadd.f32 %v3280_v28, %v1695_v34  ;;  %v1527_v57 = vadd.f32 %v3247_v1, %v1270_v22 }
 0x2f5   : > { %1734 = vst [vmem:[%s3286_s10] sm:$0xff] %v1718_v43  ;;  %v1623_v42 = vpop.permute.xlu1 %1622 }
 0x2f6   : > { %v1696_v17 = vmul.f32 %v1623_v42, %v1517_v31 }
 0x2f8   : > { %v1719_v19 = vadd.f32 %v3280_v28, %v1696_v17  ;;  %v1529_v17 = vadd.f32 %v3255_v35, %v1272_v63 }
 0x2fa   : > { %1735 = vst [vmem:[%s3286_s10 + $0x8] sm:$0xff] %v1719_v19 }
 0x2fc   : > { %v1628_v15 = vpop.permute.xlu0 %1627 }
 0x2fd   : > { %v1697_v20 = vmul.f32 %v1628_v15, %v1518_v4  ;;  %v1530_v4 = vadd.f32 %v3261_v13, %v1273_v33  ;;  %v1274_v15 = vmul.f32 0.0, %v3282_v3 }
 0x2ff   : > { %v1720_v7 = vadd.f32 %v3280_v28, %v1697_v20  ;;  %v1531_v35 = vadd.f32 %v3263_v23, %v1274_v15 }
 0x301   : > { %1736 = vst [vmem:[%s3286_s10 + $0x10] sm:$0xff] %v1720_v7 }
 0x302   : > { %v1633_v47 = vpop.permute.xlu1 %1632 }
 0x303   : > { %v1698_v9 = vmul.f32 %v1633_v47, %v1519_v52 }
 0x305   : > { %v1721_v12 = vadd.f32 %v3280_v28, %v1698_v9 }
 0x306   : > { %v1638_v55 = vpop.permute.xlu0 %1637 }
 0x307   : > { %1737 = vst [vmem:[%s3286_s10 + $0x18] sm:$0xff] %v1721_v12  ;;  %v1699_v60 = vmul.f32 %v1638_v55, %v1520_v56 }
 0x309   : > { %v1722_v37 = vadd.f32 %v3280_v28, %v1699_v60 }
 0x30b   : > { %v1643_v40 = vpop.permute.xlu1 %1642  ;;  %1738 = vst [vmem:[%s3286_s10 + $0x20] sm:$0xff] %v1722_v37 }
 0x30c   : > { %v1700_v6 = vmul.f32 %v1643_v40, %v1521_v8 }
 0x30e   : > { %v1723_v32 = vadd.f32 %v3280_v28, %v1700_v6 }
 0x310   : > { %1739 = vst [vmem:[%s3286_s10 + $0x28] sm:$0xff] %v1723_v32  ;;  %v1648_v16 = vpop.permute.xlu0 %1647 }
 0x311   : > { %v1701_v0 = vmul.f32 %v1648_v16, %v1522_v5 }
 0x313   : > { %v1724_v27 = vadd.f32 %v3280_v28, %v1701_v0  ;;  %v1653_v45 = vpop.permute.xlu1 %1652 }
 0x314   : > { %v1702_v2 = vmul.f32 %v1653_v45, %v1523_v29  ;;  %v1658_v36 = vpop.permute.xlu0 %1657 }
 0x315   : > { %1740 = vst [vmem:[%s3286_s10 + $0x30] sm:$0xff] %v1724_v27  ;;  %v1703_v62 = vmul.f32 %v1658_v36, %v1524_v53 }
 0x316   : > { %v1725_v44 = vadd.f32 %v3280_v28, %v1702_v2 }
 0x317   : > { %v1726_v59 = vadd.f32 %v3280_v28, %v1703_v62  ;;  %v1663_v51 = vpop.permute.xlu1 %1662 }
 0x318   : > { %1741 = vst [vmem:[%s3286_s10 + $0x38] sm:$0xff] %v1725_v44  ;;  %v1704_v49 = vmul.f32 %v1663_v51, %v1525_v11  ;;  %v1668_v41 = vpop.permute.xlu0 %1667 }
 0x319   : > { %1742 = vst [vmem:[%s3286_s10 + $0x40] sm:$0xff] %v1726_v59  ;;  %v1705_v34 = vmul.f32 %v1668_v41, %v1526_v58 }
 0x31a   : > { %v1727_v38 = vadd.f32 %v3280_v28, %v1704_v49 }
 0x31b   : > { %v1728_v43 = vadd.f32 %v3280_v28, %v1705_v34  ;;  %v1673_v31 = vpop.permute.xlu1 %1672 }
 0x31c   : > { %1743 = vst [vmem:[%s3286_s10 + $0x48] sm:$0xff] %v1727_v38  ;;  %v1706_v61 = vmul.f32 %v1673_v31, %v1527_v57  ;;  %v1678_v42 = vpop.permute.xlu0 %1677 }
 0x31d   : > { %1744 = vst [vmem:[%s3286_s10 + $0x50] sm:$0xff] %v1728_v43  ;;  %v1707_v1 = vmul.f32 %v1678_v42, %v1528_v14 }
 0x31e   : > { %v1729_v54 = vadd.f32 %v3280_v28, %v1706_v61 }
 0x31f   : > { %v1730_v19 = vadd.f32 %v3280_v28, %v1707_v1  ;;  %v1683_v24 = vpop.permute.xlu1 %1682 }
 0x320   : > { %1745 = vst [vmem:[%s3286_s10 + $0x58] sm:$0xff] %v1729_v54  ;;  %v1708_v20 = vmul.f32 %v1683_v24, %v1529_v17  ;;  %v1688_v30 = vpop.permute.xlu0 %1687 }
 0x321   : > { %1746 = vst [vmem:[%s3286_s10 + $0x60] sm:$0xff] %v1730_v19  ;;  %v1709_v7 = vmul.f32 %v1688_v30, %v1530_v4 }
 0x322   : > { %v1731_v21 = vadd.f32 %v3280_v28, %v1708_v20 }
 0x323   : > { %v1732_v13 = vadd.f32 %v3280_v28, %v1709_v7  ;;  %v1693_v52 = vpop.permute.xlu1 %1692 }
 0x324   : > { %1747 = vst [vmem:[%s3286_s10 + $0x68] sm:$0xff] %v1731_v21  ;;  %v1710_v47 = vmul.f32 %v1693_v52, %v1531_v35 }
 0x325   : > { %1748 = vst [vmem:[%s3286_s10 + $0x70] sm:$0xff] %v1732_v13 }
 0x326   : > { %v1733_v23 = vadd.f32 %v3280_v28, %v1710_v47 }
 0x328   : > { %1749 = vst [vmem:[%s3286_s10 + $0x78] sm:$0xff] %v1733_v23 }
 0x329   : > { %2215 = shalt.err (!%p2212_p6)
}
 0x32a   : > { %s2216_s27 = scalar_lea.hbm %s3341_s15, 2048  ;;  %s2220_s8 = scalar_lea.hbm %s3400_s5, 4096 }
 0x32b   : > { %p2217_p7 = scmp.ne.s32.totalorder %s3341_s15, %s2216_s27  ;;  %p2221_p11 = scmp.lt.u32.totalorder %s3341_s15, %s3400_s5 }
 0x32c   : > { %p2222_p12 = scmp.lt.u32.totalorder %s2220_s8, %s2216_s27  ;;  %p2224_p0 = scmp.lt.u32.totalorder %s2216_s27, %s3341_s15 }
 0x32d   : > { %p2218_p9 = pnand %p2217_p7, %p2358_p4 }
 0x32e   : > { %p2223_p13 = por %p2222_p12, %p2221_p11 }
 0x32f   : > { %p2219_p10 = pneg %p2218_p9 }
 0x330   : > { %p2225_p1 = por %p2224_p0, %p2223_p13 }
 0x332   : > { %p2226_p2 = pnand %p2225_p1, %p2219_p10 }
 0x334   : > { %2229 = shalt.err (!%p2226_p2)
}
 0x335   : > { %s2286_s11 = smov 128   ;;  %s2287_s13 = smov 8  }
 0x336   : > { %1996 = dma.vmem_to_hbm [thread:$0]  (%p2358_p4), %s3343_s12, 2048, %s3341_s15, %s3349_s21, %s2286_s11, %s2286_s11, %s2287_s13  }
 0x337 PF: > { %p2002_p3 = scmp.ge.s32.totalorder %s2280_s23, 2  ;;  %s1779_s14 = sand.u32 1, %s2260_s18  }
 0x338   : > { %s1780_s16 = scalar_lea.sflag [#allocation5], %s1779_s14 }
 0x339   : > { %p1999_p5 = pnand %p2002_p3, %p2365_p8 }
 0x33b   : > { %2255 = dma.done.wait (!%p1999_p5), %s1780_s16, 2048  }
 0x33c   : > { %2257 = vsyncadd (!%p1999_p5), %s1780_s16, 4294965248  ;;  %s18_s23 = sadd.s32 1, %s2280_s23   ;;  %s3561_s18 = smov %s2264_s19 }
 0x33d   : > { %p15_p6 = scmp.ge.s32.totalorder %s18_s23, 4   ;;  %s3562_s19 = smov %s2268_s20 }
 0x33e   : > { %s3563_s20 = smov %s2371_s6  ;;  %s3564_s21 = smov %s2276_s22 }
 0x33f   : > { %s3565_s22 = smov %s3567_s26  ;;  %17 = sbr.rel (!%p15_p6) target bundleno = 4 (0x4), region = 92 }
 0x346   :  { %1785 = vsyncpa [#allocation5], 1 }
 0x347   :  { %1787 = vsyncpa [#allocation5 + $0x1], 1 }

</bundles_post_ra>
